<compile_context>
chip_gen: v5e
topology: v5e:2x2
jax: 0.10.0
libtpu: 0.0.40
codegen_flags: <defaults>
</compile_context>

<pallas_src>
import math
import functools

import jax
import jax.numpy as jnp
from jax.experimental import pallas as pl
from jax.experimental.pallas import tpu as pltpu

LN_EPS = 1e-12  # BertConfig default layer_norm_eps


# ----------------------------- in-kernel helpers -----------------------------
def _layernorm(x, gamma, beta, eps=LN_EPS):
    mu = jnp.mean(x, axis=-1, keepdims=True)
    var = jnp.mean(jnp.square(x - mu), axis=-1, keepdims=True)
    return (x - mu) * jax.lax.rsqrt(var + eps) * gamma + beta


def _gelu_exact(x):
    # BERT hidden_act = "gelu" (erf-based, exact) -- kept exact for parity with the module.
    return 0.5 * x * (1.0 + jax.lax.erf(x * (1.0 / math.sqrt(2.0))))


def _gelu_tanh(x):
    # Optional EUP-friendly tanh approximation (enable via gelu_tanh_approx=True if tolerance allows).
    c = math.sqrt(2.0 / math.pi)
    return 0.5 * x * (1.0 + jnp.tanh(c * (x + 0.044715 * x * x * x)))


# ------------------------------ fused encoder kernel ---------------------------
def encoder_kernel(x_ref, vw_ref, vb_ref, eg_ref, eb_ref,
                   wqkv_ref, bqkv_ref, wo_ref, bo_ref, g1_ref, b1_ref,
                   wi_ref, bi_ref, wo2_ref, bo2_ref, g2_ref, b2_ref,
                   h_out_ref, h_ref, ctx_ref,
                   *, num_heads, tokens, gelu_tanh_approx):
    l = pl.program_id(1)
    n_layers = pl.num_programs(1)

    M, D = h_ref.shape                 # M = BB * T  (batch folded into matmul M dim)
    T = tokens
    BB = M // T
    H = num_heads
    dh = D // H
    scale = 1.0 / math.sqrt(dh)

    # ---- first layer step for this batch tile: visual_proj + embeddings LayerNorm ----
    @pl.when(l == 0)
    def _():
        e = jnp.dot(x_ref[...].astype(jnp.bfloat16), vw_ref[...],
                    preferred_element_type=jnp.float32) + vb_ref[...]
        h_ref[...] = _layernorm(e, eg_ref[...], eb_ref[...])

    h = h_ref[...]                     # (M, D) f32, resident in VMEM across the layer axis
    hb = h.astype(jnp.bfloat16)

    # ---- self-attention ----
    # Fused QKV projection: ONE (M, D) x (D, 3D) matmul, lane-dense N = 3*D.
    qkv = jnp.dot(hb, wqkv_ref[...], preferred_element_type=jnp.float32) + bqkv_ref[...]

    # Split per head (leading-dim reshapes only; static lane slices of width dh) and stack
    # all heads along a single leading batch dim so softmax runs once over (H*BB, T, T).
    q_parts, k_parts, v_parts = [], [], []
    for hd in range(H):
        q_parts.append(qkv[:, hd * dh:(hd + 1) * dh].reshape(BB, T, dh).astype(jnp.bfloat16))
        k_parts.append(qkv[:, D + hd * dh:D + (hd + 1) * dh].reshape(BB, T, dh).astype(jnp.bfloat16))
        v_parts.append(qkv[:, 2 * D + hd * dh:2 * D + (hd + 1) * dh].reshape(BB, T, dh).astype(jnp.bfloat16))
    q = jnp.concatenate(q_parts, axis=0)   # (H*BB, T, dh)
    k = jnp.concatenate(k_parts, axis=0)
    v = jnp.concatenate(v_parts, axis=0)

    s = jnp.einsum("gqd,gkd->gqk", q, k, preferred_element_type=jnp.float32) * scale
    s = s - jnp.max(s, axis=-1, keepdims=True)
    p = jnp.exp(s)
    p = p * pl.reciprocal(jnp.sum(p, axis=-1, keepdims=True), approx=True)
    ctx = jnp.einsum("gqk,gkd->gqd", p.astype(jnp.bfloat16), v,
                     preferred_element_type=jnp.float32)   # (H*BB, T, dh) f32

    # Scatter heads into the (M, D) scratch at lane offset hd*dh, then ONE (M,D)x(D,D) Wo matmul.
    for hd in range(H):
        ctx_ref[:, hd * dh:(hd + 1) * dh] = ctx[hd * BB:(hd + 1) * BB].reshape(M, dh)
    attn = jnp.dot(ctx_ref[...].astype(jnp.bfloat16), wo_ref[...],
                   preferred_element_type=jnp.float32) + bo_ref[...]
    h1 = _layernorm(attn + h, g1_ref[...], b1_ref[...])     # BertSelfOutput LN (residual)

    # ---- query FFN: intermediate_query (GELU) + output_query (residual LN) ----
    f = jnp.dot(h1.astype(jnp.bfloat16), wi_ref[...],
                preferred_element_type=jnp.float32) + bi_ref[...]
    f = _gelu_tanh(f) if gelu_tanh_approx else _gelu_exact(f)
    f = jnp.dot(f.astype(jnp.bfloat16), wo2_ref[...],
                preferred_element_type=jnp.float32) + bo2_ref[...]
    h2 = _layernorm(f + h1, g2_ref[...], b2_ref[...])
    h_ref[...] = h2

    # ---- last layer step: emit the (lane-dense) bf16 hidden-state tile ----
    @pl.when(l == n_layers - 1)
    def _():
        h_out_ref[...] = h2.astype(h_out_ref.dtype)


# ------------------------------ llm_proj kernel --------------------------------
def llm_proj_kernel(h_ref, w_ref, b_ref, o_ref):
    o_ref[...] = (jnp.dot(h_ref[...], w_ref[...],
                          preferred_element_type=jnp.float32)
                  + b_ref[...]).astype(o_ref.dtype)


# ------------------------------- wrapper ---------------------------------------
def bert_connector_forward(image_features, kp, *, num_heads, batch_block=None,
                           gelu_tanh_approx=False,
                           vmem_limit_bytes=48 * 1024 * 1024):
    B, T, Cv = image_features.shape
    L = kp["wqkv"].shape[0]
    D = kp["wo"].shape[1]
    inter = kp["wi"].shape[2]
    N = kp["pw"].shape[1]
    assert D % num_heads == 0

    # Pick batch_block so M = BB*T is large (>=256 ideally) AND nb is a multiple of 2 on v7x.
    BB = B if batch_block is None else batch_block
    assert B % BB == 0
    nb = B // BB
    M = BB * T
    assert nb == 1 or M % 8 == 0, "batch_block * tokens must be a multiple of 8 when tiling"

    # Reshape outside the kernel (feedback): the kernel only sees clean (M, Cv) tiles.
    x2d = image_features.reshape(B * T, Cv)

    def const_spec(shape):
        nd = len(shape)
        return pl.BlockSpec(shape, lambda b, l: (0,) * nd)

    def layer_spec(shape):
        nd = len(shape)
        return pl.BlockSpec((None,) + tuple(shape[1:]),
                            lambda b, l: (l,) + (0,) * (nd - 1))

    in_specs = [
        pl.BlockSpec((M, Cv), lambda b, l: (b, 0)),             # image features (B*T, Cv)
        const_spec((Cv, D)), const_spec((1, D)),                # visual_proj w, b
        const_spec((1, D)), const_spec((1, D)),                 # embeddings LN g, b
        layer_spec((L, D, 3 * D)), layer_spec((L, 1, 3 * D)),   # fused wqkv, bqkv
        layer_spec((L, D, D)), layer_spec((L, 1, D)),           # wo, bo
        layer_spec((L, 1, D)), layer_spec((L, 1, D)),           # attn-out LN g, b
        layer_spec((L, D, inter)), layer_spec((L, 1, inter)),   # wi, bi
        layer_spec((L, inter, D)), layer_spec((L, 1, D)),       # wo2, bo2
        layer_spec((L, 1, D)), layer_spec((L, 1, D)),           # FFN-out LN g, b
    ]

    # NOTE: grid must stay (batch_tiles, layers) with the layer axis innermost ("arbitrary");
    # the resident h_ref scratch / output-revisit pattern relies on it.
    encoder = pl.pallas_call(
        functools.partial(encoder_kernel, num_heads=num_heads, tokens=T,
                          gelu_tanh_approx=gelu_tanh_approx),
        out_shape=jax.ShapeDtypeStruct((B * T, D), jnp.bfloat16),
        grid=(nb, L),
        in_specs=in_specs,
        out_specs=pl.BlockSpec((M, D), lambda b, l: (b, 0)),
        scratch_shapes=[pltpu.VMEM((M, D), jnp.float32),        # resident activations h
                        pltpu.VMEM((M, D), jnp.float32)],       # per-layer attention context
        compiler_params=pltpu.CompilerParams(
            dimension_semantics=("parallel", "arbitrary"),      # batch tiles parallel (v7x 2 TCs)
            vmem_limit_bytes=vmem_limit_bytes,
        ),
    )
    h = encoder(x2d, kp["vw"], kp["vb"], kp["eg"], kp["eb"],
                kp["wqkv"], kp["bqkv"], kp["wo"], kp["bo"], kp["g1"], kp["b1"],
                kp["wi"], kp["bi"], kp["wo2"], kp["bo2"], kp["g2"], kp["b2"])

    # llm_proj as its own pallas_call: keeps the (D, N) weight and (M, N) f32 output tile
    # out of the layer-loop VMEM budget (v7x feedback).
    proj = pl.pallas_call(
        llm_proj_kernel,
        out_shape=jax.ShapeDtypeStruct((B * T, N), jnp.float32),
        grid=(nb,),
        in_specs=[pl.BlockSpec((M, D), lambda b: (b, 0)),
                  pl.BlockSpec((D, N), lambda b: (0, 0)),
                  pl.BlockSpec((1, N), lambda b: (0, 0))],
        out_specs=pl.BlockSpec((M, N), lambda b: (b, 0)),
        compiler_params=pltpu.CompilerParams(
            dimension_semantics=("parallel",),
            vmem_limit_bytes=vmem_limit_bytes,
        ),
    )
    out = proj(h, kp["pw"], kp["pb"])
    return out.reshape(B, T, N)


# ----------------------- param preparation (glue code) -------------------------
def prepare_kernel_params(params, num_heads):
    """Fuse Wq/Wk/Wv into a single (D, 3D) weight per layer, stack per-layer tensors along a
    leading L axis, and cast matmul weights to bf16 (biases / LN params stay f32)."""
    del num_heads  # head split happens via static lane offsets inside the kernel
    bf = lambda x: x.astype(jnp.bfloat16)
    stk = lambda key: jnp.stack([lp[key] for lp in params["layers"]], axis=0)

    wqkv = jnp.stack([jnp.concatenate([lp["wq"], lp["wk"], lp["wv"]], axis=1)
                      for lp in params["layers"]], axis=0)          # (L, D, 3D)
    bqkv = jnp.stack([jnp.concatenate([lp["bq"], lp["bk"], lp["bv"]], axis=1)
                      for lp in params["layers"]], axis=0)          # (L, 1, 3D)

    return {
        "vw": bf(params["visual_proj"]["w"]), "vb": params["visual_proj"]["b"],
        "eg": params["emb_ln"]["g"], "eb": params["emb_ln"]["b"],
        "wqkv": bf(wqkv), "bqkv": bqkv,
        "wo": bf(stk("wo")), "bo": stk("bo"),
        "g1": stk("g1"), "b1": stk("b1"),
        "wi": bf(stk("wi")), "bi": stk("bi"),
        "wo2": bf(stk("wo2")), "bo2": stk("bo2"),
        "g2": stk("g2"), "b2": stk("b2"),
        "pw": bf(params["llm_proj"]["w"]), "pb": params["llm_proj"]["b"],
    }


# ------------------------- plain-JAX reference (check) -------------------------
def _ref_ln(x, g, b):
    mu = x.mean(-1, keepdims=True)
    var = ((x - mu) ** 2).mean(-1, keepdims=True)
    return (x - mu) / jnp.sqrt(var + LN_EPS) * g + b


def reference_forward(x, params, num_heads):
    h = x @ params["visual_proj"]["w"] + params["visual_proj"]["b"]
    h = _ref_ln(h, params["emb_ln"]["g"], params["emb_ln"]["b"])
    B, T, D = h.shape
    dh = D // num_heads
    for lp in params["layers"]:
        q = (h @ lp["wq"] + lp["bq"]).reshape(B, T, num_heads, dh).transpose(0, 2, 1, 3)
        k = (h @ lp["wk"] + lp["bk"]).reshape(B, T, num_heads, dh).transpose(0, 2, 1, 3)
        v = (h @ lp["wv"] + lp["bv"]).reshape(B, T, num_heads, dh).transpose(0, 2, 1, 3)
        s = jnp.einsum("bhqd,bhkd->bhqk", q, k) / math.sqrt(dh)
        p = jax.nn.softmax(s, axis=-1)
        ctx = jnp.einsum("bhqk,bhkd->bhqd", p, v).transpose(0, 2, 1, 3).reshape(B, T, D)
        h1 = _ref_ln(ctx @ lp["wo"] + lp["bo"] + h, lp["g1"], lp["b1"])
        ffn = jax.nn.gelu(h1 @ lp["wi"] + lp["bi"], approximate=False)
        h = _ref_ln(ffn @ lp["wo2"] + lp["bo2"] + h1, lp["g2"], lp["b2"])
    return h @ params["llm_proj"]["w"] + params["llm_proj"]["b"]


def round_matmul_weights_like_kernel(params):
    """Round ONLY the matmul weights to bf16 (the kernel keeps biases / LN params in f32),
    so the reference matches the kernel's weight storage exactly."""
    def rw(d, keys):
        return {k: (v.astype(jnp.bfloat16).astype(jnp.float32) if k in keys else v)
                for k, v in d.items()}
    return {
        "visual_proj": rw(params["visual_proj"], {"w"}),
        "emb_ln": dict(params["emb_ln"]),
        "llm_proj": rw(params["llm_proj"], {"w"}),
        "layers": [rw(lp, {"wq", "wk", "wv", "wo", "wi", "wo2"}) for lp in params["layers"]],
    }


# ------------------------------ param init ------------------------------------
def init_params(key, vision_width, hidden, num_layers, intermediate, proj_out):
    ks = iter(jax.random.split(key, 6 + 16 * num_layers))
    std = 0.02

    def w(k, fi, fo): return jax.random.normal(k, (fi, fo), jnp.float32) * std
    def b(k, fo): return jax.random.normal(k, (1, fo), jnp.float32) * std
    def g(k, fo): return 1.0 + 0.1 * jax.random.normal(k, (1, fo), jnp.float32)

    params = {
        "visual_proj": {"w": w(next(ks), vision_width, hidden), "b": b(next(ks), hidden)},
        "emb_ln": {"g": g(next(ks), hidden), "b": b(next(ks), hidden)},
        "llm_proj": {"w": w(next(ks), hidden, proj_out), "b": b(next(ks), proj_out)},
        "layers": [],
    }
    for _ in range(num_layers):
        params["layers"].append({
            "wq": w(next(ks), hidden, hidden), "bq": b(next(ks), hidden),
            "wk": w(next(ks), hidden, hidden), "bk": b(next(ks), hidden),
            "wv": w(next(ks), hidden, hidden), "bv": b(next(ks), hidden),
            "wo": w(next(ks), hidden, hidden), "bo": b(next(ks), hidden),
            "g1": g(next(ks), hidden), "b1": b(next(ks), hidden),
            "wi": w(next(ks), hidden, intermediate), "bi": b(next(ks), intermediate),
            "wo2": w(next(ks), intermediate, hidden), "bo2": b(next(ks), hidden),
            "g2": g(next(ks), hidden), "b2": b(next(ks), hidden),
        })
    return params


# ---------------------------------- main ---------------------------------------
if __name__ == "__main__":
    # small synthetic config (module's BertConfig knobs); hidden/proj chosen lane-dense (128),
    # 32 query tokens (Q-Former-style) so M = batch_block * tokens fills MXU sublanes.
    B, T = 4, 32                 # batch, num_tokens
    VISION_WIDTH = 48            # config.vision_width
    HIDDEN = 128                 # bert_hidden_size
    NUM_HEADS = 4                # bert_num_attention_heads (dh = 32)
    INTERMEDIATE = 256           # bert_intermediate_size
    NUM_LAYERS = 2               # bert_num_hidden_layers
    PROJ_OUT = 128               # config.hidden_size_projector

    key = jax.random.PRNGKey(0)
    kx, kw = jax.random.split(key)
    image_features = jax.random.normal(kx, (B, T, VISION_WIDTH), jnp.float32)
    params = init_params(kw, VISION_WIDTH, HIDDEN, NUM_LAYERS, INTERMEDIATE, PROJ_OUT)
    kparams = prepare_kernel_params(params, NUM_HEADS)

    # batch_block = B // 2 -> nb = 2 batch tiles on the "parallel" grid axis (v7x both TCs).
    out = bert_connector_forward(image_features, kparams, num_heads=NUM_HEADS, batch_block=B // 2)
    out = jax.block_until_ready(out)
    assert out.shape == (B, T, PROJ_OUT), out.shape

    # reference uses bf16-rounded matmul weights only (matching kernel storage exactly)
    ref_params = round_matmul_weights_like_kernel(params)
    ref = reference_forward(image_features, ref_params, NUM_HEADS)
    max_err = float(jnp.max(jnp.abs(out - ref)))
    assert jnp.allclose(out, ref, rtol=2e-2, atol=2e-2), max_err

    # TODO(synk): dropout layers are identity in eval mode; pretrained-weight loading
    # (from_pretrained / load_state_dict) is replaced by deterministic random init.
    print("KERNEL_OK")
</pallas_src>

<mosaic_0001>
module attributes {stable_mosaic.version = 11 : i64} {
  func.func @encoder_kernel(%arg0: i32, %arg1: i32, %arg2: memref<64x48xf32, #tpu.memory_space<vmem>>, %arg3: memref<48x128xbf16, #tpu.memory_space<vmem>>, %arg4: memref<1x128xf32, #tpu.memory_space<vmem>>, %arg5: memref<1x128xf32, #tpu.memory_space<vmem>>, %arg6: memref<1x128xf32, #tpu.memory_space<vmem>>, %arg7: memref<1x128x384xbf16, #tpu.memory_space<vmem>>, %arg8: memref<1x1x384xf32, #tpu.memory_space<vmem>>, %arg9: memref<1x128x128xbf16, #tpu.memory_space<vmem>>, %arg10: memref<1x1x128xf32, #tpu.memory_space<vmem>>, %arg11: memref<1x1x128xf32, #tpu.memory_space<vmem>>, %arg12: memref<1x1x128xf32, #tpu.memory_space<vmem>>, %arg13: memref<1x128x256xbf16, #tpu.memory_space<vmem>>, %arg14: memref<1x1x256xf32, #tpu.memory_space<vmem>>, %arg15: memref<1x256x128xbf16, #tpu.memory_space<vmem>>, %arg16: memref<1x1x128xf32, #tpu.memory_space<vmem>>, %arg17: memref<1x1x128xf32, #tpu.memory_space<vmem>>, %arg18: memref<1x1x128xf32, #tpu.memory_space<vmem>>, %arg19: memref<64x128xbf16, #tpu.memory_space<vmem>>, %arg20: memref<64x128xf32, #tpu.memory_space<vmem>>, %arg21: memref<64x128xf32, #tpu.memory_space<vmem>>) attributes {dimension_semantics = [#tpu.dimension_semantics<parallel>, #tpu.dimension_semantics<arbitrary>], iteration_bounds = array<i64: 2, 2>, scalar_prefetch = 0 : i64, scratch_operands = 2 : i64, tpu.core_type = #tpu.core_type<tc>, window_params = [{transform_indices = @transform_0, window_bounds = array<i64: 64, 48>}, {pipeline_mode = #tpu.pipeline_mode<synchronous>, transform_indices = @transform_1, window_bounds = array<i64: 48, 128>}, {pipeline_mode = #tpu.pipeline_mode<synchronous>, transform_indices = @transform_2, window_bounds = array<i64: 1, 128>}, {pipeline_mode = #tpu.pipeline_mode<synchronous>, transform_indices = @transform_3, window_bounds = array<i64: 1, 128>}, {pipeline_mode = #tpu.pipeline_mode<synchronous>, transform_indices = @transform_4, window_bounds = array<i64: 1, 128>}, {transform_indices = @transform_5, window_bounds = array<i64: 1, 128, 384>}, {transform_indices = @transform_6, window_bounds = array<i64: 1, 1, 384>}, {transform_indices = @transform_7, window_bounds = array<i64: 1, 128, 128>}, {transform_indices = @transform_8, window_bounds = array<i64: 1, 1, 128>}, {transform_indices = @transform_9, window_bounds = array<i64: 1, 1, 128>}, {transform_indices = @transform_10, window_bounds = array<i64: 1, 1, 128>}, {transform_indices = @transform_11, window_bounds = array<i64: 1, 128, 256>}, {transform_indices = @transform_12, window_bounds = array<i64: 1, 1, 256>}, {transform_indices = @transform_13, window_bounds = array<i64: 1, 256, 128>}, {transform_indices = @transform_14, window_bounds = array<i64: 1, 1, 128>}, {transform_indices = @transform_15, window_bounds = array<i64: 1, 1, 128>}, {transform_indices = @transform_16, window_bounds = array<i64: 1, 1, 128>}, {transform_indices = @transform_17, window_bounds = array<i64: 64, 128>}]} {
    %c0_i32 = arith.constant 0 : i32
    %0 = arith.cmpi eq, %arg1, %c0_i32 : i32
    %1 = arith.extui %0 : i1 to i32
    %c0_i32_0 = arith.constant 0 : i32
    %2 = arith.cmpi ne, %1, %c0_i32_0 : i32
    scf.if %2 {
      %c0_69 = arith.constant 0 : index
      %c0_70 = arith.constant 0 : index
      %169 = vector.load %arg2[%c0_69, %c0_70] : memref<64x48xf32, #tpu.memory_space<vmem>>, vector<64x48xf32>
      %170 = arith.truncf %169 : vector<64x48xf32> to vector<64x48xbf16>
      %c0_71 = arith.constant 0 : index
      %c0_72 = arith.constant 0 : index
      %171 = vector.load %arg3[%c0_71, %c0_72] : memref<48x128xbf16, #tpu.memory_space<vmem>>, vector<48x128xbf16>
      %cst_73 = arith.constant dense<0.000000e+00> : vector<64x128xf32>
      %172 = tpu.matmul %170, %171, %cst_73 {dimension_numbers = #tpu.dot_dimension_numbers<[1], [0], [0], [1], [0, 0, 1, 1], [], []>} : vector<64x48xbf16>, vector<48x128xbf16>, vector<64x128xf32> -> vector<64x128xf32>
      %c0_74 = arith.constant 0 : index
      %c0_75 = arith.constant 0 : index
      %173 = vector.load %arg4[%c0_74, %c0_75] : memref<1x128xf32, #tpu.memory_space<vmem>>, vector<1x128xf32>
      %174 = vector.broadcast %173 : vector<1x128xf32> to vector<64x128xf32>
      %175 = arith.addf %172, %174 : vector<64x128xf32>
      %c0_76 = arith.constant 0 : index
      %c0_77 = arith.constant 0 : index
      %176 = vector.load %arg5[%c0_76, %c0_77] : memref<1x128xf32, #tpu.memory_space<vmem>>, vector<1x128xf32>
      %c0_78 = arith.constant 0 : index
      %c0_79 = arith.constant 0 : index
      %177 = vector.load %arg6[%c0_78, %c0_79] : memref<1x128xf32, #tpu.memory_space<vmem>>, vector<1x128xf32>
      %cst_80 = arith.constant dense<0.000000e+00> : vector<64xf32>
      %178 = vector.multi_reduction <add>, %175, %cst_80 [1] : vector<64x128xf32> to vector<64xf32>
      %179 = vector.shape_cast %178 : vector<64xf32> to vector<64x1xf32>
      %cst_81 = arith.constant 1.280000e+02 : f32
      %180 = vector.broadcast %cst_81 : f32 to vector<64x1xf32>
      %181 = arith.divf %179, %180 : vector<64x1xf32>
      %182 = vector.broadcast %181 : vector<64x1xf32> to vector<64x128xf32>
      %183 = arith.subf %175, %182 : vector<64x128xf32>
      %184 = arith.mulf %183, %183 : vector<64x128xf32>
      %cst_82 = arith.constant dense<0.000000e+00> : vector<64xf32>
      %185 = vector.multi_reduction <add>, %184, %cst_82 [1] : vector<64x128xf32> to vector<64xf32>
      %186 = vector.shape_cast %185 : vector<64xf32> to vector<64x1xf32>
      %cst_83 = arith.constant 1.280000e+02 : f32
      %187 = vector.broadcast %cst_83 : f32 to vector<64x1xf32>
      %188 = arith.divf %186, %187 : vector<64x1xf32>
      %189 = vector.broadcast %181 : vector<64x1xf32> to vector<64x128xf32>
      %190 = arith.subf %175, %189 : vector<64x128xf32>
      %cst_84 = arith.constant 9.99999996E-13 : f32
      %191 = vector.broadcast %cst_84 : f32 to vector<64x1xf32>
      %192 = arith.addf %188, %191 : vector<64x1xf32>
      %193 = math.rsqrt %192 : vector<64x1xf32>
      %194 = vector.broadcast %193 : vector<64x1xf32> to vector<64x128xf32>
      %195 = arith.mulf %190, %194 : vector<64x128xf32>
      %196 = vector.broadcast %176 : vector<1x128xf32> to vector<64x128xf32>
      %197 = arith.mulf %195, %196 : vector<64x128xf32>
      %198 = vector.broadcast %177 : vector<1x128xf32> to vector<64x128xf32>
      %199 = arith.addf %197, %198 : vector<64x128xf32>
      %c0_85 = arith.constant 0 : index
      %c0_86 = arith.constant 0 : index
      %200 = vector.load %arg20[%c0_85, %c0_86] : memref<64x128xf32, #tpu.memory_space<vmem>>, vector<64x128xf32>
      tpu.vector_store %arg20[%c0_85, %c0_86], %199 {strides = array<i32>} : memref<64x128xf32, #tpu.memory_space<vmem>>, vector<64x128xf32>,
    } else {
    }
    %c0 = arith.constant 0 : index
    %c0_1 = arith.constant 0 : index
    %3 = vector.load %arg20[%c0, %c0_1] : memref<64x128xf32, #tpu.memory_space<vmem>>, vector<64x128xf32>
    %4 = arith.truncf %3 : vector<64x128xf32> to vector<64x128xbf16>
    %c0_2 = arith.constant 0 : index
    %c0_3 = arith.constant 0 : index
    %c0_4 = arith.constant 0 : index
    %5 = vector.load %arg7[%c0_2, %c0_3, %c0_4] : memref<1x128x384xbf16, #tpu.memory_space<vmem>>, vector<1x128x384xbf16>
    %6 = vector.shape_cast %5 : vector<1x128x384xbf16> to vector<128x384xbf16>
    %cst = arith.constant dense<0.000000e+00> : vector<64x384xf32>
    %7 = tpu.matmul %4, %6, %cst {dimension_numbers = #tpu.dot_dimension_numbers<[1], [0], [0], [1], [0, 0, 1, 1], [], []>} : vector<64x128xbf16>, vector<128x384xbf16>, vector<64x384xf32> -> vector<64x384xf32>
    %c0_5 = arith.constant 0 : index
    %c0_6 = arith.constant 0 : index
    %c0_7 = arith.constant 0 : index
    %8 = vector.load %arg8[%c0_5, %c0_6, %c0_7] : memref<1x1x384xf32, #tpu.memory_space<vmem>>, vector<1x1x384xf32>
    %9 = vector.shape_cast %8 : vector<1x1x384xf32> to vector<1x384xf32>
    %10 = vector.broadcast %9 : vector<1x384xf32> to vector<64x384xf32>
    %11 = arith.addf %7, %10 : vector<64x384xf32>
    %12 = vector.extract_strided_slice %11 {offsets = [0, 0], sizes = [64, 32], strides = [1, 1]} : vector<64x384xf32> to vector<64x32xf32>
    %13 = vector.shape_cast %12 : vector<64x32xf32> to vector<2x32x32xf32>
    %14 = arith.truncf %13 : vector<2x32x32xf32> to vector<2x32x32xbf16>
    %15 = vector.extract_strided_slice %11 {offsets = [0, 128], sizes = [64, 32], strides = [1, 1]} : vector<64x384xf32> to vector<64x32xf32>
    %16 = vector.shape_cast %15 : vector<64x32xf32> to vector<2x32x32xf32>
    %17 = arith.truncf %16 : vector<2x32x32xf32> to vector<2x32x32xbf16>
    %18 = vector.extract_strided_slice %11 {offsets = [0, 256], sizes = [64, 32], strides = [1, 1]} : vector<64x384xf32> to vector<64x32xf32>
    %19 = vector.shape_cast %18 : vector<64x32xf32> to vector<2x32x32xf32>
    %20 = arith.truncf %19 : vector<2x32x32xf32> to vector<2x32x32xbf16>
    %21 = vector.extract_strided_slice %11 {offsets = [0, 32], sizes = [64, 32], strides = [1, 1]} : vector<64x384xf32> to vector<64x32xf32>
    %22 = vector.shape_cast %21 : vector<64x32xf32> to vector<2x32x32xf32>
    %23 = arith.truncf %22 : vector<2x32x32xf32> to vector<2x32x32xbf16>
    %24 = vector.extract_strided_slice %11 {offsets = [0, 160], sizes = [64, 32], strides = [1, 1]} : vector<64x384xf32> to vector<64x32xf32>
    %25 = vector.shape_cast %24 : vector<64x32xf32> to vector<2x32x32xf32>
    %26 = arith.truncf %25 : vector<2x32x32xf32> to vector<2x32x32xbf16>
    %27 = vector.extract_strided_slice %11 {offsets = [0, 288], sizes = [64, 32], strides = [1, 1]} : vector<64x384xf32> to vector<64x32xf32>
    %28 = vector.shape_cast %27 : vector<64x32xf32> to vector<2x32x32xf32>
    %29 = arith.truncf %28 : vector<2x32x32xf32> to vector<2x32x32xbf16>
    %30 = vector.extract_strided_slice %11 {offsets = [0, 64], sizes = [64, 32], strides = [1, 1]} : vector<64x384xf32> to vector<64x32xf32>
    %31 = vector.shape_cast %30 : vector<64x32xf32> to vector<2x32x32xf32>
    %32 = arith.truncf %31 : vector<2x32x32xf32> to vector<2x32x32xbf16>
    %33 = vector.extract_strided_slice %11 {offsets = [0, 192], sizes = [64, 32], strides = [1, 1]} : vector<64x384xf32> to vector<64x32xf32>
    %34 = vector.shape_cast %33 : vector<64x32xf32> to vector<2x32x32xf32>
    %35 = arith.truncf %34 : vector<2x32x32xf32> to vector<2x32x32xbf16>
    %36 = vector.extract_strided_slice %11 {offsets = [0, 320], sizes = [64, 32], strides = [1, 1]} : vector<64x384xf32> to vector<64x32xf32>
    %37 = vector.shape_cast %36 : vector<64x32xf32> to vector<2x32x32xf32>
    %38 = arith.truncf %37 : vector<2x32x32xf32> to vector<2x32x32xbf16>
    %39 = vector.extract_strided_slice %11 {offsets = [0, 96], sizes = [64, 32], strides = [1, 1]} : vector<64x384xf32> to vector<64x32xf32>
    %40 = vector.shape_cast %39 : vector<64x32xf32> to vector<2x32x32xf32>
    %41 = arith.truncf %40 : vector<2x32x32xf32> to vector<2x32x32xbf16>
    %42 = vector.extract_strided_slice %11 {offsets = [0, 224], sizes = [64, 32], strides = [1, 1]} : vector<64x384xf32> to vector<64x32xf32>
    %43 = vector.shape_cast %42 : vector<64x32xf32> to vector<2x32x32xf32>
    %44 = arith.truncf %43 : vector<2x32x32xf32> to vector<2x32x32xbf16>
    %45 = vector.extract_strided_slice %11 {offsets = [0, 352], sizes = [64, 32], strides = [1, 1]} : vector<64x384xf32> to vector<64x32xf32>
    %46 = vector.shape_cast %45 : vector<64x32xf32> to vector<2x32x32xf32>
    %47 = arith.truncf %46 : vector<2x32x32xf32> to vector<2x32x32xbf16>
    %48 = tpu.concatenate %14, %23, %32, %41 in 0 : vector<2x32x32xbf16>, vector<2x32x32xbf16>, vector<2x32x32xbf16>, vector<2x32x32xbf16> -> vector<8x32x32xbf16>
    %49 = tpu.concatenate %17, %26, %35, %44 in 0 : vector<2x32x32xbf16>, vector<2x32x32xbf16>, vector<2x32x32xbf16>, vector<2x32x32xbf16> -> vector<8x32x32xbf16>
    %50 = tpu.concatenate %20, %29, %38, %47 in 0 : vector<2x32x32xbf16>, vector<2x32x32xbf16>, vector<2x32x32xbf16>, vector<2x32x32xbf16> -> vector<8x32x32xbf16>
    "tpu.trace_start"() <{level = 10 : i32, message = "gqd,gkd->gqk"}> : () -> ()
    %cst_8 = arith.constant dense<0.000000e+00> : vector<8x32x32xf32>
    %51 = tpu.matmul %48, %49, %cst_8 {dimension_numbers = #tpu.dot_dimension_numbers<[2], [2], [1], [1], [0, 0, 0, 1, 1, 1], [0], [0]>} : vector<8x32x32xbf16>, vector<8x32x32xbf16>, vector<8x32x32xf32> -> vector<8x32x32xf32>
    "tpu.trace_stop"() : () -> ()
    %cst_9 = arith.constant 0.176776692 : f32
    %52 = vector.broadcast %cst_9 : f32 to vector<8x32x32xf32>
    %53 = arith.mulf %51, %52 : vector<8x32x32xf32>
    %cst_10 = arith.constant dense<0xFF800000> : vector<8x32xf32>
    %54 = vector.multi_reduction <maximumf>, %53, %cst_10 [2] : vector<8x32x32xf32> to vector<8x32xf32>
    %55 = vector.shape_cast %54 : vector<8x32xf32> to vector<8x32x1xf32>
    %56 = vector.broadcast %55 : vector<8x32x1xf32> to vector<8x32x32xf32>
    %57 = arith.subf %53, %56 : vector<8x32x32xf32>
    %58 = math.exp %57 : vector<8x32x32xf32>
    %cst_11 = arith.constant dense<0.000000e+00> : vector<8x32xf32>
    %59 = vector.multi_reduction <add>, %58, %cst_11 [2] : vector<8x32x32xf32> to vector<8x32xf32>
    %60 = vector.shape_cast %59 : vector<8x32xf32> to vector<8x32x1xf32>
    %61 = tpu.reciprocal %60 {approx = true} : vector<8x32x1xf32> -> vector<8x32x1xf32>
    %62 = vector.broadcast %61 : vector<8x32x1xf32> to vector<8x32x32xf32>
    %63 = arith.mulf %58, %62 : vector<8x32x32xf32>
    %64 = arith.truncf %63 : vector<8x32x32xf32> to vector<8x32x32xbf16>
    "tpu.trace_start"() <{level = 10 : i32, message = "gqk,gkd->gqd"}> : () -> ()
    %cst_12 = arith.constant dense<0.000000e+00> : vector<8x32x32xf32>
    %65 = tpu.matmul %64, %50, %cst_12 {dimension_numbers = #tpu.dot_dimension_numbers<[2], [1], [1], [2], [0, 0, 0, 1, 1, 2], [0], [0]>} : vector<8x32x32xbf16>, vector<8x32x32xbf16>, vector<8x32x32xf32> -> vector<8x32x32xf32>
    "tpu.trace_stop"() : () -> ()
    %66 = vector.extract_strided_slice %65 {offsets = [0, 0, 0], sizes = [2, 32, 32], strides = [1, 1, 1]} : vector<8x32x32xf32> to vector<2x32x32xf32>
    %67 = vector.shape_cast %66 : vector<2x32x32xf32> to vector<64x32xf32>
    %c0_13 = arith.constant 0 : index
    %c0_14 = arith.constant 0 : index
    %68 = vector.load %arg21[%c0_13, %c0_14] : memref<64x128xf32, #tpu.memory_space<vmem>>, vector<64x32xf32>
    tpu.vector_store %arg21[%c0_13, %c0_14], %67 {strides = array<i32>} : memref<64x128xf32, #tpu.memory_space<vmem>>, vector<64x32xf32>,
    %69 = vector.extract_strided_slice %65 {offsets = [2, 0, 0], sizes = [2, 32, 32], strides = [1, 1, 1]} : vector<8x32x32xf32> to vector<2x32x32xf32>
    %70 = vector.shape_cast %69 : vector<2x32x32xf32> to vector<64x32xf32>
    %c0_15 = arith.constant 0 : index
    %c32 = arith.constant 32 : index
    %71 = vector.load %arg21[%c0_15, %c32] : memref<64x128xf32, #tpu.memory_space<vmem>>, vector<64x32xf32>
    tpu.vector_store %arg21[%c0_15, %c32], %70 {strides = array<i32>} : memref<64x128xf32, #tpu.memory_space<vmem>>, vector<64x32xf32>,
    %72 = vector.extract_strided_slice %65 {offsets = [4, 0, 0], sizes = [2, 32, 32], strides = [1, 1, 1]} : vector<8x32x32xf32> to vector<2x32x32xf32>
    %73 = vector.shape_cast %72 : vector<2x32x32xf32> to vector<64x32xf32>
    %c0_16 = arith.constant 0 : index
    %c64 = arith.constant 64 : index
    %74 = vector.load %arg21[%c0_16, %c64] : memref<64x128xf32, #tpu.memory_space<vmem>>, vector<64x32xf32>
    tpu.vector_store %arg21[%c0_16, %c64], %73 {strides = array<i32>} : memref<64x128xf32, #tpu.memory_space<vmem>>, vector<64x32xf32>,
    %75 = vector.extract_strided_slice %65 {offsets = [6, 0, 0], sizes = [2, 32, 32], strides = [1, 1, 1]} : vector<8x32x32xf32> to vector<2x32x32xf32>
    %76 = vector.shape_cast %75 : vector<2x32x32xf32> to vector<64x32xf32>
    %c0_17 = arith.constant 0 : index
    %c96 = arith.constant 96 : index
    %77 = vector.load %arg21[%c0_17, %c96] : memref<64x128xf32, #tpu.memory_space<vmem>>, vector<64x32xf32>
    tpu.vector_store %arg21[%c0_17, %c96], %76 {strides = array<i32>} : memref<64x128xf32, #tpu.memory_space<vmem>>, vector<64x32xf32>,
    %c0_18 = arith.constant 0 : index
    %c0_19 = arith.constant 0 : index
    %78 = vector.load %arg21[%c0_18, %c0_19] : memref<64x128xf32, #tpu.memory_space<vmem>>, vector<64x128xf32>
    %79 = arith.truncf %78 : vector<64x128xf32> to vector<64x128xbf16>
    %c0_20 = arith.constant 0 : index
    %c0_21 = arith.constant 0 : index
    %c0_22 = arith.constant 0 : index
    %80 = vector.load %arg9[%c0_20, %c0_21, %c0_22] : memref<1x128x128xbf16, #tpu.memory_space<vmem>>, vector<1x128x128xbf16>
    %81 = vector.shape_cast %80 : vector<1x128x128xbf16> to vector<128x128xbf16>
    %cst_23 = arith.constant dense<0.000000e+00> : vector<64x128xf32>
    %82 = tpu.matmul %79, %81, %cst_23 {dimension_numbers = #tpu.dot_dimension_numbers<[1], [0], [0], [1], [0, 0, 1, 1], [], []>} : vector<64x128xbf16>, vector<128x128xbf16>, vector<64x128xf32> -> vector<64x128xf32>
    %c0_24 = arith.constant 0 : index
    %c0_25 = arith.constant 0 : index
    %c0_26 = arith.constant 0 : index
    %83 = vector.load %arg10[%c0_24, %c0_25, %c0_26] : memref<1x1x128xf32, #tpu.memory_space<vmem>>, vector<1x1x128xf32>
    %84 = vector.shape_cast %83 : vector<1x1x128xf32> to vector<1x128xf32>
    %85 = vector.broadcast %84 : vector<1x128xf32> to vector<64x128xf32>
    %86 = arith.addf %82, %85 : vector<64x128xf32>
    %87 = arith.addf %86, %3 : vector<64x128xf32>
    %c0_27 = arith.constant 0 : index
    %c0_28 = arith.constant 0 : index
    %c0_29 = arith.constant 0 : index
    %88 = vector.load %arg11[%c0_27, %c0_28, %c0_29] : memref<1x1x128xf32, #tpu.memory_space<vmem>>, vector<1x1x128xf32>
    %89 = vector.shape_cast %88 : vector<1x1x128xf32> to vector<1x128xf32>
    %c0_30 = arith.constant 0 : index
    %c0_31 = arith.constant 0 : index
    %c0_32 = arith.constant 0 : index
    %90 = vector.load %arg12[%c0_30, %c0_31, %c0_32] : memref<1x1x128xf32, #tpu.memory_space<vmem>>, vector<1x1x128xf32>
    %91 = vector.shape_cast %90 : vector<1x1x128xf32> to vector<1x128xf32>
    %cst_33 = arith.constant dense<0.000000e+00> : vector<64xf32>
    %92 = vector.multi_reduction <add>, %87, %cst_33 [1] : vector<64x128xf32> to vector<64xf32>
    %93 = vector.shape_cast %92 : vector<64xf32> to vector<64x1xf32>
    %cst_34 = arith.constant 1.280000e+02 : f32
    %94 = vector.broadcast %cst_34 : f32 to vector<64x1xf32>
    %95 = arith.divf %93, %94 : vector<64x1xf32>
    %96 = vector.broadcast %95 : vector<64x1xf32> to vector<64x128xf32>
    %97 = arith.subf %87, %96 : vector<64x128xf32>
    %98 = arith.mulf %97, %97 : vector<64x128xf32>
    %cst_35 = arith.constant dense<0.000000e+00> : vector<64xf32>
    %99 = vector.multi_reduction <add>, %98, %cst_35 [1] : vector<64x128xf32> to vector<64xf32>
    %100 = vector.shape_cast %99 : vector<64xf32> to vector<64x1xf32>
    %cst_36 = arith.constant 1.280000e+02 : f32
    %101 = vector.broadcast %cst_36 : f32 to vector<64x1xf32>
    %102 = arith.divf %100, %101 : vector<64x1xf32>
    %103 = vector.broadcast %95 : vector<64x1xf32> to vector<64x128xf32>
    %104 = arith.subf %87, %103 : vector<64x128xf32>
    %cst_37 = arith.constant 9.99999996E-13 : f32
    %105 = vector.broadcast %cst_37 : f32 to vector<64x1xf32>
    %106 = arith.addf %102, %105 : vector<64x1xf32>
    %107 = math.rsqrt %106 : vector<64x1xf32>
    %108 = vector.broadcast %107 : vector<64x1xf32> to vector<64x128xf32>
    %109 = arith.mulf %104, %108 : vector<64x128xf32>
    %110 = vector.broadcast %89 : vector<1x128xf32> to vector<64x128xf32>
    %111 = arith.mulf %109, %110 : vector<64x128xf32>
    %112 = vector.broadcast %91 : vector<1x128xf32> to vector<64x128xf32>
    %113 = arith.addf %111, %112 : vector<64x128xf32>
    %114 = arith.truncf %113 : vector<64x128xf32> to vector<64x128xbf16>
    %c0_38 = arith.constant 0 : index
    %c0_39 = arith.constant 0 : index
    %c0_40 = arith.constant 0 : index
    %115 = vector.load %arg13[%c0_38, %c0_39, %c0_40] : memref<1x128x256xbf16, #tpu.memory_space<vmem>>, vector<1x128x256xbf16>
    %116 = vector.shape_cast %115 : vector<1x128x256xbf16> to vector<128x256xbf16>
    %cst_41 = arith.constant dense<0.000000e+00> : vector<64x256xf32>
    %117 = tpu.matmul %114, %116, %cst_41 {dimension_numbers = #tpu.dot_dimension_numbers<[1], [0], [0], [1], [0, 0, 1, 1], [], []>} : vector<64x128xbf16>, vector<128x256xbf16>, vector<64x256xf32> -> vector<64x256xf32>
    %c0_42 = arith.constant 0 : index
    %c0_43 = arith.constant 0 : index
    %c0_44 = arith.constant 0 : index
    %118 = vector.load %arg14[%c0_42, %c0_43, %c0_44] : memref<1x1x256xf32, #tpu.memory_space<vmem>>, vector<1x1x256xf32>
    %119 = vector.shape_cast %118 : vector<1x1x256xf32> to vector<1x256xf32>
    %120 = vector.broadcast %119 : vector<1x256xf32> to vector<64x256xf32>
    %121 = arith.addf %117, %120 : vector<64x256xf32>
    %cst_45 = arith.constant 5.000000e-01 : f32
    %122 = vector.broadcast %cst_45 : f32 to vector<64x256xf32>
    %123 = arith.mulf %122, %121 : vector<64x256xf32>
    %cst_46 = arith.constant 0.707106769 : f32
    %124 = vector.broadcast %cst_46 : f32 to vector<64x256xf32>
    %125 = arith.mulf %121, %124 : vector<64x256xf32>
    %126 = math.erf %125 : vector<64x256xf32>
    %cst_47 = arith.constant 1.000000e+00 : f32
    %127 = vector.broadcast %cst_47 : f32 to vector<64x256xf32>
    %128 = arith.addf %127, %126 : vector<64x256xf32>
    %129 = arith.mulf %123, %128 : vector<64x256xf32>
    %130 = arith.truncf %129 : vector<64x256xf32> to vector<64x256xbf16>
    %c0_48 = arith.constant 0 : index
    %c0_49 = arith.constant 0 : index
    %c0_50 = arith.constant 0 : index
    %131 = vector.load %arg15[%c0_48, %c0_49, %c0_50] : memref<1x256x128xbf16, #tpu.memory_space<vmem>>, vector<1x256x128xbf16>
    %132 = vector.shape_cast %131 : vector<1x256x128xbf16> to vector<256x128xbf16>
    %cst_51 = arith.constant dense<0.000000e+00> : vector<64x128xf32>
    %133 = tpu.matmul %130, %132, %cst_51 {dimension_numbers = #tpu.dot_dimension_numbers<[1], [0], [0], [1], [0, 0, 1, 1], [], []>} : vector<64x256xbf16>, vector<256x128xbf16>, vector<64x128xf32> -> vector<64x128xf32>
    %c0_52 = arith.constant 0 : index
    %c0_53 = arith.constant 0 : index
    %c0_54 = arith.constant 0 : index
    %134 = vector.load %arg16[%c0_52, %c0_53, %c0_54] : memref<1x1x128xf32, #tpu.memory_space<vmem>>, vector<1x1x128xf32>
    %135 = vector.shape_cast %134 : vector<1x1x128xf32> to vector<1x128xf32>
    %136 = vector.broadcast %135 : vector<1x128xf32> to vector<64x128xf32>
    %137 = arith.addf %133, %136 : vector<64x128xf32>
    %138 = arith.addf %137, %113 : vector<64x128xf32>
    %c0_55 = arith.constant 0 : index
    %c0_56 = arith.constant 0 : index
    %c0_57 = arith.constant 0 : index
    %139 = vector.load %arg17[%c0_55, %c0_56, %c0_57] : memref<1x1x128xf32, #tpu.memory_space<vmem>>, vector<1x1x128xf32>
    %140 = vector.shape_cast %139 : vector<1x1x128xf32> to vector<1x128xf32>
    %c0_58 = arith.constant 0 : index
    %c0_59 = arith.constant 0 : index
    %c0_60 = arith.constant 0 : index
    %141 = vector.load %arg18[%c0_58, %c0_59, %c0_60] : memref<1x1x128xf32, #tpu.memory_space<vmem>>, vector<1x1x128xf32>
    %142 = vector.shape_cast %141 : vector<1x1x128xf32> to vector<1x128xf32>
    %cst_61 = arith.constant dense<0.000000e+00> : vector<64xf32>
    %143 = vector.multi_reduction <add>, %138, %cst_61 [1] : vector<64x128xf32> to vector<64xf32>
    %144 = vector.shape_cast %143 : vector<64xf32> to vector<64x1xf32>
    %cst_62 = arith.constant 1.280000e+02 : f32
    %145 = vector.broadcast %cst_62 : f32 to vector<64x1xf32>
    %146 = arith.divf %144, %145 : vector<64x1xf32>
    %147 = vector.broadcast %146 : vector<64x1xf32> to vector<64x128xf32>
    %148 = arith.subf %138, %147 : vector<64x128xf32>
    %149 = arith.mulf %148, %148 : vector<64x128xf32>
    %cst_63 = arith.constant dense<0.000000e+00> : vector<64xf32>
    %150 = vector.multi_reduction <add>, %149, %cst_63 [1] : vector<64x128xf32> to vector<64xf32>
    %151 = vector.shape_cast %150 : vector<64xf32> to vector<64x1xf32>
    %cst_64 = arith.constant 1.280000e+02 : f32
    %152 = vector.broadcast %cst_64 : f32 to vector<64x1xf32>
    %153 = arith.divf %151, %152 : vector<64x1xf32>
    %154 = vector.broadcast %146 : vector<64x1xf32> to vector<64x128xf32>
    %155 = arith.subf %138, %154 : vector<64x128xf32>
    %cst_65 = arith.constant 9.99999996E-13 : f32
    %156 = vector.broadcast %cst_65 : f32 to vector<64x1xf32>
    %157 = arith.addf %153, %156 : vector<64x1xf32>
    %158 = math.rsqrt %157 : vector<64x1xf32>
    %159 = vector.broadcast %158 : vector<64x1xf32> to vector<64x128xf32>
    %160 = arith.mulf %155, %159 : vector<64x128xf32>
    %161 = vector.broadcast %140 : vector<1x128xf32> to vector<64x128xf32>
    %162 = arith.mulf %160, %161 : vector<64x128xf32>
    %163 = vector.broadcast %142 : vector<1x128xf32> to vector<64x128xf32>
    %164 = arith.addf %162, %163 : vector<64x128xf32>
    %c0_66 = arith.constant 0 : index
    %c0_67 = arith.constant 0 : index
    %165 = vector.load %arg20[%c0_66, %c0_67] : memref<64x128xf32, #tpu.memory_space<vmem>>, vector<64x128xf32>
    tpu.vector_store %arg20[%c0_66, %c0_67], %164 {strides = array<i32>} : memref<64x128xf32, #tpu.memory_space<vmem>>, vector<64x128xf32>,
    %c1_i32 = arith.constant 1 : i32
    %166 = arith.cmpi eq, %arg1, %c1_i32 : i32
    %167 = arith.extui %166 : i1 to i32
    %c0_i32_68 = arith.constant 0 : i32
    %168 = arith.cmpi ne, %167, %c0_i32_68 : i32
    scf.if %168 {
      %169 = arith.truncf %164 : vector<64x128xf32> to vector<64x128xbf16>
      %c0_69 = arith.constant 0 : index
      %c0_70 = arith.constant 0 : index
      %170 = vector.load %arg19[%c0_69, %c0_70] : memref<64x128xbf16, #tpu.memory_space<vmem>>, vector<64x128xbf16>
      tpu.vector_store %arg19[%c0_69, %c0_70], %169 {strides = array<i32>} : memref<64x128xbf16, #tpu.memory_space<vmem>>, vector<64x128xbf16>,
    } else {
    }
    return
  }
  func.func @transform_0(%arg0: i32, %arg1: i32) -> (i32, i32) {
    %c0_i32 = arith.constant 0 : i32
    %c0_i32_0 = arith.constant 0 : i32
    return %arg0, %c0_i32 : i32, i32
  }
  func.func @transform_1(%arg0: i32, %arg1: i32) -> (i32, i32) {
    %c0_i32 = arith.constant 0 : i32
    %c0_i32_0 = arith.constant 0 : i32
    %c0_i32_1 = arith.constant 0 : i32
    return %c0_i32, %c0_i32_0 : i32, i32
  }
  func.func @transform_2(%arg0: i32, %arg1: i32) -> (i32, i32) {
    %c0_i32 = arith.constant 0 : i32
    %c0_i32_0 = arith.constant 0 : i32
    %c0_i32_1 = arith.constant 0 : i32
    return %c0_i32, %c0_i32_0 : i32, i32
  }
  func.func @transform_3(%arg0: i32, %arg1: i32) -> (i32, i32) {
    %c0_i32 = arith.constant 0 : i32
    %c0_i32_0 = arith.constant 0 : i32
    %c0_i32_1 = arith.constant 0 : i32
    return %c0_i32, %c0_i32_0 : i32, i32
  }
  func.func @transform_4(%arg0: i32, %arg1: i32) -> (i32, i32) {
    %c0_i32 = arith.constant 0 : i32
    %c0_i32_0 = arith.constant 0 : i32
    %c0_i32_1 = arith.constant 0 : i32
    return %c0_i32, %c0_i32_0 : i32, i32
  }
  func.func @transform_5(%arg0: i32, %arg1: i32) -> (i32, i32, i32) {
    %c0_i32 = arith.constant 0 : i32
    %c0_i32_0 = arith.constant 0 : i32
    %c0_i32_1 = arith.constant 0 : i32
    return %arg1, %c0_i32, %c0_i32_0 : i32, i32, i32
  }
  func.func @transform_6(%arg0: i32, %arg1: i32) -> (i32, i32, i32) {
    %c0_i32 = arith.constant 0 : i32
    %c0_i32_0 = arith.constant 0 : i32
    %c0_i32_1 = arith.constant 0 : i32
    return %arg1, %c0_i32, %c0_i32_0 : i32, i32, i32
  }
  func.func @transform_7(%arg0: i32, %arg1: i32) -> (i32, i32, i32) {
    %c0_i32 = arith.constant 0 : i32
    %c0_i32_0 = arith.constant 0 : i32
    %c0_i32_1 = arith.constant 0 : i32
    return %arg1, %c0_i32, %c0_i32_0 : i32, i32, i32
  }
  func.func @transform_8(%arg0: i32, %arg1: i32) -> (i32, i32, i32) {
    %c0_i32 = arith.constant 0 : i32
    %c0_i32_0 = arith.constant 0 : i32
    %c0_i32_1 = arith.constant 0 : i32
    return %arg1, %c0_i32, %c0_i32_0 : i32, i32, i32
  }
  func.func @transform_9(%arg0: i32, %arg1: i32) -> (i32, i32, i32) {
    %c0_i32 = arith.constant 0 : i32
    %c0_i32_0 = arith.constant 0 : i32
    %c0_i32_1 = arith.constant 0 : i32
    return %arg1, %c0_i32, %c0_i32_0 : i32, i32, i32
  }
  func.func @transform_10(%arg0: i32, %arg1: i32) -> (i32, i32, i32) {
    %c0_i32 = arith.constant 0 : i32
    %c0_i32_0 = arith.constant 0 : i32
    %c0_i32_1 = arith.constant 0 : i32
    return %arg1, %c0_i32, %c0_i32_0 : i32, i32, i32
  }
  func.func @transform_11(%arg0: i32, %arg1: i32) -> (i32, i32, i32) {
    %c0_i32 = arith.constant 0 : i32
    %c0_i32_0 = arith.constant 0 : i32
    %c0_i32_1 = arith.constant 0 : i32
    return %arg1, %c0_i32, %c0_i32_0 : i32, i32, i32
  }
  func.func @transform_12(%arg0: i32, %arg1: i32) -> (i32, i32, i32) {
    %c0_i32 = arith.constant 0 : i32
    %c0_i32_0 = arith.constant 0 : i32
    %c0_i32_1 = arith.constant 0 : i32
    return %arg1, %c0_i32, %c0_i32_0 : i32, i32, i32
  }
  func.func @transform_13(%arg0: i32, %arg1: i32) -> (i32, i32, i32) {
    %c0_i32 = arith.constant 0 : i32
    %c0_i32_0 = arith.constant 0 : i32
    %c0_i32_1 = arith.constant 0 : i32
    return %arg1, %c0_i32, %c0_i32_0 : i32, i32, i32
  }
  func.func @transform_14(%arg0: i32, %arg1: i32) -> (i32, i32, i32) {
    %c0_i32 = arith.constant 0 : i32
    %c0_i32_0 = arith.constant 0 : i32
    %c0_i32_1 = arith.constant 0 : i32
    return %arg1, %c0_i32, %c0_i32_0 : i32, i32, i32
  }
  func.func @transform_15(%arg0: i32, %arg1: i32) -> (i32, i32, i32) {
    %c0_i32 = arith.constant 0 : i32
    %c0_i32_0 = arith.constant 0 : i32
    %c0_i32_1 = arith.constant 0 : i32
    return %arg1, %c0_i32, %c0_i32_0 : i32, i32, i32
  }
  func.func @transform_16(%arg0: i32, %arg1: i32) -> (i32, i32, i32) {
    %c0_i32 = arith.constant 0 : i32
    %c0_i32_0 = arith.constant 0 : i32
    %c0_i32_1 = arith.constant 0 : i32
    return %arg1, %c0_i32, %c0_i32_0 : i32, i32, i32
  }
  func.func @transform_17(%arg0: i32, %arg1: i32) -> (i32, i32) {
    %c0_i32 = arith.constant 0 : i32
    %c0_i32_0 = arith.constant 0 : i32
    return %arg0, %c0_i32 : i32, i32
  }
}

</mosaic_0001>

<bundles_post_ra>
// kernel: tpu_custom_call.1
= control target key start
LH: loop header
LB: loop body
LE: loop exit
PB: predicated region body
PF: predicated region fallthrough
CT: control target
= control target key end

     0   :  { %s7855_s0 = inlined_call_operand.vmem [shape: f32[128,48], index: 0, kind: input, shape index: {}]   ;;  %s7856_s1 = inlined_call_operand.vmem [shape: bf16[48,128], index: 1, kind: input, shape index: {}]   ;;  %s7857_s2 = inlined_call_operand.vmem [shape: f32[1,128], index: 2, kind: input, shape index: {}]   ;;  %s7858_s3 = inlined_call_operand.vmem [shape: f32[1,128], index: 3, kind: input, shape index: {}]   ;;  %s7859_s4 = inlined_call_operand.vmem [shape: f32[1,128], index: 4, kind: input, shape index: {}]   ;;  %s7860_s5 = inlined_call_operand.hbm [shape: bf16[2,128,384], index: 5, kind: input, shape index: {}]   ;;  %s7861_s6 = inlined_call_operand.vmem [shape: f32[2,1,384], index: 6, kind: input, shape index: {}]   ;;  %s7862_s7 = inlined_call_operand.vmem [shape: bf16[2,128,128], index: 7, kind: input, shape index: {}]   ;;  %s7863_s8 = inlined_call_operand.vmem [shape: f32[2,1,128], index: 8, kind: input, shape index: {}]   ;;  %s7864_s9 = inlined_call_operand.vmem [shape: f32[2,1,128], index: 9, kind: input, shape index: {}]   ;;  %s7865_s10 = inlined_call_operand.vmem [shape: f32[2,1,128], index: 10, kind: input, shape index: {}]   ;;  %s7866_s11 = inlined_call_operand.hbm [shape: bf16[2,128,256], index: 11, kind: input, shape index: {}]   ;;  %s7867_s12 = inlined_call_operand.vmem [shape: f32[2,1,256], index: 12, kind: input, shape index: {}]   ;;  %s7868_s13 = inlined_call_operand.hbm [shape: bf16[2,256,128], index: 13, kind: input, shape index: {}]   ;;  %s7869_s14 = inlined_call_operand.vmem [shape: f32[2,1,128], index: 14, kind: input, shape index: {}]   ;;  %s7870_s15 = inlined_call_operand.vmem [shape: f32[2,1,128], index: 15, kind: input, shape index: {}]   ;;  %s7871_s16 = inlined_call_operand.vmem [shape: f32[2,1,128], index: 16, kind: input, shape index: {}]   ;;  %s7872_s17 = inlined_call_operand.hbm [shape: bf16[128,128], index: 17, kind: output, shape index: {}]  }
   0x1   :  { %7891 = sst [smem:[#allocation29_spill]] %s7855_s0 }
   0x2   :  { %7892 = sst [smem:[#allocation30_spill]] %s7856_s1 }
   0x3   :  { %7893 = sst [smem:[#allocation31_spill]] %s7857_s2 }
   0x4   :  { %7894 = sst [smem:[#allocation32_spill]] %s7858_s3 }
   0x5   :  { %7895 = sst [smem:[#allocation33_spill]] %s7859_s4 }
   0x6   :  { %7896 = sst [smem:[#allocation34_spill]] %s7860_s5 }
   0x7   :  { %7897 = sst [smem:[#allocation35_spill]] %s7861_s6 }
   0x8   :  { %7898 = sst [smem:[#allocation36_spill]] %s7862_s7 }
   0x9   :  { %7899 = sst [smem:[#allocation37_spill]] %s7864_s9 }
   0xa   :  { %7900 = sst [smem:[#allocation38_spill]] %s7865_s10 }
   0xb   :  { %7901 = sst [smem:[#allocation39_spill]] %s7866_s11 }
   0xc   :  { %7902 = sst [smem:[#allocation40_spill]] %s7867_s12 }
   0xd   :  { %7903 = sst [smem:[#allocation41_spill]] %s7868_s13 }
   0xe   :  { %7904 = sst [smem:[#allocation42_spill]] %s7869_s14 }
   0xf   :  { %7905 = sst [smem:[#allocation43_spill]] %s7870_s15 }
  0x10   :  { %7906 = sst [smem:[#allocation44_spill]] %s7871_s16 }
  0x11   :  { %7907 = sst [smem:[#allocation45_spill]] %s7872_s17 }
  0x12   :  { %22 = vsyncpa [#allocation5], 0 }
  0x13   :  { %24 = vsyncpa [#allocation5 + $0x1], 0 }
  0x14   :  { %25 = vsyncpa [#allocation8], 0 }
  0x15   :  { %27 = vsyncpa [#allocation8 + $0x1], 0 }
  0x16   :  { %28 = vsyncpa [#allocation6], 0 }
  0x17   :  { %30 = vsyncpa [#allocation6 + $0x1], 0  ;;  %s5778_s24 = smov 0   ;;  %s5780_s25 = smov 0  }
  0x18   :  { %s5782_s26 = smov 0   ;;  %s5784_s27 = smov 0  }
  0x19   :  { %s5786_s28 = smov 0   ;;  %s5788_s29 = smov 0  }
  0x1a   :  { %s5790_s0 = smov 0   ;;  %s5792_s30 = smov 0  }
  0x1b   :  { %s5794_s18 = smov 0   ;;  %s5796_s19 = smov 0  }
  0x1c   :  { %s5798_s1 = smov 0  }
  0x1d LB: > { %7908 = sst [smem:[#allocation14_spill]] %s5634_s24  ;;  %s5832_s20 = sadd.s32 4294967295, %s5674_s1   ;;  %s5674_s1 = sphi %s5798_s1, %s36_s1   ;;  %s5670_s19 = sphi %s5796_s19, %s7986_s19   ;;  %s5666_s18 = sphi %s5794_s18, %s7985_s18   ;;  %s5662_s30 = sphi %s5792_s30, %s7984_s30   ;;  %s5658_s0 = sphi %s5790_s0, %s7983_s0   ;;  %s5654_s29 = sphi %s5788_s29, %s7982_s29   ;;  %s5650_s28 = sphi %s5786_s28, %s7981_s28   ;;  %s5646_s27 = sphi %s5784_s27, %s7980_s27   ;;  %s5642_s26 = sphi %s5782_s26, %s7979_s26   ;;  %s5638_s25 = sphi %s5780_s25, %s7978_s25   ;;  %s5634_s24 = sphi %s5778_s24, %s7977_s24  }
  0x1e   : > { %7909 = sst [smem:[#allocation15_spill]] %s5638_s25  ;;  %s4644_s21 = sadd.s32 4294967294, %s5674_s1  }
  0x1f   : > { %7910 = sst [smem:[#allocation16_spill]] %s5642_s26  ;;  %s45_s22 = sadd.s32 1, %s5666_s18 }
  0x20   : > { %7911 = sst [smem:[#allocation17_spill]] %s5650_s28  ;;  %s48_s23 = sadd.s32 1, %s5670_s19 }
  0x21   : > { %7912 = sst [smem:[#allocation18_spill]] %s5654_s29  ;;  %p46_p0 = scmp.ge.s32.totalorder %s45_s22, 2 }
  0x22   : > { %7913 = sst [smem:[#allocation19_spill]] %s5662_s30  ;;  %s165_s17 = sadd.s32 1, %s5654_s29 }
  0x23   : > { %7914 = sst [smem:[#allocation20_spill]] %s5666_s18  ;;  %p172_p1 = scmp.ne.s32.totalorder %s5654_s29, %s5650_s28 }
  0x24   : > { %7915 = sst [smem:[#allocation21_spill]] %s5670_s19  ;;  %p173_p2 = scmp.eq.s32.totalorder %s5674_s1, 0 }
  0x25   : > { %7916 = sst [smem:[#allocation22_spill]] %s5674_s1  ;;  %s7988_s22 = smov (%p46_p0, %s45_s22), 0 }
  0x26   : > { %7917 = sst [smem:[#allocation23_spill]] %s7988_s22  ;;  %s7990_s23 = smov (!%p46_p0, %s48_s23), %s5670_s19 }
  0x27   : > { %s162_s4 = ssub.s32 %s5666_s18, %s7988_s22  ;;  %p5846_p3 = por %p173_p2, %p172_p1 }
  0x28   : > { %p50_p4 = scmp.ge.s32.totalorder %s7990_s23, 2  ;;  %p163_p5 = scmp.eq.s32.totalorder %s162_s4, 0 }
  0x29   : > { %p178_p6 = scmp.ne.s32.totalorder %s5650_s28, %s5646_s27  ;;  %p179_p7 = scmp.eq.s32.totalorder %s5832_s20, 0 }
  0x2a   : > { %s7992_s23 = smov (%p50_p4, %s7990_s23), 0  ;;  %s477_s15 = sadd.s32 1, %s5642_s26 }
  0x2b   : > { %7919 = sst [smem:[#allocation24_spill]] %s7992_s23  ;;  %p5857_p8 = por %p179_p7, %p178_p6 }
  0x2c   : > { %s5855_s2 = scalar_select %p163_p5, %s5654_s29, %s165_s17  }
  0x2d   : > { %s474_s16 = ssub.s32 %s5670_s19, %s7992_s23  ;;  %p487_p10 = scmp.ne.s32.totalorder %s5642_s26, %s5638_s25 }
  0x2e   : > { %7920 = sst [smem:[#allocation25_spill]] %s5855_s2  ;;  %p475_p9 = scmp.eq.s32.totalorder %s474_s16, 0 }
  0x2f   : > { %p488_p11 = scmp.eq.s32.totalorder %s5832_s20, 3  ;;  %p493_p13 = scmp.ne.s32.totalorder %s5638_s25, %s5634_s24 }
  0x30   : > { %s5868_s4 = scalar_select %p475_p9, %s5642_s26, %s477_s15  }
  0x31   : > { %p5870_p12 = por %p488_p11, %p487_p10  ;;  %p494_p0 = scmp.eq.s32.totalorder %s4644_s21, 3 }
  0x32   : > { %7922 = sst [smem:[#allocation26_spill]] %s5868_s4  ;;  %p5127_p1 = scmp.lt.s32.totalorder %s5674_s1, 4 }
  0x33   : > { %s7923_s27 = scalar_select %p5870_p12, 1, 0 }
  0x34   : > { %s5878_s17 = sand.u32 1, %s5654_s29   ;;  %p5880_p2 = por %p494_p0, %p493_p13 }
  0x35   : > { %7924 = sst [smem:[#allocation27_spill]] %s7923_s27  ;;  %s590_s16 = sand.u32 1, %s5674_s1  }
  0x36   : > { %s7925_s2 = scalar_select %p5880_p2, 1, 0 }
  0x37   : > { %p5887_p4 = pnand %p5127_p1, %p5846_p3  ;;  %s4648_s15 = sshll.u32 %s5878_s17, 7 }
  0x38   : > { %7926 = sst [smem:[#allocation28_spill]] %s7925_s2  ;;  %s4990_s19 = sshll.u32 %s5666_s18, 7 }
  0x39   : > { %s7928_s11 = sld [smem:[#allocation39_spill]]  ;;  %s594_s29 = scalar_lea.vmem [#allocation7], %s4648_s15 }
  0x3a   : > { %s602_s24 = sshll.u32 %s594_s29, 4  ;;  %s5896_s3 = scalar_lea.sflag [#allocation8], %s590_s16  ;;  %s603_s24 = int_to_ptr.vmem [resolvable:$true] %s602_s24 }
  0x3b   : > { %s5676_s2 = smov 128   ;;  %s5677_s12 = smov 8  }
  0x3c   : > { %s7929_s13 = sld [smem:[#allocation41_spill]]  ;;  %s623_s4 = scalar_lea.vmem [#allocation9], %s4648_s15 }
  0x3d   : > { %p4654_p3 = scmp.ge.s32.totalorder %s5674_s1, 1  ;;  %p657_p5 = scmp.lt.s32.totalorder %s5674_s1, 5 }
  0x3e   : > { %s7931_s5 = sld [smem:[#allocation34_spill]]  ;;  %s5681_s1 = smov 4  }
  0x3f   : > { %s599_s21 = scalar_lea.hbm %s7928_s11, %s4990_s19  ;;  %s631_s11 = sshll.u32 %s623_s4, 4  ;;  %s632_s11 = int_to_ptr.vmem [resolvable:$true] %s631_s11 }
  0x40   : > { %s600_s27 = sshll.u32 %s599_s21, 4  ;;  %p5906_p6 = pnand %p4654_p3, %p657_p5  ;;  %s601_s27 = int_to_ptr.hbm [resolvable:$true] %s600_s27 }
  0x41   : > { %5119 = dma.hbm_to_vmem [thread:$0]  (!%p5887_p4), %s601_s27, 2048, %s603_s24, %s5896_s3, %s5676_s2, %s5676_s2, %s5677_s12  }
  0x42   : > { %s628_s26 = scalar_lea.hbm %s7929_s13, %s4990_s19  ;;  %s5101_s2 = smul.u32 192, %s5878_s17 }
  0x43   : > { %s629_s29 = sshll.u32 %s628_s26, 4  ;;  %s5102_s12 = smul.u32 192, %s5666_s18  ;;  %s630_s29 = int_to_ptr.hbm [resolvable:$true] %s629_s29 }
  0x44   : > { %s539_s19 = scalar_lea.vmem [#allocation4], %s5101_s2  ;;  %s536_s21 = scalar_lea.sflag [#allocation5], %s5878_s17 }
  0x45   : > { %s544_s14 = scalar_lea.hbm %s7931_s5, %s5102_s12  ;;  %s547_s27 = sshll.u32 %s539_s19, 4  ;;  %s548_s27 = int_to_ptr.vmem [resolvable:$true] %s547_s27 }
  0x46   : > { %s545_s15 = sshll.u32 %s544_s14, 4  ;;  %s5678_s26 = smov 192   ;;  %s546_s15 = int_to_ptr.hbm [resolvable:$true] %s545_s15 }
  0x47   : > { %s5679_s4 = smov 12   ;;  %s5680_s13 = smov 64  }
  0x48   : > { %5116 = dma.hbm_to_vmem [thread:$0]  (!%p5887_p4), %s546_s15, 3072, %s548_s27, %s536_s21, %s5678_s26, %s5678_s26, %s5679_s4  }
  0x49   : > { %5122 = dma.hbm_to_vmem [thread:$0]  (!%p5887_p4), %s630_s29, 2048, %s632_s11, %s5896_s3, %s5680_s13, %s5680_s13, %s5681_s1  }
  0x4a   : > { %661 = sbr.rel (%p5906_p6) target bundleno = 2845 (0xb1d), region = 88  ;;  %s5924_s12 = sand.u32 (!%p5906_p6), 1, %s5650_s28  }
  0x4b   : > { %s5103_s2 = smul.u32 (!%p5906_p6), 192, %s5924_s12  ;;  %s664_s24 = scalar_lea.sflag (!%p5906_p6), [#allocation5], %s5924_s12 }
  0x4d   : > { %s5928_s17 = scalar_lea.vmem (!%p5906_p6), [#allocation4], %s5103_s2 }
  0x4f   : > { %5621 = dma.done.wait (%p5857_p8), %s664_s24, 3072  }
  0x50   : > { %5623 = vsyncadd (%p5857_p8), %s664_s24, 4294964224  ;;  %s673_s11 = sand.u32 1, %s5832_s20   ;;  %s4655_s13 = sshll.u32 %s5924_s12, 7 }
  0x51   : > { %s674_s1 = scalar_lea.sflag [#allocation8], %s673_s11  ;;  %s5936_s23 = scalar_lea.vmem [#allocation7], %s4655_s13 }
  0x52   : > { %5625 = dma.done.wait (%p5857_p8), %s674_s1, 4096  }
  0x53   : > { %5627 = vsyncadd (%p5857_p8), %s674_s1, 4294963200  ;;  %s7886_s3 = sand.u32 1, %s5638_s25   ;;  %s4658_s16 = sshll.u32 %s5662_s30, 3 }
  0x54   : > { %s4657_s29 = sshll.u32 %s7886_s3, 5  ;;  %p786_p7 = scmp.lt.s32.totalorder %s4658_s16, 15 }
  0x55   : > { %p791_p9 = scmp.lt.s32.totalorder %s5658_s0, 1  ;;  %s7932_s19 = sld [smem:[#allocation29_spill]] }
  0x56   : > { %s7994_s16 = smov (!%p786_p7, %s4658_s16), 15  ;;  %s7933_s6 = sld [smem:[#allocation35_spill]] }
  0x57   : > { %s5948_s20 = scalar_select %p791_p9, %s5658_s0, 1 }
  0x58   : > { %s4659_s22 = sshll.u32 %s7994_s16, 3  ;;  %s7934_s7 = sld [smem:[#allocation36_spill]] }
  0x59   : > { %s5104_s15 = smul.u32 3, %s5948_s20  ;;  %s4992_s21 = sshll.u32 %s5948_s20, 6 }
  0x5a   : > { %s7936_s18 = sld [smem:[#allocation38_spill]]  ;;  %s4662_s26 = sshll.u32 %s5948_s20, 1 }
  0x5b   : > { %s5953_s27 = scalar_lea.vmem %s7932_s19, %s4659_s22  ;;  %s7937_s25 = sld [smem:[#allocation42_spill]] }
  0x5c   : > { %s5964_s11 = scalar_lea.vmem %s7933_s6, %s5104_s15  ;;  %s7938_s6 = sld [smem:[#allocation40_spill]] }
  0x5d   : > { %s7939_s1 = sld [smem:[#allocation43_spill]]  ;;  %s5997_s14 = scalar_lea.vmem [#allocation9], %s4655_s13 }
  0x5e   : > { %s5969_s16 = scalar_lea.vmem %s7934_s7, %s4992_s21  ;;  %s7940_s22 = sld [smem:[#allocation44_spill]] }
  0x5f   : > { %p4663_p8 = scmp.ne.s32.totalorder %s5658_s0, 0 }
  0x60   : > { %s808_s28 = scalar_lea.vmem %s7936_s18, %s5948_s20  ;;  %s5999_s18 = scalar_lea.vmem [#allocation10], %s4657_s29 }
  0x61   : > { %s815_s2 = scalar_lea.vmem %s7937_s25, %s5948_s20  ;;  %827 = sbr.rel (%p4663_p8) target bundleno = 534 (0x216), region = 104 }
  0x62   : > { %s5987_s30 = scalar_lea.vmem %s7938_s6, %s4662_s26  ;;  %s7941_s19 = sld [smem:[#allocation30_spill]] (!%p4663_p8) }
  0x63   : > { %s818_s7 = scalar_lea.vmem %s7939_s1, %s5948_s20  ;;  %s7943_s24 = sld [smem:[#allocation31_spill]] (!%p4663_p8) }
  0x64   : > { %s821_s9 = scalar_lea.vmem %s7940_s22, %s5948_s20  ;;  %s7944_s21 = sld [smem:[#allocation32_spill]] (!%p4663_p8) }
  0x65   : > { %s7945_s10 = sld [smem:[#allocation33_spill]] (!%p4663_p8) }
  0x66   : > { %v828_v3 = vld [vmem:[%s5953_s27] sm:$0xff]  ;;  %v829_v4 = vld [vmem:[%s5953_s27 + $0x8] sm:$0xff]  ;;  %v830_v5 = vld [vmem:[%s5953_s27 + $0x10] sm:$0xff]  ;;  %vm868_vm0 = vcmask 392192   ;;  %v5682_v32 = vmov 128.0  }
  0x67   : > { %v831_v6 = vld [vmem:[%s5953_s27 + $0x18] sm:$0xff]  ;;  %v832_v7 = vld [vmem:[%s5953_s27 + $0x20] sm:$0xff]  ;;  %v833_v8 = vld [vmem:[%s5953_s27 + $0x28] sm:$0xff]  ;;  %v836_v11 = vpack.c.bf16 %v829_v4, %v828_v3  ;;  %5232 = vrcp.f32 %v5682_v32 }
  0x68   : > { %s7942_s4 = smov %s7941_s19  ;;  %v4995_v0 = vld [vmem:[%s7941_s19 + $0x10] sm:$0xff]  ;;  %v835_v10 = vld [vmem:[%s5953_s27 + $0x38] sm:$0xff]  ;;  %v837_v12 = vpack.c.bf16 %v831_v6, %v830_v5  ;;  %v838_v13 = vpack.c.bf16 %v833_v8, %v832_v7 }
  0x69   : > { %886 = vmatpush.bf16.msra.mxu0 %v4995_v0  ;;  %5084 = vmatpush.bf16.msra.mxu1 %v4995_v0  ;;  %v4994_v1 = vld [vmem:[%s7942_s4 + $0x8] sm:$0xff]  ;;  %v4993_v2 = vld [vmem:[%s7942_s4] sm:$0xff]  ;;  %v834_v9 = vld [vmem:[%s5953_s27 + $0x30] sm:$0xff] }
  0x6a   : > { %5085 = vmatpush.bf16.msra.mxu2 %v4995_v0  ;;  %5086 = vmatpush.bf16.msra.mxu3 %v4995_v0  ;;  %v839_v14 = vpack.c.bf16 %v835_v10, %v834_v9  ;;  %v5229_v15 = vld [vmem:[%s7943_s24] ss:$0 sm:$0xff] }
  0x6d   : > { %887 = vmatpush.bf16.msra.mxu0 %v4994_v1  ;;  %5087 = vmatpush.bf16.msra.mxu1 %v4994_v1  ;;  %v5233_v33 = vpop.eup %5232 }
  0x6e   : > { %5088 = vmatpush.bf16.msra.mxu2 %v4994_v1  ;;  %5089 = vmatpush.bf16.msra.mxu3 %v4994_v1  ;;  %v929_v34 = vmul.f32 128.0, %v5233_v33  ;;  %vm933_vm1 = vweird.f32 %v5233_v33 }
  0x70   : > { %v930_v35 = vsub.f32 1.0, %v929_v34 }
  0x71   : > { %888 = vmatpush.bf16.msra.mxu0 %v4993_v2  ;;  %5090 = vmatpush.bf16.msra.mxu1 %v4993_v2 }
  0x72   : > { %5091 = vmatpush.bf16.msra.mxu2 %v4993_v2  ;;  %5092 = vmatpush.bf16.msra.mxu3 %v4993_v2  ;;  %v931_v36 = vmul.f32 %v5233_v33, %v930_v35 }
  0x74   : > { %4676 = vmatmul.msk.bf16.vlgmr.msra.gmra.mxu0 %vm868_vm0, %v836_v11  ;;  %4677 = vmatmul.msk.bf16.vlgmr.msra.gmra.mxu1 %vm868_vm0, %v837_v12  ;;  %v932_v37 = vadd.f32 %v5233_v33, %v931_v36 }
  0x75   : > { %4678 = vmatmul.msk.bf16.vlgmr.msra.gmra.mxu2 %vm868_vm0, %v838_v13  ;;  %4679 = vmatmul.msk.bf16.vlgmr.msra.gmra.mxu3 %vm868_vm0, %v839_v14 }
  0x76   : > { %v6022_v38 = vsel %vm933_vm1, %v5233_v33, %v932_v37 }
  0xf1   : > { %v890_v16 = vpop.f32.mrf.mxu0  ;;  %v895_v17 = vpop.f32.mrf.mxu1 }
  0xf2   : > { %v891_v18 = vadd.f32 %v5229_v15, %v890_v16  ;;  %v896_v19 = vadd.f32 %v5229_v15, %v895_v17 }
  0xf4   : > { %916 = vadd.xlane.f32.xlu1 %v896_v19  ;;  %912 = vadd.xlane.f32.xlu0 %v891_v18 }
  0xf8   : > { %v900_v20 = vpop.f32.mrf.mxu2  ;;  %v905_v21 = vpop.f32.mrf.mxu3 }
  0xf9   : > { %v901_v22 = vadd.f32 %v5229_v15, %v900_v20  ;;  %v892_v23 = vpop.f32.mrf.mxu0  ;;  %v897_v24 = vpop.f32.mrf.mxu1  ;;  %v906_v30 = vadd.f32 %v5229_v15, %v905_v21 }
  0xfa   : > { %v893_v25 = vadd.f32 %v5229_v15, %v892_v23  ;;  %v898_v26 = vadd.f32 %v5229_v15, %v897_v24 }
  0xfb   : > { %920 = vadd.xlane.f32.xlu2 %v901_v22 }
  0xfc   : > { %918 = vadd.xlane.f32.xlu1 %v898_v26  ;;  %914 = vadd.xlane.f32.xlu0 %v893_v25 }
 0x100   : > { %v902_v27 = vpop.f32.mrf.mxu2  ;;  %v907_v28 = vpop.f32.mrf.mxu3 }
 0x101   : > { %v903_v29 = vadd.f32 %v5229_v15, %v902_v27  ;;  %v908_v31 = vadd.f32 %v5229_v15, %v907_v28 }
 0x103   : > { %922 = vadd.xlane.f32.xlu2 %v903_v29 }
 0x104   : > { %926 = vadd.xlane.f32.xlu1 %v908_v31  ;;  %924 = vadd.xlane.f32.xlu0 %v906_v30 }
 0x167   : > { %v917_v39 = vpop.xlane.xlu1 %916  ;;  %v913_v40 = vpop.xlane.xlu0 %912 }
 0x168   : > { %v937_v41 = vmul.f32 %v6022_v38, %v917_v39  ;;  %v935_v42 = vmul.f32 %v6022_v38, %v913_v40 }
 0x16a   : > { %v6026_v43 = vsub.f32 %v896_v19, %v937_v41  ;;  %v6028_v44 = vsub.f32 %v891_v18, %v935_v42 }
 0x16c   : > { %v953_v45 = vmul.f32 %v6026_v43, %v6026_v43  ;;  %v951_v46 = vmul.f32 %v6028_v44, %v6028_v44 }
 0x16e   : > { %v921_v47 = vpop.xlane.xlu2 %920  ;;  %963 = vadd.xlane.f32.xlu1 %v953_v45  ;;  %959 = vadd.xlane.f32.xlu2 %v951_v46  ;;  %v6089_v46 = vld [vmem:[%s7944_s21] ss:$0 sm:$0xff] }
 0x16f   : > { %v939_v48 = vmul.f32 %v6022_v38, %v921_v47  ;;  %v919_v49 = vpop.xlane.xlu1 %918  ;;  %v915_v50 = vpop.xlane.xlu0 %914 }
 0x170   : > { %v938_v51 = vmul.f32 %v6022_v38, %v919_v49  ;;  %v936_v54 = vmul.f32 %v6022_v38, %v915_v50 }
 0x171   : > { %v6036_v52 = vsub.f32 %v901_v22, %v939_v48 }
 0x172   : > { %v6038_v53 = vsub.f32 %v898_v26, %v938_v51  ;;  %v6045_v58 = vsub.f32 %v893_v25, %v936_v54  ;;  %v6096_v51 = vld [vmem:[%s7945_s10] ss:$0 sm:$0xff] }
 0x173   : > { %v955_v55 = vmul.f32 %v6036_v52, %v6036_v52 }
 0x174   : > { %v954_v56 = vmul.f32 %v6038_v53, %v6038_v53  ;;  %v952_v3 = vmul.f32 %v6045_v58, %v6045_v58 }
 0x175   : > { %967 = vadd.xlane.f32.xlu0 %v955_v55 }
 0x176   : > { %v923_v57 = vpop.xlane.xlu2 %922  ;;  %965 = vadd.xlane.f32.xlu2 %v954_v56 }
 0x177   : > { %v940_v59 = vmul.f32 %v6022_v38, %v923_v57  ;;  %v925_v60 = vpop.xlane.xlu0 %924  ;;  %v927_v61 = vpop.xlane.xlu1 %926 }
 0x178   : > { %v941_v62 = vmul.f32 %v6022_v38, %v925_v60  ;;  %v942_v1 = vmul.f32 %v6022_v38, %v927_v61 }
 0x179   : > { %v6049_v63 = vsub.f32 %v903_v29, %v940_v59 }
 0x17a   : > { %v6051_v0 = vsub.f32 %v906_v30, %v941_v62  ;;  %v6060_v5 = vsub.f32 %v908_v31, %v942_v1 }
 0x17b   : > { %v956_v2 = vmul.f32 %v6049_v63, %v6049_v63 }
 0x17c   : > { %v957_v4 = vmul.f32 %v6051_v0, %v6051_v0  ;;  %v958_v6 = vmul.f32 %v6060_v5, %v6060_v5 }
 0x17d   : > { %969 = vadd.xlane.f32.xlu1 %v956_v2  ;;  %961 = vadd.xlane.f32.xlu0 %v952_v3 }
 0x17e   : > { %971 = vadd.xlane.f32.xlu2 %v957_v4 }
 0x185   : > { %973 = vadd.xlane.f32.xlu0 %v958_v6 }
 0x1e1   : > { %v964_v7 = vpop.xlane.xlu1 %963  ;;  %v960_v8 = vpop.xlane.xlu2 %959 }
 0x1e2   : > { %v977_v9 = vmul.f32 %v964_v7, %v6022_v38  ;;  %v975_v10 = vmul.f32 %v960_v8, %v6022_v38 }
 0x1e4   : > { %v985_v11 = vadd.f32 1e-12, %v977_v9  ;;  %v983_v12 = vadd.f32 1e-12, %v975_v10 }
 0x1e6   : > { %5234 = vrsqrt.f32 %v985_v11  ;;  %vm1017_vm4 = vweird.f32 %v985_v11  ;;  %vm997_vm6 = vweird.f32 %v983_v12 }
 0x1e7   : > { %5236 = vrsqrt.f32 %v983_v12 }
 0x1e8   : > { %v968_v13 = vpop.xlane.xlu0 %967 }
 0x1e9   : > { %v979_v14 = vmul.f32 %v968_v13, %v6022_v38  ;;  %v966_v15 = vpop.xlane.xlu2 %965 }
 0x1ea   : > { %v978_v16 = vmul.f32 %v966_v15, %v6022_v38 }
 0x1eb   : > { %v6068_v17 = vadd.f32 1e-12, %v979_v14 }
 0x1ec   : > { %v5235_v18 = vpop.eup %5234  ;;  %v6070_v19 = vadd.f32 1e-12, %v978_v16 }
 0x1ed   : > { %v5237_v20 = vpop.eup %5236  ;;  %v1012_v21 = vmul.f32 %v5235_v18, %v985_v11  ;;  %5238 = vrsqrt.f32 %v6068_v17  ;;  %vm1018_vm2 = vweird.f32 %v5235_v18  ;;  %vm1037_vm10 = vweird.f32 %v6068_v17 }
 0x1ee   : > { %v992_v22 = vmul.f32 %v5237_v20, %v983_v12  ;;  %5240 = vrsqrt.f32 %v6070_v19  ;;  %vm998_vm3 = vweird.f32 %v5237_v20  ;;  %vm1019_vm5 = vmor %vm1017_vm4, %vm1018_vm2  ;;  %vm1027_vm12 = vweird.f32 %v6070_v19 }
 0x1ef   : > { %v1013_v23 = vmul.f32 %v5235_v18, %v1012_v21  ;;  %vm999_vm7 = vmor %vm997_vm6, %vm998_vm3 }
 0x1f0   : > { %v993_v24 = vmul.f32 %v5237_v20, %v992_v22  ;;  %v970_v25 = vpop.xlane.xlu1 %969  ;;  %v962_v26 = vpop.xlane.xlu0 %961 }
 0x1f1   : > { %v1014_v27 = vmul.f32 0.5, %v1013_v23  ;;  %v980_v28 = vmul.f32 %v970_v25, %v6022_v38  ;;  %v976_v29 = vmul.f32 %v962_v26, %v6022_v38  ;;  %v972_v30 = vpop.xlane.xlu2 %971 }
 0x1f2   : > { %v994_v31 = vmul.f32 0.5, %v993_v24  ;;  %v981_v32 = vmul.f32 %v972_v30, %v6022_v38 }
 0x1f3   : > { %v5239_v33 = vpop.eup %5238  ;;  %v1015_v34 = vsub.f32 1.5, %v1014_v27  ;;  %v6077_v35 = vadd.f32 1e-12, %v980_v28  ;;  %v6079_v36 = vadd.f32 1e-12, %v976_v29 }
 0x1f4   : > { %v5241_v37 = vpop.eup %5240  ;;  %v995_v39 = vsub.f32 1.5, %v994_v31  ;;  %v1032_v40 = vmul.f32 %v5239_v33, %v6068_v17  ;;  %v6082_v41 = vadd.f32 1e-12, %v981_v32  ;;  %vm1038_vm8 = vweird.f32 %v5239_v33 }
 0x1f5   : > { %v1016_v42 = vmul.f32 %v5235_v18, %v1015_v34  ;;  %v1022_v45 = vmul.f32 %v5241_v37, %v6070_v19  ;;  %5242 = vrsqrt.f32 %v6077_v35  ;;  %vm1028_vm9 = vweird.f32 %v5241_v37  ;;  %vm1039_vm11 = vmor %vm1037_vm10, %vm1038_vm8 }
 0x1f6   : > { %v996_v47 = vmul.f32 %v5237_v20, %v995_v39  ;;  %v1033_v48 = vmul.f32 %v5239_v33, %v1032_v40  ;;  %5244 = vrsqrt.f32 %v6079_v36  ;;  %vm1029_vm13 = vmor %vm1027_vm12, %vm1028_vm9  ;;  %vm1047_vm15 = vweird.f32 %v6077_v35 }
 0x1f7   : > { %v1020_v49 = vsel %vm1019_vm5, %v5235_v18, %v1016_v42  ;;  %v1023_v50 = vmul.f32 %v5241_v37, %v1022_v45  ;;  %5246 = vrsqrt.f32 %v6082_v41  ;;  %vm1007_vm3 = vweird.f32 %v6079_v36 }
 0x1f8   : > { %v1073_v54 = vmul.f32 %v1020_v49, %v6026_v43  ;;  %v1000_v55 = vsel %vm999_vm7, %v5237_v20, %v996_v47  ;;  %v1034_v56 = vmul.f32 0.5, %v1033_v48  ;;  %v974_v57 = vpop.xlane.xlu0 %973  ;;  %vm1057_vm5 = vweird.f32 %v6082_v41 }
 0x1f9   : > { %v1071_v59 = vmul.f32 %v1000_v55, %v6028_v44  ;;  %v1024_v60 = vmul.f32 0.5, %v1023_v50  ;;  %v982_v61 = vmul.f32 %v974_v57, %v6022_v38 }
 0x1fa   : > { %v1084_v62 = vmul.f32 %v6089_v46, %v1073_v54  ;;  %v1035_v1 = vsub.f32 1.5, %v1034_v56 }
 0x1fb   : > { %v5243_v2 = vpop.eup %5242  ;;  %v1082_v3 = vmul.f32 %v6089_v46, %v1071_v59  ;;  %v1025_v4 = vsub.f32 1.5, %v1024_v60  ;;  %v6103_v6 = vadd.f32 1e-12, %v982_v61 }
 0x1fc   : > { %v5245_v43 = vpop.eup %5244  ;;  %v1095_v7 = vadd.f32 %v6096_v51, %v1084_v62  ;;  %v1036_v8 = vmul.f32 %v5239_v33, %v1035_v1  ;;  %v1042_v44 = vmul.f32 %v5243_v2, %v6077_v35  ;;  %vm1048_vm14 = vweird.f32 %v5243_v2 }
 0x1fd   : > { %v5247_v38 = vpop.eup %5246  ;;  %v1093_v9 = vadd.f32 %v6096_v51, %v1082_v3  ;;  %v1026_v10 = vmul.f32 %v5241_v37, %v1025_v4  ;;  %v1002_v11 = vmul.f32 %v5245_v43, %v6079_v36  ;;  %5248 = vrsqrt.f32 %v6103_v6  ;;  %vm1049_vm2 = vmor %vm1047_vm15, %vm1048_vm14 }
 0x1fe   : > { %1103 = vst [vmem:[#allocation2 + $0x18] sm:$0xff] %v1095_v7  ;;  %v1040_v12 = vsel %vm1039_vm11, %v5239_v33, %v1036_v8  ;;  %v1043_v13 = vmul.f32 %v5243_v2, %v1042_v44  ;;  %v1052_v14 = vmul.f32 %v5247_v38, %v6082_v41  ;;  %vm1008_vm0 = vweird.f32 %v5245_v43 }
 0x1ff   : > { %1101 = vst [vmem:[#allocation2 + $0x30] sm:$0xff] %v1093_v9  ;;  %v1075_v15 = vmul.f32 %v1040_v12, %v6036_v52  ;;  %v1030_v16 = vsel %vm1029_vm13, %v5241_v37, %v1026_v10  ;;  %v1003_v17 = vmul.f32 %v5245_v43, %v1002_v11  ;;  %vm1058_vm1 = vweird.f32 %v5247_v38  ;;  %vm1009_vm4 = vmor %vm1007_vm3, %vm1008_vm0 }
 0x200   : > { %v1074_v18 = vmul.f32 %v1030_v16, %v6038_v53  ;;  %v1044_v20 = vmul.f32 0.5, %v1043_v13  ;;  %v1053_v19 = vmul.f32 %v5247_v38, %v1052_v14  ;;  %vm1059_vm6 = vmor %vm1057_vm5, %vm1058_vm1  ;;  %vm1067_vm8 = vweird.f32 %v6103_v6 }
 0x201   : > { %v1086_v21 = vmul.f32 %v6089_v46, %v1075_v15  ;;  %v1004_v22 = vmul.f32 0.5, %v1003_v17 }
 0x202   : > { %v1085_v23 = vmul.f32 %v6089_v46, %v1074_v18  ;;  %v1045_v24 = vsub.f32 1.5, %v1044_v20  ;;  %v1054_v25 = vmul.f32 0.5, %v1053_v19 }
 0x203   : > { %v1097_v26 = vadd.f32 %v6096_v51, %v1086_v21  ;;  %v1005_v52 = vsub.f32 1.5, %v1004_v22  ;;  %v5249_v29 = vpop.eup %5248 }
 0x204   : > { %v1096_v27 = vadd.f32 %v6096_v51, %v1085_v23  ;;  %v1046_v28 = vmul.f32 %v5243_v2, %v1045_v24  ;;  %v1055_v53 = vsub.f32 1.5, %v1054_v25  ;;  %v1062_v33 = vmul.f32 %v5249_v29, %v6103_v6 }
 0x205   : > { %1105 = vst [vmem:[#allocation2 + $0x8] sm:$0xff] %v1097_v26  ;;  %v1006_v30 = vmul.f32 %v5245_v43, %v1005_v52  ;;  %vm1068_vm7 = vweird.f32 %v5249_v29 }
 0x206   : > { %1104 = vst [vmem:[#allocation2 + $0x10] sm:$0xff] %v1096_v27  ;;  %v1050_v31 = vsel %vm1049_vm2, %v5243_v2, %v1046_v28  ;;  %v1056_v32 = vmul.f32 %v5247_v38, %v1055_v53  ;;  %v1063_v40 = vmul.f32 %v5249_v29, %v1062_v33  ;;  %vm1069_vm9 = vmor %vm1067_vm8, %vm1068_vm7 }
 0x207   : > { %v1076_v34 = vmul.f32 %v1050_v31, %v6049_v63  ;;  %v1010_v35 = vsel %vm1009_vm4, %v5245_v43, %v1006_v30 }
 0x208   : > { %v1072_v37 = vmul.f32 %v1010_v35, %v6045_v58  ;;  %v1060_v39 = vsel %vm1059_vm6, %v5247_v38, %v1056_v32  ;;  %v1064_v47 = vmul.f32 0.5, %v1063_v40 }
 0x209   : > { %v1087_v42 = vmul.f32 %v6089_v46, %v1076_v34  ;;  %v1077_v36 = vmul.f32 %v1060_v39, %v6051_v0 }
 0x20a   : > { %v1083_v45 = vmul.f32 %v6089_v46, %v1072_v37  ;;  %v1065_v63 = vsub.f32 1.5, %v1064_v47 }
 0x20b   : > { %v1098_v48 = vadd.f32 %v6096_v51, %v1087_v42  ;;  %v1088_v41 = vmul.f32 %v6089_v46, %v1077_v36 }
 0x20c   : > { %v1094_v49 = vadd.f32 %v6096_v51, %v1083_v45  ;;  %v1066_v50 = vmul.f32 %v5249_v29, %v1065_v63 }
 0x20d   : > { %1106 = vst [vmem:[#allocation2 + $0x20] sm:$0xff] %v1098_v48  ;;  %v1099_v58 = vadd.f32 %v6096_v51, %v1088_v41 }
 0x20e   : > { %1102 = vst [vmem:[#allocation2] sm:$0xff] %v1094_v49  ;;  %v1070_v0 = vsel %vm1069_vm9, %v5249_v29, %v1066_v50 }
 0x20f   : > { %1107 = vst [vmem:[#allocation2 + $0x28] sm:$0xff] %v1099_v58  ;;  %v1078_v54 = vmul.f32 %v1070_v0, %v6060_v5 }
 0x211   : > { %v1089_v55 = vmul.f32 %v6089_v46, %v1078_v54 }
 0x213   : > { %v1100_v56 = vadd.f32 %v6096_v51, %v1089_v55 }
 0x215   : > { %1108 = vst [vmem:[#allocation2 + $0x38] sm:$0xff] %v1100_v56 }
 0x216 PF: > { %v4766_v57 = vld [vmem:[%s5928_s17 + $0xa8] sm:$0xf]  ;;  %v5018_v59 = vld [vmem:[%s5928_s17 + $0xb0] sm:$0xf0]  ;;  %v5017_v5 = vld [vmem:[%s5928_s17 + $0xac] sm:$0xf]  ;;  %s7946_s19 = scalar_lea.vmem %s7863_s8, %s5948_s20 }
 0x217   : > { %v4767_v46 = vor.u32 %v5018_v59, %v4766_v57  ;;  %v4768_v60 = vld [vmem:[%s5928_s17 + $0xb4] sm:$0xf0]  ;;  %v4754_v51 = vld [vmem:[%s5928_s17 + $0x90] sm:$0xf]  ;;  %v5015_v61 = vld [vmem:[%s5928_s17 + $0x98] sm:$0xf0] }
 0x218   : > { %v4771_v62 = vor.u32 %v5017_v5, %v4768_v60  ;;  %v5014_v1 = vld [vmem:[%s5928_s17 + $0x94] sm:$0xf]  ;;  %v4756_v2 = vld [vmem:[%s5928_s17 + $0x9c] sm:$0xf0]  ;;  %v4755_v3 = vor.u32 %v5015_v61, %v4754_v51  ;;  %v4742_v6 = vld [vmem:[%s5928_s17 + $0x78] sm:$0xf] }
 0x219   : > { %1289 = vmatpush.bf16.msra.mxu0 %v4767_v46  ;;  %v4759_v4 = vor.u32 %v5014_v1, %v4756_v2  ;;  %v5012_v43 = vld [vmem:[%s5928_s17 + $0x80] sm:$0xf0]  ;;  %v5011_v7 = vld [vmem:[%s5928_s17 + $0x7c] sm:$0xf]  ;;  %v4744_v8 = vld [vmem:[%s5928_s17 + $0x84] sm:$0xf0] }
 0x21a   : > { %1318 = vmatpush.bf16.msra.mxu1 %v4771_v62  ;;  %5093 = vmatpush.bf16.msra.mxu2 %v4771_v62  ;;  %v4743_v44 = vor.u32 %v5012_v43, %v4742_v6  ;;  %v4747_v38 = vor.u32 %v5011_v7, %v4744_v8  ;;  %v4730_v9 = vld [vmem:[%s5928_s17 + $0x60] sm:$0xf]  ;;  %v5009_v10 = vld [vmem:[%s5928_s17 + $0x68] sm:$0xf0]  ;;  %v5008_v11 = vld [vmem:[%s5928_s17 + $0x64] sm:$0xf] }
 0x21b   : > { %v4732_v12 = vld [vmem:[%s5928_s17 + $0x6c] sm:$0xf0]  ;;  %v4731_v13 = vor.u32 %v5009_v10, %v4730_v9  ;;  %v4718_v14 = vld [vmem:[%s5928_s17 + $0x48] sm:$0xf]  ;;  %v5006_v15 = vld [vmem:[%s5928_s17 + $0x50] sm:$0xf0] }
 0x21c   : > { %v4735_v16 = vor.u32 %v5008_v11, %v4732_v12  ;;  %v5005_v17 = vld [vmem:[%s5928_s17 + $0x4c] sm:$0xf]  ;;  %v4720_v18 = vld [vmem:[%s5928_s17 + $0x54] sm:$0xf0]  ;;  %v4719_v20 = vor.u32 %v5006_v15, %v4718_v14  ;;  %v4706_v21 = vld [vmem:[%s5928_s17 + $0x30] sm:$0xf] }
 0x21d   : > { %1290 = vmatpush.bf16.msra.mxu0 %v4755_v3  ;;  %v4723_v19 = vor.u32 %v5005_v17, %v4720_v18  ;;  %v5003_v22 = vld [vmem:[%s5928_s17 + $0x38] sm:$0xf0]  ;;  %v5002_v23 = vld [vmem:[%s5928_s17 + $0x34] sm:$0xf]  ;;  %v4708_v24 = vld [vmem:[%s5928_s17 + $0x3c] sm:$0xf0] }
 0x21e   : > { %1319 = vmatpush.bf16.msra.mxu1 %v4759_v4  ;;  %5094 = vmatpush.bf16.msra.mxu2 %v4759_v4  ;;  %v4707_v25 = vor.u32 %v5003_v22, %v4706_v21  ;;  %v4711_v26 = vor.u32 %v5002_v23, %v4708_v24  ;;  %v4694_v52 = vld [vmem:[%s5928_s17 + $0x18] sm:$0xf]  ;;  %v5000_v27 = vld [vmem:[%s5928_s17 + $0x20] sm:$0xf0]  ;;  %v4999_v28 = vld [vmem:[%s5928_s17 + $0x1c] sm:$0xf] }
 0x21f   : > { %v4696_v53 = vld [vmem:[%s5928_s17 + $0x24] sm:$0xf0]  ;;  %v4695_v29 = vor.u32 %v5000_v27, %v4694_v52  ;;  %v4682_v31 = vld [vmem:[%s5928_s17] sm:$0xf]  ;;  %v4997_v32 = vld [vmem:[%s5928_s17 + $0x8] sm:$0xf0] }
 0x220   : > { %v4699_v30 = vor.u32 %v4999_v28, %v4696_v53  ;;  %v4996_v33 = vld [vmem:[%s5928_s17 + $0x4] sm:$0xf]  ;;  %v4684_v34 = vld [vmem:[%s5928_s17 + $0xc] sm:$0xf0]  ;;  %v4683_v35 = vor.u32 %v4997_v32, %v4682_v31  ;;  %v1113_v42 = vld [vmem:[#allocation2 + $0x8] sm:$0xff]  ;;  %s5684_s25 = smov 64  }
 0x221   : > { %1291 = vmatpush.bf16.msra.mxu0 %v4743_v44  ;;  %v1109_v37 = vld [vmem:[#allocation2 + $0x30] sm:$0xff]  ;;  %v1110_v39 = vld [vmem:[#allocation2] sm:$0xff]  ;;  %v4687_v40 = vor.u32 %v4996_v33, %v4684_v34  ;;  %v5019_v41 = vld [vmem:[%s5928_s17 + $0xb8] sm:$0xf0]  ;;  %vm1580_vm10 = vcmask 261120   ;;  %vm2713_vm11 = vcmask 523520  }
 0x222   : > { %1320 = vmatpush.bf16.msra.mxu1 %v4747_v38  ;;  %5095 = vmatpush.bf16.msra.mxu2 %v4747_v38  ;;  %v1114_v36 = vld [vmem:[#allocation2 + $0x20] sm:$0xff]  ;;  %v1117_v45 = vpack.c.bf16 %v1110_v39, %v1109_v37  ;;  %v4774_v48 = vld [vmem:[%s5928_s17 + $0xb0] sm:$0xf]  ;;  %v4762_v49 = vld [vmem:[%s5928_s17 + $0x98] sm:$0xf]  ;;  %vm2754_vm12 = vcmask 785920  }
 0x223   : > { %v1119_v47 = vpack.c.bf16 %v1114_v36, %v1113_v42  ;;  %v4775_v63 = vor.u32 %v5019_v41, %v4774_v48  ;;  %v5016_v58 = vld [vmem:[%s5928_s17 + $0xa0] sm:$0xf0]  ;;  %v4750_v0 = vld [vmem:[%s5928_s17 + $0x80] sm:$0xf]  ;;  %v5013_v54 = vld [vmem:[%s5928_s17 + $0x88] sm:$0xf0] }
 0x224   : > { %v4763_v50 = vor.u32 %v5016_v58, %v4762_v49  ;;  %v4751_v55 = vor.u32 %v5013_v54, %v4750_v0  ;;  %v4738_v56 = vld [vmem:[%s5928_s17 + $0x68] sm:$0xf]  ;;  %v5010_v57 = vld [vmem:[%s5928_s17 + $0x70] sm:$0xf0]  ;;  %v1111_v59 = vld [vmem:[#allocation2 + $0x18] sm:$0xff]  ;;  %vm2795_vm13 = vcmask 1048320  }
 0x225   : > { %1292 = vmatpush.bf16.msra.mxu0 %v4731_v13  ;;  %v1112_v5 = vld [vmem:[#allocation2 + $0x10] sm:$0xff]  ;;  %v1115_v46 = vld [vmem:[#allocation2 + $0x28] sm:$0xff]  ;;  %v1116_v60 = vld [vmem:[#allocation2 + $0x38] sm:$0xff]  ;;  %v4739_v51 = vor.u32 %v5010_v57, %v4738_v56  ;;  %s7947_s13 = sld [smem:[#allocation37_spill]]  ;;  %p4984_p10 = scmp.ne.s32.totalorder %s5658_s0, 1 }
 0x226   : > { %1321 = vmatpush.bf16.msra.mxu1 %v4735_v16  ;;  %5096 = vmatpush.bf16.msra.mxu2 %v4735_v16  ;;  %v1118_v61 = vpack.c.bf16 %v1112_v5, %v1111_v59  ;;  %v1120_v62 = vpack.c.bf16 %v1116_v60, %v1115_v46  ;;  %v4726_v1 = vld [vmem:[%s5928_s17 + $0x50] sm:$0xf]  ;;  %v5007_v2 = vld [vmem:[%s5928_s17 + $0x58] sm:$0xf0]  ;;  %v4714_v3 = vld [vmem:[%s5928_s17 + $0x38] sm:$0xf] }
 0x227   : > { %v4727_v4 = vor.u32 %v5007_v2, %v4726_v1  ;;  %v5004_v6 = vld [vmem:[%s5928_s17 + $0x40] sm:$0xf0]  ;;  %v4702_v7 = vld [vmem:[%s5928_s17 + $0x20] sm:$0xf]  ;;  %v5001_v8 = vld [vmem:[%s5928_s17 + $0x28] sm:$0xf0] }
 0x228   : > { %v4715_v43 = vor.u32 %v5004_v6, %v4714_v3  ;;  %v4703_v44 = vor.u32 %v5001_v8, %v4702_v7  ;;  %v4690_v38 = vld [vmem:[%s5928_s17 + $0x8] sm:$0xf]  ;;  %v4998_v9 = vld [vmem:[%s5928_s17 + $0x10] sm:$0xf0]  ;;  %v6186_v11 = vld [vmem:[%s5964_s11] sm:$0x7] }
 0x229   : > { %1293 = vmatpush.bf16.msra.mxu0 %v4719_v20  ;;  %v4691_v10 = vor.u32 %v4998_v9, %v4690_v38  ;;  %v6189_v12 = vperm.slane %v6186_v11, 0  ;;  %v1156_v13 = vperm.slane %v6186_v11, 1  ;;  %s5683_s17 = smov 96   ;;  %s5685_s11 = smov 32  }
 0x22a   : > { %1322 = vmatpush.bf16.msra.mxu1 %v4723_v19  ;;  %5097 = vmatpush.bf16.msra.mxu2 %v4723_v19 }
 0x22b   : > { %s7948_s29 = scalar_lea.vmem %s7947_s13, %s5948_s20 }
 0x22d   : > { %1294 = vmatpush.bf16.msra.mxu0 %v4707_v25 }
 0x22e   : > { %1323 = vmatpush.bf16.msra.mxu1 %v4711_v26  ;;  %5098 = vmatpush.bf16.msra.mxu2 %v4711_v26 }
 0x231   : > { %1295 = vmatpush.bf16.msra.mxu0 %v4695_v29 }
 0x232   : > { %1324 = vmatpush.bf16.msra.mxu1 %v4699_v30  ;;  %5099 = vmatpush.bf16.msra.mxu2 %v4699_v30 }
 0x235   : > { %1296 = vmatpush.bf16.msra.mxu0 %v4683_v35 }
 0x236   : > { %1325 = vmatpush.bf16.msra.mxu1 %v4687_v40  ;;  %5100 = vmatpush.bf16.msra.mxu2 %v4687_v40 }
 0x238   : > { %1297 = vmatmul.bf16.vlgmr.msra.gmra.mxu0 %v1117_v45 }
 0x239   : > { %1326 = vmatmul.bf16.vlgmr.msra.gmra.mxu1 %v1117_v45  ;;  %1336 = vmatmul.bf16.vlgmr.msra.gmra.mxu2 %v1119_v47 }
 0x23a   : > { %1347 = vmatpush.bf16.msrb.mxu2 %v4775_v63 }
 0x23e   : > { %1348 = vmatpush.bf16.msrb.mxu2 %v4763_v50 }
 0x242   : > { %1349 = vmatpush.bf16.msrb.mxu2 %v4751_v55 }
 0x246   : > { %1350 = vmatpush.bf16.msrb.mxu2 %v4739_v51 }
 0x248   : > { %1302 = vmatmul.bf16.gmra.mxu0 %v1118_v61 }
 0x249   : > { %1331 = vmatmul.bf16.gmra.mxu1 %v1118_v61  ;;  %1341 = vmatmul.bf16.gmra.mxu2 %v1120_v62 }
 0x24a   : > { %1351 = vmatpush.bf16.msrb.mxu2 %v4727_v4 }
 0x24e   : > { %1352 = vmatpush.bf16.msrb.mxu2 %v4715_v43 }
 0x252   : > { %1353 = vmatpush.bf16.msrb.mxu2 %v4703_v44 }
 0x256   : > { %1354 = vmatpush.bf16.msrb.mxu2 %v4691_v10 }
 0x258   : > { %1307 = vmatmul.bf16.gmra.mxu0 %v1119_v47 }
 0x259   : > { %1355 = vmatmul.bf16.vlgmr.msrb.gmra.mxu2 %v1117_v45 }
 0x268   : > { %1312 = vmatmul.bf16.gmra.mxu0 %v1120_v62 }
 0x269   : > { %1360 = vmatmul.bf16.gmra.mxu2 %v1118_v61 }
 0x279   : > { %1365 = vmatmul.bf16.gmra.mxu2 %v1119_v47 }
 0x289   : > { %1370 = vmatmul.bf16.gmra.mxu2 %v1120_v62 }
 0x2b5   : > { %v1298_v14 = vpop.f32.mrf.mxu0 }
 0x2b6   : > { %v1299_v15 = vadd.f32 %v1298_v14, %v6189_v12  ;;  %v1327_v16 = vpop.f32.mrf.mxu1 }
 0x2b7   : > { %v1328_v17 = vadd.f32 %v1327_v16, %v1156_v13 }
 0x2b8   : > { %v6193_v18 = vpack.c.bf16 %v1299_v15, %v1299_v15 }
 0x2b9   : > { %v1384_v20 = vpack.c.bf16 %v1328_v17, %v1328_v17 }
 0x2ba   : > { %1408 = vrot.lane.b32.xlu2 %v6193_v18, %s5683_s17  ;;  %v1568_v61 = vunpack.c.l.b16 %v6193_v18 }
 0x2bb   : > { %1480 = vrot.lane.b32.xlu0 %v1384_v20, %s5684_s25  ;;  %1464 = vrot.lane.b32.xlu1 %v1384_v20, %s5683_s17  ;;  %v1574_v55 = vunpack.c.l.b16 %v1384_v20 }
 0x2bc   : > { %v1337_v19 = vpop.f32.mrf.mxu2 }
 0x2bd   : > { %v1338_v21 = vadd.f32 %v1337_v19, %v1156_v13  ;;  %v1300_v24 = vpop.f32.mrf.mxu0  ;;  %v6258_v19 = vperm.slane %v6186_v11, 2 }
 0x2be   : > { %v1329_v22 = vpop.f32.mrf.mxu1  ;;  %v1301_v25 = vadd.f32 %v1300_v24, %v6189_v12 }
 0x2bf   : > { %v1388_v23 = vpack.c.bf16 %v1338_v21, %v1338_v21  ;;  %v1330_v30 = vadd.f32 %v1329_v22, %v1156_v13 }
 0x2c0   : > { %v1377_v27 = vpack.c.bf16 %v1301_v25, %v1301_v25 }
 0x2c1   : > { %v1385_v37 = vpack.c.bf16 %v1330_v30, %v1330_v30  ;;  %v1618_v1 = vunpack.c.l.b16 %v1388_v23 }
 0x2c2   : > { %1472 = vrot.lane.b32.xlu2 %v1388_v23, %s5683_s17  ;;  %v1569_v62 = vunpack.c.l.b16 %v1377_v27 }
 0x2c3   : > { %1488 = vrot.lane.b32.xlu0 %v1388_v23, %s5684_s25  ;;  %1496 = vrot.lane.b32.xlu1 %v1384_v20, %s5685_s11  ;;  %v1575_v63 = vunpack.c.l.b16 %v1385_v37 }
 0x2c4   : > { %v1339_v26 = vpop.f32.mrf.mxu2  ;;  %v1572_v3 = vpack.c.b16 %v1569_v62, %v1568_v61 }
 0x2c5   : > { %v1340_v52 = vadd.f32 %v1339_v26, %v1156_v13  ;;  %v1303_v42 = vpop.f32.mrf.mxu0  ;;  %v1578_v57 = vpack.c.b16 %v1575_v63, %v1574_v55 }
 0x2c6   : > { %v1332_v28 = vpop.f32.mrf.mxu1  ;;  %v1304_v36 = vadd.f32 %v1303_v42, %v6189_v12 }
 0x2c7   : > { %v6203_v53 = vpack.c.bf16 %v1340_v52, %v1340_v52  ;;  %v1333_v29 = vadd.f32 %v1332_v28, %v1156_v13  ;;  %v1588_v60 = vsel %vm1580_vm10, %v1578_v57, 0 }
 0x2c8   : > { %v1378_v58 = vpack.c.bf16 %v1304_v36, %v1304_v36 }
 0x2c9   : > { %v1386_v32 = vpack.c.bf16 %v1333_v29, %v1333_v29  ;;  %v1619_v51 = vunpack.c.l.b16 %v6203_v53 }
 0x2ca   : > { %1410 = vrot.lane.b32.xlu2 %v1377_v27, %s5683_s17  ;;  %v1570_v44 = vunpack.c.l.b16 %v1378_v58 }
 0x2cb   : > { %1474 = vrot.lane.b32.xlu0 %v6203_v53, %s5683_s17  ;;  %1440 = vrot.lane.b32.xlu1 %v6193_v18, %s5685_s11  ;;  %v1576_v40 = vunpack.c.l.b16 %v1386_v32  ;;  %v1622_v2 = vpack.c.b16 %v1619_v51, %v1618_v1 }
 0x2cc   : > { %v1342_v31 = vpop.f32.mrf.mxu2 }
 0x2cd   : > { %v1343_v35 = vadd.f32 %v1342_v31, %v1156_v13  ;;  %v1305_v5 = vpop.f32.mrf.mxu0  ;;  %v1631_v6 = vsel %vm1580_vm10, %v1622_v2, 0 }
 0x2ce   : > { %v1334_v33 = vpop.f32.mrf.mxu1  ;;  %v1306_v43 = vadd.f32 %v1305_v5, %v6189_v12 }
 0x2cf   : > { %v1335_v34 = vadd.f32 %v1334_v33, %v1156_v13  ;;  %v6214_v45 = vpack.c.bf16 %v1343_v35, %v1343_v35 }
 0x2d0   : > { %v1379_v7 = vpack.c.bf16 %v1306_v43, %v1306_v43 }
 0x2d1   : > { %v6210_v39 = vpack.c.bf16 %v1335_v34, %v1335_v34  ;;  %v1620_v54 = vunpack.c.l.b16 %v6214_v45 }
 0x2d2   : > { %1498 = vrot.lane.b32.xlu2 %v1385_v37, %s5685_s11  ;;  %v1571_v38 = vunpack.c.l.b16 %v1379_v7 }
 0x2d3   : > { %1468 = vrot.lane.b32.xlu0 %v1386_v32, %s5683_s17  ;;  %1424 = vrot.lane.b32.xlu1 %v6193_v18, %s5684_s25  ;;  %v1577_v47 = vunpack.c.l.b16 %v6210_v39 }
 0x2d4   : > { %v1344_v48 = vpop.f32.mrf.mxu2  ;;  %v1573_v9 = vpack.c.b16 %v1571_v38, %v1570_v44 }
 0x2d5   : > { %v1345_v41 = vadd.f32 %v1344_v48, %v1156_v13  ;;  %v1579_v49 = vpack.c.b16 %v1577_v47, %v1576_v40  ;;  %v1308_v4 = vpop.f32.mrf.mxu0 }
 0x2d6   : > { %v1309_v10 = vadd.f32 %v1308_v4, %v6189_v12 }
 0x2d7   : > { %v6220_v50 = vpack.c.bf16 %v1345_v41, %v1345_v41  ;;  %v1591_v0 = vsel %vm1580_vm10, %v1579_v49, 0 }
 0x2d8   : > { %1599 = vmatpush.bf16.xpose.msra.mxu3 %v1591_v0  ;;  %v1380_v15 = vpack.c.bf16 %v1309_v10, %v1309_v10 }
 0x2d9   : > { %v1621_v56 = vunpack.c.l.b16 %v6220_v50 }
 0x2da   : > { %1442 = vrot.lane.b32.xlu2 %v1377_v27, %s5685_s11  ;;  %v1612_v18 = vunpack.c.l.b16 %v1380_v15 }
 0x2db   : > { %1412 = vrot.lane.b32.xlu0 %v1378_v58, %s5683_s17  ;;  %1504 = vrot.lane.b32.xlu1 %v1388_v23, %s5685_s11  ;;  %v1623_v59 = vpack.c.b16 %v1621_v56, %v1620_v54 }
 0x2dc   : > { %v1356_v17 = vpop.f32.mrf.mxu2 }
 0x2dd   : > { %v1634_v46 = vsel %vm1580_vm10, %v1623_v59, 0  ;;  %v1310_v8 = vpop.f32.mrf.mxu0  ;;  %v1357_v23 = vadd.f32 %v1356_v17, %v6258_v19 }
 0x2de   : > { %v1311_v13 = vadd.f32 %v1310_v8, %v6189_v12 }
 0x2df   : > { %v1392_v11 = vpack.c.bf16 %v1357_v23, %v1357_v23 }
 0x2e0   : > { %1600 = vmatpush.bf16.xpose.msra.mxu3 %v1588_v60  ;;  %v1381_v16 = vpack.c.bf16 %v1311_v13, %v1311_v13 }
 0x2e1   : > { %v2339_v29 = vunpack.c.l.b16 %v1392_v11 }
 0x2e2   : > { %1426 = vrot.lane.b32.xlu2 %v1377_v27, %s5684_s25  ;;  %v1613_v20 = vunpack.c.l.b16 %v1381_v16 }
 0x2e3   : > { %1484 = vrot.lane.b32.xlu0 %v1386_v32, %s5684_s25  ;;  %1466 = vrot.lane.b32.xlu1 %v1385_v37, %s5683_s17 }
 0x2e4   : > { %v1616_v21 = vpack.c.b16 %v1613_v20, %v1612_v18  ;;  %v1358_v24 = vpop.f32.mrf.mxu2 }
 0x2e5   : > { %v1313_v14 = vpop.f32.mrf.mxu0  ;;  %v1359_v52 = vadd.f32 %v1358_v24, %v6258_v19 }
 0x2e6   : > { %v1314_v25 = vadd.f32 %v1313_v14, %v6189_v12 }
 0x2e7   : > { %4776 = vmatmul.msk.bf16.vlgmr.msra.gmra.mxu3 %vm1580_vm10, %v1572_v3  ;;  %v1393_v27 = vpack.c.bf16 %v1359_v52, %v1359_v52 }
 0x2e8   : > { %1642 = vmatpush.bf16.xpose.msrb.mxu3 %v1634_v46  ;;  %v1382_v28 = vpack.c.bf16 %v1314_v25, %v1314_v25 }
 0x2e9   : > { %v2340_v30 = vunpack.c.l.b16 %v1393_v27 }
 0x2ea   : > { %1506 = vrot.lane.b32.xlu2 %v6203_v53, %s5685_s11 }
 0x2eb   : > { %1508 = vrot.lane.b32.xlu0 %v6214_v45, %s5685_s11  ;;  %1482 = vrot.lane.b32.xlu1 %v1385_v37, %s5684_s25  ;;  %v6273_v31 = vpack.c.b16 %v2340_v30, %v2339_v29 }
 0x2ec   : > { %v1361_v37 = vpop.f32.mrf.mxu2 }
 0x2ed   : > { %v1315_v22 = vpop.f32.mrf.mxu0  ;;  %v1362_v47 = vadd.f32 %v1361_v37, %v6258_v19 }
 0x2ee   : > { %v1316_v26 = vadd.f32 %v1315_v22, %v6189_v12  ;;  %v1614_v12 = vunpack.c.l.b16 %v1382_v28 }
 0x2f0   : > { %1643 = vmatpush.bf16.xpose.msrb.mxu3 %v1631_v6 }
 0x2f2   : > { %1500 = vrot.lane.b32.xlu2 %v1386_v32, %s5685_s11 }
 0x2f3   : > { %1470 = vrot.lane.b32.xlu0 %v6210_v39, %s5683_s17  ;;  %1490 = vrot.lane.b32.xlu1 %v6203_v53, %s5684_s25  ;;  %v1383_v53 = vpack.c.bf16 %v1316_v26, %v1316_v26 }
 0x2f4   : > { %v1363_v40 = vpop.f32.mrf.mxu2 }
 0x2f5   : > { %v1615_v32 = vunpack.c.l.b16 %v1383_v53  ;;  %v1364_v60 = vadd.f32 %v1363_v40, %v6258_v19 }
 0x2f7   : > { %4777 = vmatmul.msk.bf16.gmra.mxu3 %vm1580_vm10, %v1573_v9  ;;  %v1617_v33 = vpack.c.b16 %v1615_v32, %v1614_v12  ;;  %v6344_v2 = vpack.c.bf16 %v1364_v60, %v1364_v60 }
 0x2fa   : > { %1428 = vrot.lane.b32.xlu2 %v1378_v58, %s5684_s25 }
 0x2fb   : > { %1502 = vrot.lane.b32.xlu0 %v6210_v39, %s5685_s11  ;;  %1444 = vrot.lane.b32.xlu1 %v1378_v58, %s5685_s11  ;;  %v6312_v58 = vpack.c.bf16 %v1362_v47, %v1362_v47 }
 0x2fc   : > { %v1366_v48 = vpop.f32.mrf.mxu2 }
 0x2fd   : > { %v1367_v46 = vadd.f32 %v1366_v48, %v6258_v19 }
 0x2ff   : > { %v6342_v1 = vpack.c.bf16 %v1367_v46, %v1367_v46 }
 0x302   : > { %1476 = vrot.lane.b32.xlu2 %v6214_v45, %s5683_s17 }
 0x303   : > { %1430 = vrot.lane.b32.xlu0 %v1379_v7, %s5684_s25  ;;  %1414 = vrot.lane.b32.xlu1 %v1379_v7, %s5683_s17 }
 0x304   : > { %v1368_v0 = vpop.f32.mrf.mxu2 }
 0x305   : > { %v1369_v14 = vadd.f32 %v1368_v0, %v6258_v19 }
 0x307   : > { %4778 = vmatmul.msk.bf16.vlgmr.msrb.gmra.mxu3 %vm1580_vm10, %v1616_v21  ;;  %v6379_v20 = vpack.c.bf16 %v1369_v14, %v1369_v14 }
 0x30a   : > { %1492 = vrot.lane.b32.xlu2 %v6214_v45, %s5684_s25 }
 0x30b   : > { %1478 = vrot.lane.b32.xlu0 %v6220_v50, %s5683_s17  ;;  %1486 = vrot.lane.b32.xlu1 %v6210_v39, %s5684_s25 }
 0x30c   : > { %v1371_v5 = vpop.f32.mrf.mxu2 }
 0x30d   : > { %v1372_v4 = vadd.f32 %v1371_v5, %v6258_v19 }
 0x30f   : > { %v6356_v44 = vpack.c.bf16 %v1372_v4, %v1372_v4 }
 0x312   : > { %1446 = vrot.lane.b32.xlu2 %v1379_v7, %s5685_s11 }
 0x313   : > { %1494 = vrot.lane.b32.xlu0 %v6220_v50, %s5684_s25  ;;  %1510 = vrot.lane.b32.xlu1 %v6220_v50, %s5685_s11 }
 0x314   : > { %v6280_v34 = vpop.permute.xlu2 %1408  ;;  %v1373_v3 = vpop.f32.mrf.mxu2 }
 0x315   : > { %v1374_v6 = vadd.f32 %v1373_v3, %v6258_v19  ;;  %v1655_v37 = vunpack.c.l.b16 %v6280_v34 }
 0x317   : > { %4779 = vmatmul.msk.bf16.gmra.mxu3 %vm1580_vm10, %v1617_v33  ;;  %v6358_v38 = vpack.c.bf16 %v1374_v6, %v1374_v6 }
 0x31a   : > { %1432 = vrot.lane.b32.xlu2 %v1380_v15, %s5684_s25 }
 0x31b   : > { %1416 = vrot.lane.b32.xlu0 %v1380_v15, %s5683_s17  ;;  %1418 = vrot.lane.b32.xlu1 %v1381_v16, %s5683_s17 }
 0x31c   : > { %v6286_v35 = vpop.permute.xlu2 %1472 }
 0x322   : > { %1552 = vrot.lane.b32.xlu2 %v1392_v11, %s5685_s11 }
 0x323   : > { %1448 = vrot.lane.b32.xlu0 %v1380_v15, %s5685_s11  ;;  %1450 = vrot.lane.b32.xlu1 %v1381_v16, %s5685_s11 }
 0x324   : > { %v6291_v39 = vpop.permute.xlu2 %1410 }
 0x325   : > { %v1656_v40 = vunpack.c.l.b16 %v6291_v39 }
 0x327   : > { %v1659_v5 = vpack.c.b16 %v1656_v40, %v1655_v37 }
 0x32a   : > { %1536 = vrot.lane.b32.xlu2 %v1392_v11, %s5684_s25 }
 0x32b   : > { %1520 = vrot.lane.b32.xlu0 %v1392_v11, %s5683_s17  ;;  %1522 = vrot.lane.b32.xlu1 %v1393_v27, %s5683_s17 }
 0x32c   : > { %v6296_v42 = vpop.permute.xlu2 %1498 }
 0x32d   : > { %v6298_v36 = vpop.permute.xlu0 %1480  ;;  %v6300_v45 = vpop.permute.xlu1 %1464  ;;  %v1834_v47 = vunpack.c.l.b16 %v6296_v42 }
 0x32e   : > { %v1661_v25 = vunpack.c.l.b16 %v6300_v45 }
 0x332   : > { %1436 = vrot.lane.b32.xlu2 %v1382_v28, %s5684_s25 }
 0x333   : > { %1434 = vrot.lane.b32.xlu0 %v1381_v16, %s5684_s25  ;;  %1554 = vrot.lane.b32.xlu1 %v1393_v27, %s5685_s11 }
 0x334   : > { %v6306_v41 = vpop.permute.xlu2 %1442 }
 0x335   : > { %v6308_v49 = vpop.permute.xlu0 %1488  ;;  %v6310_v63 = vpop.permute.xlu1 %1496 }
 0x336   : > { %v1833_v33 = vunpack.c.l.b16 %v6310_v63 }
 0x33a   : > { %1540 = vrot.lane.b32.xlu2 %v6312_v58, %s5684_s25 }
 0x33b   : > { %1538 = vrot.lane.b32.xlu0 %v1393_v27, %s5684_s25  ;;  %1420 = vrot.lane.b32.xlu1 %v1382_v28, %s5683_s17 }
 0x33c   : > { %v6318_v50 = vpop.permute.xlu2 %1426 }
 0x33d   : > { %v6320_v54 = vpop.permute.xlu0 %1474  ;;  %v6322_v55 = vpop.permute.xlu1 %1440 }
 0x33e   : > { %v1705_v14 = vunpack.c.l.b16 %v6320_v54 }
 0x342   : > { %1422 = vrot.lane.b32.xlu2 %v1383_v53, %s5683_s17 }
 0x343   : > { %1556 = vrot.lane.b32.xlu0 %v6312_v58, %s5685_s11  ;;  %1452 = vrot.lane.b32.xlu1 %v1382_v28, %s5685_s11 }
 0x344   : > { %v6328_v56 = vpop.permute.xlu2 %1506 }
 0x345   : > { %v1469_v57 = vpop.permute.xlu0 %1468  ;;  %v6330_v59 = vpop.permute.xlu1 %1424 }
 0x346   : > { %v1663_v18 = vunpack.c.l.b16 %v1469_v57  ;;  %v1837_v57 = vpack.c.b16 %v1834_v47, %v1833_v33  ;;  %v2342_v33 = vunpack.c.l.b16 %v6344_v2 }
 0x348   : > { %v1846_v63 = vsel %vm1580_vm10, %v1837_v57, 0 }
 0x34a   : > { %1454 = vrot.lane.b32.xlu2 %v1383_v53, %s5685_s11 }
 0x34b   : > { %1438 = vrot.lane.b32.xlu0 %v1383_v53, %s5684_s25  ;;  %1524 = vrot.lane.b32.xlu1 %v6312_v58, %s5683_s17 }
 0x34c   : > { %v1501_v51 = vpop.permute.xlu2 %1500 }
 0x34d   : > { %v6338_v61 = vpop.permute.xlu0 %1412  ;;  %v6340_v62 = vpop.permute.xlu1 %1504  ;;  %v1835_v11 = vunpack.c.l.b16 %v1501_v51 }
 0x34e   : > { %v1657_v54 = vunpack.c.l.b16 %v6338_v61 }
 0x352   : > { %1526 = vrot.lane.b32.xlu2 %v6344_v2, %s5683_s17 }
 0x353   : > { %1544 = vrot.lane.b32.xlu0 %v6342_v1, %s5684_s25  ;;  %1528 = vrot.lane.b32.xlu1 %v6342_v1, %s5683_s17 }
 0x354   : > { %v6354_v43 = vpop.permute.xlu2 %1428 }
 0x355   : > { %v1485_v7 = vpop.permute.xlu0 %1484  ;;  %v1467_v8 = vpop.permute.xlu1 %1466 }
 0x356   : > { %v1662_v23 = vunpack.c.l.b16 %v1467_v8  ;;  %v1749_v51 = vunpack.c.l.b16 %v1485_v7  ;;  %v1747_v7 = vunpack.c.l.b16 %v6298_v36  ;;  %v2341_v36 = vunpack.c.l.b16 %v6312_v58 }
 0x358   : > { %v1665_v53 = vpack.c.b16 %v1662_v23, %v1661_v25  ;;  %v1704_v23 = vunpack.c.l.b16 %v6286_v35 }
 0x35a   : > { %1558 = vrot.lane.b32.xlu2 %v6344_v2, %s5685_s11  ;;  %v1674_v12 = vsel %vm1580_vm10, %v1665_v53, 0  ;;  %v1708_v53 = vpack.c.b16 %v1705_v14, %v1704_v23 }
 0x35b   : > { %1548 = vrot.lane.b32.xlu0 %v6356_v44, %s5684_s25  ;;  %1534 = vrot.lane.b32.xlu1 %v6358_v38, %s5683_s17 }
 0x35c   : > { %v1477_v9 = vpop.permute.xlu2 %1476  ;;  %v1717_v47 = vsel %vm1580_vm10, %v1708_v53, 0 }
 0x35d   : > { %v6366_v10 = vpop.permute.xlu0 %1508  ;;  %v6368_v13 = vpop.permute.xlu1 %1482  ;;  %v1706_v3 = vunpack.c.l.b16 %v1477_v9 }
 0x362   : > { %1542 = vrot.lane.b32.xlu2 %v6344_v2, %s5684_s25  ;;  %v2344_v2 = vpack.c.b16 %v2342_v33, %v2341_v36 }
 0x363   : > { %1550 = vrot.lane.b32.xlu1 %v6358_v38, %s5684_s25 }
 0x364   : > { %v6375_v15 = vpop.permute.xlu2 %1492 }
 0x365   : > { %v1471_v16 = vpop.permute.xlu0 %1470  ;;  %v6377_v17 = vpop.permute.xlu1 %1490  ;;  %v1792_v35 = vunpack.c.l.b16 %v6375_v15 }
 0x366   : > { %v1664_v21 = vunpack.c.l.b16 %v1471_v16  ;;  %v1748_v16 = vunpack.c.l.b16 %v6368_v13  ;;  %v1878_v13 = vunpack.c.l.b16 %v6366_v10  ;;  %v1791_v58 = vunpack.c.l.b16 %v6377_v17 }
 0x368   : > { %v1666_v22 = vpack.c.b16 %v1664_v21, %v1663_v18 }
 0x36a   : > { %v6381_v24 = vpop.f32.mrf.mxu3  ;;  %1530 = vrot.lane.b32.xlu2 %v6379_v20, %s5683_s17  ;;  %v1677_v19 = vsel %vm1580_vm10, %v1666_v22, 0 }
 0x36b   : > { %1685 = vmatpush.bf16.xpose.msra.mxu3 %v1677_v19 }
 0x36c   : > { %v6387_v26 = vpop.permute.xlu2 %1446 }
 0x36d   : > { %v1503_v52 = vpop.permute.xlu0 %1502  ;;  %v6389_v27 = vpop.permute.xlu1 %1444 }
 0x36e   : > { %v1836_v28 = vunpack.c.l.b16 %v1503_v52 }
 0x370   : > { %v1838_v29 = vpack.c.b16 %v1836_v28, %v1835_v11 }
 0x372   : > { %v6391_v30 = vpop.f32.mrf.mxu3  ;;  %1532 = vrot.lane.b32.xlu2 %v6356_v44, %s5683_s17  ;;  %v1849_v32 = vsel %vm1580_vm10, %v1838_v29, 0 }
 0x373   : > { %1686 = vmatpush.bf16.xpose.msra.mxu3 %v1674_v12 }
 0x374   : > { %v6400_v45 = vpop.permute.xlu2 %1432 }
 0x375   : > { %v6403_v48 = vpop.permute.xlu0 %1430  ;;  %v1415_v0 = vpop.permute.xlu1 %1414 }
 0x376   : > { %v1658_v9 = vunpack.c.l.b16 %v1415_v0 }
 0x378   : > { %v1660_v37 = vpack.c.b16 %v1658_v9, %v1657_v54  ;;  %v2383_v9 = vunpack.c.l.b16 %v6379_v20  ;;  %v1827_v54 = vunpack.c.l.b16 %v6322_v55 }
 0x37a   : > { %v6405_v46 = vpop.f32.mrf.mxu3  ;;  %4780 = vmatmul.msk.bf16.vlgmr.msra.gmra.mxu3 %vm1580_vm10, %v1659_v5  ;;  %v1876_v5 = vunpack.c.l.b16 %v6340_v62  ;;  %v2385_v62 = vunpack.c.l.b16 %v6358_v38 }
 0x37b   : > { %1857 = vmatpush.bf16.xpose.msrb.mxu3 %v1849_v32  ;;  %v1751_v32 = vpack.c.b16 %v1748_v16, %v1747_v7 }
 0x37c   : > { %v6409_v34 = vpop.permute.xlu2 %1552 }
 0x37d   : > { %v1479_v39 = vpop.permute.xlu0 %1478  ;;  %v1487_v60 = vpop.permute.xlu1 %1486  ;;  %v1760_v0 = vsel %vm1580_vm10, %v1751_v32, 0  ;;  %v1744_v32 = vunpack.c.l.b16 %v6403_v48 }
 0x37e   : > { %v1707_v4 = vunpack.c.l.b16 %v1479_v39  ;;  %v1750_v42 = vunpack.c.l.b16 %v1487_v60  ;;  %v1741_v39 = vunpack.c.l.b16 %v6330_v59  ;;  %v2384_v60 = vunpack.c.l.b16 %v6356_v44 }
 0x37f   : > { %v1742_v59 = vunpack.c.l.b16 %v6318_v50  ;;  %v2382_v50 = vunpack.c.l.b16 %v6342_v1 }
 0x380   : > { %v1709_v6 = vpack.c.b16 %v1707_v4, %v1706_v3  ;;  %v1752_v8 = vpack.c.b16 %v1750_v42, %v1749_v51  ;;  %v1790_v3 = vunpack.c.l.b16 %v6308_v49  ;;  %v1877_v4 = vunpack.c.l.b16 %v6328_v56 }
 0x381   : > { %v2387_v49 = vpack.c.b16 %v2385_v62, %v2384_v60  ;;  %v2386_v53 = vpack.c.b16 %v2383_v9, %v2382_v50 }
 0x382   : > { %v1609_v18 = vpop.f32.mrf.mxu3  ;;  %v1720_v21 = vsel %vm1580_vm10, %v1709_v6, 0  ;;  %v1763_v22 = vsel %vm1580_vm10, %v1752_v8, 0  ;;  %v1794_v16 = vpack.c.b16 %v1791_v58, %v1790_v3  ;;  %v1784_v58 = vunpack.c.l.b16 %v6400_v45 }
 0x383   : > { %1858 = vmatpush.bf16.xpose.msrb.mxu3 %v1846_v63  ;;  %v6416_v19 = vmul.f32 0.17677669, %v1609_v18  ;;  %1728 = vmatpush.bf16.xpose.msrb.mxu0 %v1720_v21  ;;  %v1880_v18 = vpack.c.b16 %v1877_v4, %v1876_v5  ;;  %v1745_v21 = vpack.c.b16 %v1742_v59, %v1741_v39 }
 0x384   : > { %1771 = vmatpush.bf16.xpose.msrb.mxu1 %v1763_v22  ;;  %v6419_v25 = vpop.permute.xlu2 %1536  ;;  %v1803_v23 = vsel %vm1580_vm10, %v1794_v16, 0 }
 0x385   : > { %v1495_v52 = vpop.permute.xlu0 %1494  ;;  %v1511_v11 = vpop.permute.xlu1 %1510  ;;  %v1954_v28 = vsel %vm1580_vm10, %v6416_v19, -inf  ;;  %v1889_v7 = vsel %vm1580_vm10, %v1880_v18, 0 }
 0x386   : > { %v1793_v29 = vunpack.c.l.b16 %v1495_v52  ;;  %v1879_v12 = vunpack.c.l.b16 %v1511_v11  ;;  %1955 = vmax.xlane.f32.xlu0 %v1954_v28  ;;  %v1828_v11 = vunpack.c.l.b16 %v6306_v41  ;;  %v6463_v28 = vmul.f32 0.17677669, %v6381_v24 }
 0x388   : > { %v1795_v61 = vpack.c.b16 %v1793_v29, %v1792_v35  ;;  %v1881_v40 = vpack.c.b16 %v1879_v12, %v1878_v13  ;;  %v1831_v35 = vpack.c.b16 %v1828_v11, %v1827_v54  ;;  %v1945_v55 = vsel %vm1580_vm10, %v6463_v28, -inf }
 0x38a   : > { %v1645_v10 = vpop.f32.mrf.mxu3  ;;  %4781 = vmatmul.msk.bf16.gmra.mxu3 %vm1580_vm10, %v1660_v37  ;;  %v1806_v15 = vsel %vm1580_vm10, %v1795_v61, 0  ;;  %v1892_v57 = vsel %vm1580_vm10, %v1881_v40, 0  ;;  %v1743_v37 = vunpack.c.l.b16 %v6354_v43  ;;  %v6479_v61 = vmul.f32 0.17677669, %v6391_v30 }
 0x38b   : > { %v6435_v63 = vmul.f32 0.17677669, %v1645_v10  ;;  %1729 = vmatpush.bf16.xpose.msrb.mxu0 %v1717_v47  ;;  %1814 = vmatpush.bf16.xpose.msra.mxu2 %v1806_v15  ;;  %v1830_v15 = vunpack.c.l.b16 %v6387_v26 }
 0x38c   : > { %1772 = vmatpush.bf16.xpose.msrb.mxu1 %v1760_v0  ;;  %v6439_v51 = vpop.permute.xlu2 %1436  ;;  %v1746_v40 = vpack.c.b16 %v1744_v32, %v1743_v37  ;;  %v1948_v48 = vsel %vm1580_vm10, %v6479_v61, -inf  ;;  %v1829_v0 = vunpack.c.l.b16 %v6389_v27 }
 0x38d   : > { %v1417_v17 = vpop.permute.xlu0 %1416  ;;  %v1419_v42 = vpop.permute.xlu1 %1418  ;;  %v1957_v6 = vsel %vm1580_vm10, %v6435_v63, -inf }
 0x38e   : > { %v1698_v8 = vunpack.c.l.b16 %v1417_v17  ;;  %v1699_v14 = vunpack.c.l.b16 %v1419_v42  ;;  %1958 = vmax.xlane.f32.xlu1 %v1957_v6  ;;  %v1832_v60 = vpack.c.b16 %v1830_v15, %v1829_v0 }
 0x390   : > { %v1702_v22 = vpack.c.b16 %v1699_v14, %v1698_v8 }
 0x392   : > { %v1647_v56 = vpop.f32.mrf.mxu3  ;;  %4782 = vmatmul.msk.bf16.vlgmr.msrb.gmra.mxu0 %vm1580_vm10, %v1702_v22 }
 0x393   : > { %1900 = vmatpush.bf16.xpose.msra.mxu0 %v1892_v57  ;;  %4784 = vmatmul.msk.bf16.vlgmr.msrb.gmra.mxu1 %vm1580_vm10, %v1745_v21  ;;  %v6500_v17 = vmul.f32 0.17677669, %v1647_v56 }
 0x394   : > { %2359 = vmatpush.bf16.msra.mxu1 %v2344_v2  ;;  %1815 = vmatpush.bf16.xpose.msra.mxu2 %v1803_v23  ;;  %v6455_v13 = vpop.permute.xlu2 %1540  ;;  %v6494_v2 = vmul.f32 0.17677669, %v6405_v46 }
 0x395   : > { %v6459_v52 = vpop.permute.xlu1 %1450  ;;  %v1960_v6 = vsel %vm1580_vm10, %v6500_v17, -inf  ;;  %v2513_v22 = vunpack.c.l.b16 %v6455_v13 }
 0x396   : > { %v1951_v26 = vsel %vm1580_vm10, %v6494_v2, -inf  ;;  %v1871_v18 = vunpack.c.l.b16 %v6459_v52 }
 0x398   : > { %2360 = vmatpush.bf16.msra.mxu1 %v6273_v31  ;;  %v6457_v31 = vpop.permute.xlu0 %1448 }
 0x399   : > { %v1870_v16 = vunpack.c.l.b16 %v6457_v31  ;;  %v2511_v31 = vunpack.c.l.b16 %v6419_v25  ;;  %v2597_v25 = vunpack.c.l.b16 %v6409_v34 }
 0x39a   : > { %v1650_v29 = vpop.f32.mrf.mxu3  ;;  %4788 = vmatmul.msk.bf16.vlgmr.msrb.gmra.mxu3 %vm1580_vm10, %v1831_v35 }
 0x39b   : > { %1901 = vmatpush.bf16.xpose.msra.mxu0 %v1889_v7  ;;  %v6468_v12 = vmul.f32 0.17677669, %v1650_v29  ;;  %1946 = vmax.xlane.f32.xlu2 %v1945_v55  ;;  %v1786_v7 = vunpack.c.l.b16 %v6439_v51  ;;  %v1874_v35 = vpack.c.b16 %v1871_v18, %v1870_v16 }
 0x39c   : > { %2402 = vmatpush.bf16.msrb.mxu2 %v2387_v49  ;;  %v1423_v36 = vpop.permute.xlu2 %1422 }
 0x39d   : > { %v6473_v41 = vpop.permute.xlu1 %1522  ;;  %v1963_v24 = vsel %vm1580_vm10, %v6468_v12, -inf  ;;  %v1701_v45 = vunpack.c.l.b16 %v1423_v36 }
 0x39e   : > { %1964 = vmax.xlane.f32.xlu0 %v1963_v24  ;;  %v2426_v32 = vunpack.c.l.b16 %v6473_v41 }
 0x3a0   : > { %2403 = vmatpush.bf16.msrb.mxu2 %v2386_v53  ;;  %v6471_v33 = vpop.permute.xlu0 %1520 }
 0x3a1   : > { %v2425_v52 = vunpack.c.l.b16 %v6471_v33 }
 0x3a2   : > { %v1652_v10 = vpop.f32.mrf.mxu3 }
 0x3a3   : > { %4785 = vmatmul.msk.bf16.gmra.mxu1 %vm1580_vm10, %v1746_v40  ;;  %v6484_v47 = vmul.f32 0.17677669, %v1652_v10  ;;  %1949 = vmax.xlane.f32.xlu2 %v1948_v48  ;;  %v2429_v37 = vpack.c.b16 %v2426_v32, %v2425_v52 }
 0x3a4   : > { %v6488_v57 = vpop.permute.xlu2 %1454 }
 0x3a5   : > { %v1555_v30 = vpop.permute.xlu1 %1554  ;;  %v1966_v5 = vsel %vm1580_vm10, %v6484_v47, -inf }
 0x3a6   : > { %1967 = vmax.xlane.f32.xlu1 %v1966_v5  ;;  %v2598_v10 = vunpack.c.l.b16 %v1555_v30 }
 0x3a8   : > { %v1435_v43 = vpop.permute.xlu0 %1434  ;;  %v2601_v41 = vpack.c.b16 %v2598_v10, %v2597_v25 }
 0x3a9   : > { %v1785_v39 = vunpack.c.l.b16 %v1435_v43 }
 0x3aa   : > { %4789 = vmatmul.msk.bf16.gmra.mxu3 %vm1580_vm10, %v1832_v60 }
 0x3ab   : > { %v1788_v3 = vpack.c.b16 %v1785_v39, %v1784_v58  ;;  %1952 = vmax.xlane.f32.xlu2 %v1951_v26  ;;  %v1873_v58 = vunpack.c.l.b16 %v6488_v57 }
 0x3ac   : > { %v1527_v27 = vpop.permute.xlu2 %1526 }
 0x3ad   : > { %4786 = vmatmul.msk.bf16.vlgmr.msra.gmra.mxu2 %vm1580_vm10, %v1788_v3  ;;  %v1421_v62 = vpop.permute.xlu1 %1420  ;;  %v2428_v50 = vunpack.c.l.b16 %v1527_v27 }
 0x3ae   : > { %v1700_v46 = vunpack.c.l.b16 %v1421_v62 }
 0x3b0   : > { %v1539_v4 = vpop.permute.xlu0 %1538  ;;  %v1703_v42 = vpack.c.b16 %v1701_v45, %v1700_v46 }
 0x3b1   : > { %v2512_v11 = vunpack.c.l.b16 %v1539_v4 }
 0x3b2   : > { %4783 = vmatmul.msk.bf16.gmra.mxu0 %vm1580_vm10, %v1703_v42 }
 0x3b3   : > { %1961 = vmax.xlane.f32.xlu2 %v1960_v6  ;;  %v2515_v51 = vpack.c.b16 %v2512_v11, %v2511_v31 }
 0x3b4   : > { %v1559_v59 = vpop.permute.xlu2 %1558 }
 0x3b5   : > { %v1453_v14 = vpop.permute.xlu1 %1452  ;;  %v2600_v36 = vunpack.c.l.b16 %v1559_v59 }
 0x3b6   : > { %v1872_v0 = vunpack.c.l.b16 %v1453_v14 }
 0x3b8   : > { %v1557_v8 = vpop.permute.xlu0 %1556  ;;  %v1875_v26 = vpack.c.b16 %v1873_v58, %v1872_v0 }
 0x3b9   : > { %v2599_v13 = vunpack.c.l.b16 %v1557_v8 }
 0x3bb   : > { %v2602_v48 = vpack.c.b16 %v2600_v36, %v2599_v13 }
 0x3bc   : > { %v1543_v21 = vpop.permute.xlu2 %1542 }
 0x3bd   : > { %v1525_v56 = vpop.permute.xlu1 %1524  ;;  %v2514_v23 = vunpack.c.l.b16 %v1543_v21 }
 0x3be   : > { %v2427_v54 = vunpack.c.l.b16 %v1525_v56 }
 0x3bf   : > { %v2516_v53 = vpack.c.b16 %v2514_v23, %v2513_v22 }
 0x3c0   : > { %v1439_v49 = vpop.permute.xlu0 %1438  ;;  %v2430_v55 = vpack.c.b16 %v2428_v50, %v2427_v54 }
 0x3c1   : > { %v1787_v9 = vunpack.c.l.b16 %v1439_v49  ;;  %2531 = vmatpush.bf16.msrb.mxu1 %v2516_v53 }
 0x3c2   : > { %4790 = vmatmul.msk.bf16.vlgmr.msra.gmra.mxu0 %vm1580_vm10, %v1874_v35  ;;  %2445 = vmatpush.bf16.msra.mxu3 %v2430_v55 }
 0x3c3   : > { %v1789_v29 = vpack.c.b16 %v1787_v9, %v1786_v7 }
 0x3c4   : > { %v1531_v24 = vpop.permute.xlu2 %1530 }
 0x3c5   : > { %4787 = vmatmul.msk.bf16.gmra.mxu2 %vm1580_vm10, %v1789_v29  ;;  %2532 = vmatpush.bf16.msrb.mxu1 %v2515_v51  ;;  %v1529_v40 = vpop.permute.xlu1 %1528  ;;  %v2469_v3 = vunpack.c.l.b16 %v1531_v24 }
 0x3c6   : > { %2446 = vmatpush.bf16.msra.mxu3 %v2429_v37  ;;  %v2468_v60 = vunpack.c.l.b16 %v1529_v40 }
 0x3c8   : > { %v6515_v33 = vpop.permute.xlu0 %1544  ;;  %v2472_v34 = vpack.c.b16 %v2469_v3, %v2468_v60 }
 0x3ca   : > { %2617 = vmatpush.bf16.msrb.mxu3 %v2602_v48 }
 0x3cc   : > { %v1533_v15 = vpop.permute.xlu2 %1532 }
 0x3cd   : > { %v1535_v43 = vpop.permute.xlu1 %1534  ;;  %v2470_v5 = vunpack.c.l.b16 %v1533_v15 }
 0x3ce   : > { %2618 = vmatpush.bf16.msrb.mxu3 %v2601_v41  ;;  %v2471_v39 = vunpack.c.l.b16 %v1535_v43 }
 0x3d0   : > { %v2473_v30 = vpack.c.b16 %v2471_v39, %v2470_v5  ;;  %v1549_v27 = vpop.permute.xlu0 %1548 }
 0x3d1   : > { %v2556_v4 = vunpack.c.l.b16 %v1549_v27 }
 0x3d2   : > { %4791 = vmatmul.msk.bf16.gmra.mxu0 %vm1580_vm10, %v1875_v26 }
 0x3d3   : > { %2488 = vmatpush.bf16.msrb.mxu0 %v2473_v30 }
 0x3d5   : > { %v1551_v62 = vpop.permute.xlu1 %1550 }
 0x3d6   : > { %v2557_v45 = vunpack.c.l.b16 %v1551_v62 }
 0x3d7   : > { %2489 = vmatpush.bf16.msrb.mxu0 %v2472_v34 }
 0x3d8   : > { %v2559_v46 = vpack.c.b16 %v2557_v45, %v2556_v4 }
 0x3da   : > { %2574 = vmatpush.bf16.msra.mxu2 %v2559_v46 }
 0x3f9   : > { %v1956_v34 = vpop.xlane.xlu0 %1955 }
 0x3fd   : > { %v1688_v42 = vpop.f32.mrf.mxu3 }
 0x3fe   : > { %v6519_v6 = vmul.f32 0.17677669, %v1688_v42 }
 0x400   : > { %v1969_v57 = vsel %vm1580_vm10, %v6519_v6, -inf }
 0x401   : > { %1970 = vmax.xlane.f32.xlu0 %v1969_v57  ;;  %v2044_v57 = vsub.f32 %v6416_v19, %v1956_v34 }
 0x405   : > { %v1690_v22 = vpop.f32.mrf.mxu3 }
 0x406   : > { %v6531_v49 = vmul.f32 0.17677669, %v1690_v22  ;;  %v1959_v22 = vpop.xlane.xlu1 %1958 }
 0x408   : > { %v1972_v54 = vsel %vm1580_vm10, %v6531_v49, -inf }
 0x40d   : > { %v1693_v52 = vpop.f32.mrf.mxu3 }
 0x40e   : > { %v1947_v56 = vpop.xlane.xlu2 %1946  ;;  %v6549_v24 = vmul.f32 0.17677669, %v1693_v52 }
 0x40f   : > { %v1731_v59 = vpop.f32.mrf.mxu0  ;;  %v2041_v50 = vsub.f32 %v6463_v28, %v1947_v56 }
 0x410   : > { %v1774_v8 = vpop.f32.mrf.mxu1  ;;  %v6523_v14 = vmul.f32 0.17677669, %v1731_v59  ;;  %v1975_v48 = vsel %vm1580_vm10, %v6549_v24, -inf }
 0x411   : > { %v6525_v16 = vmul.f32 0.17677669, %v1774_v8  ;;  %v2073_v11 = vmul.f32 1.442695, %v2041_v50 }
 0x412   : > { %v1981_v21 = vsel %vm1580_vm10, %v6523_v14, -inf }
 0x413   : > { %v1993_v18 = vsel %vm1580_vm10, %v6525_v16, -inf  ;;  %1982 = vmax.xlane.f32.xlu1 %v1981_v21  ;;  %5256 = vpow2.f32 %v2073_v11  ;;  %v2079_v21 = vmul.f32 1.442695, %v2044_v57 }
 0x414   : > { %1994 = vmax.xlane.f32.xlu2 %v1993_v18 }
 0x416   : > { %v1950_v55 = vpop.xlane.xlu2 %1949 }
 0x417   : > { %v1733_v28 = vpop.f32.mrf.mxu0  ;;  %v2042_v32 = vsub.f32 %v6479_v61, %v1950_v55  ;;  %v1695_v61 = vpop.f32.mrf.mxu3 }
 0x418   : > { %v1776_v23 = vpop.f32.mrf.mxu1  ;;  %v6557_v25 = vmul.f32 0.17677669, %v1733_v28  ;;  %v6583_v18 = vmul.f32 0.17677669, %v1695_v61 }
 0x419   : > { %v6533_v7 = vmul.f32 0.17677669, %v1776_v23  ;;  %v6544_v31 = vpop.eup %5256  ;;  %v2075_v36 = vmul.f32 1.442695, %v2042_v32 }
 0x41a   : > { %v2137_v13 = vsel %vm1580_vm10, %v6544_v31, 0.0  ;;  %v1984_v5 = vsel %vm1580_vm10, %v6557_v25, -inf }
 0x41b   : > { %v1996_v9 = vsel %vm1580_vm10, %v6533_v7, -inf  ;;  %1973 = vmax.xlane.f32.xlu1 %v1972_v54  ;;  %5258 = vpow2.f32 %v2075_v36  ;;  %v2045_v54 = vsub.f32 %v6435_v63, %v1959_v22 }
 0x41c   : > { %1997 = vmax.xlane.f32.xlu0 %v1996_v9  ;;  %v1978_v9 = vsel %vm1580_vm10, %v6583_v18, -inf }
 0x41d   : > { %v2081_v28 = vmul.f32 1.442695, %v2045_v54 }
 0x41e   : > { %v1953_v3 = vpop.xlane.xlu2 %1952 }
 0x41f   : > { %v1860_v27 = vpop.f32.mrf.mxu3  ;;  %v2043_v62 = vsub.f32 %v6494_v2, %v1953_v3 }
 0x420   : > { %v1779_v53 = vpop.f32.mrf.mxu1  ;;  %v6585_v56 = vmul.f32 0.17677669, %v1860_v27  ;;  %v1968_v27 = vpop.xlane.xlu1 %1967 }
 0x421   : > { %v6540_v35 = vmul.f32 0.17677669, %v1779_v53  ;;  %v6561_v15 = vpop.eup %5258  ;;  %v2077_v8 = vmul.f32 1.442695, %v2043_v62 }
 0x422   : > { %v2140_v60 = vsel %vm1580_vm10, %v6561_v15, 0.0  ;;  %v2017_v53 = vsel %vm1580_vm10, %v6585_v56, -inf }
 0x423   : > { %v1999_v29 = vsel %vm1580_vm10, %v6540_v35, -inf  ;;  %5260 = vpow2.f32 %v2077_v8  ;;  %v1965_v8 = vpop.xlane.xlu0 %1964 }
 0x424   : > { %2000 = vmax.xlane.f32.xlu0 %v1999_v29  ;;  %5262 = vpow2.f32 %v2079_v21 }
 0x425   : > { %5264 = vpow2.f32 %v2081_v28 }
 0x427   : > { %v1862_v50 = vpop.f32.mrf.mxu3 }
 0x428   : > { %v1781_v39 = vpop.f32.mrf.mxu1  ;;  %v6634_v21 = vmul.f32 0.17677669, %v1862_v50 }
 0x429   : > { %v6569_v26 = vmul.f32 0.17677669, %v1781_v39  ;;  %v6598_v55 = vpop.eup %5260 }
 0x42a   : > { %v6600_v52 = vpop.eup %5262  ;;  %v2143_v63 = vsel %vm1580_vm10, %v6598_v55, 0.0  ;;  %v2020_v22 = vsel %vm1580_vm10, %v6634_v21, -inf }
 0x42b   : > { %v2002_v42 = vsel %vm1580_vm10, %v6569_v26, -inf  ;;  %v6612_v61 = vpop.eup %5264 }
 0x42c   : > { %2138 = vadd.xlane.f32.xlu0 %v2137_v13  ;;  %v2149_v39 = vsel %vm1580_vm10, %v6612_v61, 0.0 }
 0x42f   : > { %v1736_v40 = vpop.f32.mrf.mxu0  ;;  %v1865_v13 = vpop.f32.mrf.mxu3 }
 0x430   : > { %v1817_v51 = vpop.f32.mrf.mxu2  ;;  %v6571_v30 = vmul.f32 0.17677669, %v1736_v40  ;;  %v1962_v40 = vpop.xlane.xlu2 %1961 }
 0x431   : > { %v6551_v37 = vmul.f32 0.17677669, %v1817_v51  ;;  %v2146_v51 = vsel %vm1580_vm10, %v6600_v52, 0.0 }
 0x432   : > { %v1987_v46 = vsel %vm1580_vm10, %v6571_v30, -inf }
 0x433   : > { %v2005_v10 = vsel %vm1580_vm10, %v6551_v37, -inf }
 0x434   : > { %2006 = vmax.xlane.f32.xlu2 %v2005_v10  ;;  %1976 = vmax.xlane.f32.xlu0 %v1975_v48  ;;  %v6608_v10 = vmul.f32 0.17677669, %v1865_v13 }
 0x437   : > { %v1738_v43 = vpop.f32.mrf.mxu0  ;;  %v1867_v3 = vpop.f32.mrf.mxu3 }
 0x438   : > { %v1819_v41 = vpop.f32.mrf.mxu2  ;;  %v6573_v4 = vmul.f32 0.17677669, %v1738_v43 }
 0x439   : > { %v6559_v0 = vmul.f32 0.17677669, %v1819_v41  ;;  %v2046_v41 = vsub.f32 %v6500_v17, %v1962_v40  ;;  %v6625_v17 = vmul.f32 0.17677669, %v1867_v3 }
 0x43a   : > { %v1990_v59 = vsel %vm1580_vm10, %v6573_v4, -inf }
 0x43b   : > { %v2008_v58 = vsel %vm1580_vm10, %v6559_v0, -inf }
 0x43c   : > { %1985 = vmax.xlane.f32.xlu2 %v1984_v5  ;;  %2009 = vmax.xlane.f32.xlu1 %v2008_v58  ;;  %v2023_v5 = vsel %vm1580_vm10, %v6608_v10, -inf }
 0x43d   : > { %2141 = vadd.xlane.f32.xlu0 %v2140_v60  ;;  %v2083_v60 = vmul.f32 1.442695, %v2046_v41 }
 0x43f   : > { %v1903_v45 = vpop.f32.mrf.mxu0  ;;  %5266 = vpow2.f32 %v2083_v60 }
 0x440   : > { %v6621_v34 = vmul.f32 0.17677669, %v1903_v45 }
 0x444   : > { %1988 = vmax.xlane.f32.xlu2 %v1987_v46  ;;  %2003 = vmax.xlane.f32.xlu1 %v2002_v42  ;;  %v2048_v46 = vsub.f32 %v6484_v47, %v1968_v27  ;;  %v2029_v42 = vsel %vm1580_vm10, %v6621_v34, -inf  ;;  %v2047_v47 = vsub.f32 %v6468_v12, %v1965_v8 }
 0x445   : > { %1991 = vmax.xlane.f32.xlu0 %v1990_v59  ;;  %v2026_v59 = vsel %vm1580_vm10, %v6625_v17, -inf }
 0x446   : > { %v2087_v45 = vmul.f32 1.442695, %v2048_v46  ;;  %v2085_v54 = vmul.f32 1.442695, %v2047_v47 }
 0x447   : > { %v1905_v11 = vpop.f32.mrf.mxu0 }
 0x448   : > { %v1822_v2 = vpop.f32.mrf.mxu2  ;;  %v6596_v29 = vmul.f32 0.17677669, %v1905_v11  ;;  %5268 = vpow2.f32 %v2087_v45 }
 0x449   : > { %v6587_v23 = vmul.f32 0.17677669, %v1822_v2  ;;  %v6636_v2 = vpop.eup %5266  ;;  %5270 = vpow2.f32 %v2085_v54 }
 0x44a   : > { %v2032_v32 = vsel %vm1580_vm10, %v6596_v29, -inf }
 0x44b   : > { %v2011_v19 = vsel %vm1580_vm10, %v6587_v23, -inf }
 0x44c   : > { %2012 = vmax.xlane.f32.xlu2 %v2011_v19  ;;  %1979 = vmax.xlane.f32.xlu1 %v1978_v9  ;;  %v2152_v19 = vsel %vm1580_vm10, %v6636_v2, 0.0 }
 0x44d   : > { %2018 = vmax.xlane.f32.xlu0 %v2017_v53 }
 0x44e   : > { %v6645_v53 = vpop.eup %5268 }
 0x44f   : > { %v1908_v58 = vpop.f32.mrf.mxu0  ;;  %v2158_v12 = vsel %vm1580_vm10, %v6645_v53, 0.0  ;;  %v6651_v28 = vpop.eup %5270 }
 0x450   : > { %v1824_v36 = vpop.f32.mrf.mxu2  ;;  %v6623_v62 = vmul.f32 0.17677669, %v1908_v58 }
 0x451   : > { %v6610_v48 = vmul.f32 0.17677669, %v1824_v36 }
 0x452   : > { %v2035_v57 = vsel %vm1580_vm10, %v6623_v62, -inf }
 0x453   : > { %v2014_v43 = vsel %vm1580_vm10, %v6610_v48, -inf }
 0x454   : > { %2033 = vmax.xlane.f32.xlu2 %v2032_v32  ;;  %2144 = vadd.xlane.f32.xlu1 %v2143_v63  ;;  %v2155_v32 = vsel %vm1580_vm10, %v6651_v28, 0.0 }
 0x455   : > { %2147 = vadd.xlane.f32.xlu0 %v2146_v51 }
 0x457   : > { %v1910_v9 = vpop.f32.mrf.mxu0 }
 0x458   : > { %v6643_v11 = vmul.f32 0.17677669, %v1910_v9 }
 0x45a   : > { %v2038_v50 = vsel %vm1580_vm10, %v6643_v11, -inf }
 0x45c   : > { %2015 = vmax.xlane.f32.xlu1 %v2014_v43  ;;  %2024 = vmax.xlane.f32.xlu2 %v2023_v5 }
 0x45d   : > { %2150 = vadd.xlane.f32.xlu0 %v2149_v39 }
 0x464   : > { %2030 = vmax.xlane.f32.xlu1 %v2029_v42  ;;  %2036 = vmax.xlane.f32.xlu2 %v2035_v57 }
 0x465   : > { %2027 = vmax.xlane.f32.xlu0 %v2026_v59 }
 0x46c   : > { %2021 = vmax.xlane.f32.xlu1 %v2020_v22  ;;  %2153 = vadd.xlane.f32.xlu2 %v2152_v19 }
 0x474   : > { %2039 = vmax.xlane.f32.xlu1 %v2038_v50  ;;  %2159 = vadd.xlane.f32.xlu2 %v2158_v12  ;;  %v1971_v63 = vpop.xlane.xlu0 %1970 }
 0x475   : > { %v2049_v41 = vsub.f32 %v6519_v6, %v1971_v63 }
 0x477   : > { %v2089_v58 = vmul.f32 1.442695, %v2049_v41 }
 0x47c   : > { %2156 = vadd.xlane.f32.xlu1 %v2155_v32 }
 0x486   : > { %v1983_v36 = vpop.xlane.xlu1 %1982 }
 0x487   : > { %v1995_v13 = vpop.xlane.xlu2 %1994  ;;  %v2053_v40 = vsub.f32 %v6523_v14, %v1983_v36 }
 0x488   : > { %v2057_v51 = vsub.f32 %v6525_v16, %v1995_v13 }
 0x489   : > { %v2097_v5 = vmul.f32 1.442695, %v2053_v40 }
 0x48a   : > { %v2105_v43 = vmul.f32 1.442695, %v2057_v51 }
 0x48c   : > { %5272 = vpow2.f32 %v2105_v43 }
 0x48d   : > { %5274 = vpow2.f32 %v2097_v5 }
 0x48e   : > { %v1974_v60 = vpop.xlane.xlu1 %1973  ;;  %5276 = vpow2.f32 %v2089_v58 }
 0x48f   : > { %v1998_v39 = vpop.xlane.xlu0 %1997  ;;  %v2050_v3 = vsub.f32 %v6531_v49, %v1974_v60 }
 0x490   : > { %v2058_v46 = vsub.f32 %v6533_v7, %v1998_v39 }
 0x491   : > { %v2091_v42 = vmul.f32 1.442695, %v2050_v3 }
 0x492   : > { %v6659_v27 = vpop.eup %5272  ;;  %v2107_v57 = vmul.f32 1.442695, %v2058_v46 }
 0x493   : > { %v6662_v16 = vpop.eup %5274  ;;  %v2185_v6 = vsel %vm1580_vm10, %v6659_v27, 0.0  ;;  %5278 = vpow2.f32 %v2091_v42 }
 0x494   : > { %2186 = vadd.xlane.f32.xlu1 %v2185_v6  ;;  %v2173_v14 = vsel %vm1580_vm10, %v6662_v16, 0.0  ;;  %v6668_v49 = vpop.eup %5276  ;;  %5280 = vpow2.f32 %v2107_v57 }
 0x495   : > { %2174 = vadd.xlane.f32.xlu0 %v2173_v14  ;;  %v2161_v47 = vsel %vm1580_vm10, %v6668_v49, 0.0 }
 0x497   : > { %v2001_v59 = vpop.xlane.xlu0 %2000 }
 0x498   : > { %v2059_v45 = vsub.f32 %v6540_v35, %v2001_v59 }
 0x499   : > { %v6671_v8 = vpop.eup %5278 }
 0x49a   : > { %v2109_v7 = vmul.f32 1.442695, %v2059_v45  ;;  %v2164_v22 = vsel %vm1580_vm10, %v6671_v8, 0.0  ;;  %v6677_v9 = vpop.eup %5280 }
 0x49b   : > { %2165 = vadd.xlane.f32.xlu2 %v2164_v22  ;;  %v2188_v35 = vsel %vm1580_vm10, %v6677_v9, 0.0 }
 0x49c   : > { %5282 = vpow2.f32 %v2109_v7  ;;  %2162 = vadd.xlane.f32.xlu1 %v2161_v47 }
 0x49f   : > { %v2139_v19 = vpop.xlane.xlu0 %2138 }
 0x4a0   : > { %5284 = vrcp.f32 %v2139_v19 }
 0x4a2   : > { %v6679_v54 = vpop.eup %5282 }
 0x4a3   : > { %v2191_v50 = vsel %vm1580_vm10, %v6679_v54, 0.0 }
 0x4a4   : > { %2189 = vadd.xlane.f32.xlu1 %v2188_v35  ;;  %2192 = vadd.xlane.f32.xlu2 %v2191_v50 }
 0x4a6   : > { %v5285_v58 = vpop.eup %5284 }
 0x4a7   : > { %v2007_v12 = vpop.xlane.xlu2 %2006  ;;  %v1977_v63 = vpop.xlane.xlu0 %1976  ;;  %v2265_v42 = vmul.f32 %v5285_v58, %v6544_v31 }
 0x4a8   : > { %v2061_v32 = vsub.f32 %v6551_v37, %v2007_v12  ;;  %v2051_v36 = vsub.f32 %v6549_v24, %v1977_v63 }
 0x4a9   : > { %v2297_v45 = vpack.c.bf16 %v2265_v42, %v2265_v42 }
 0x4aa   : > { %v2113_v13 = vmul.f32 1.442695, %v2061_v32  ;;  %v2093_v51 = vmul.f32 1.442695, %v2051_v36 }
 0x4ac   : > { %5286 = vpow2.f32 %v2113_v13 }
 0x4ad   : > { %5288 = vpow2.f32 %v2093_v51 }
 0x4af   : > { %v1986_v40 = vpop.xlane.xlu2 %1985  ;;  %v2010_v41 = vpop.xlane.xlu1 %2009 }
 0x4b0   : > { %v2054_v43 = vsub.f32 %v6557_v25, %v1986_v40  ;;  %v2062_v5 = vsub.f32 %v6559_v0, %v2010_v41  ;;  %v2142_v39 = vpop.xlane.xlu0 %2141 }
 0x4b1   : > { %5290 = vrcp.f32 %v2142_v39 }
 0x4b2   : > { %v6689_v60 = vpop.eup %5286  ;;  %v2099_v3 = vmul.f32 1.442695, %v2054_v43  ;;  %v2115_v37 = vmul.f32 1.442695, %v2062_v5 }
 0x4b3   : > { %v2197_v24 = vsel %vm1580_vm10, %v6689_v60, 0.0  ;;  %v6693_v46 = vpop.eup %5288 }
 0x4b4   : > { %5292 = vpow2.f32 %v2099_v3  ;;  %2198 = vadd.xlane.f32.xlu1 %v2197_v24  ;;  %v2167_v25 = vsel %vm1580_vm10, %v6693_v46, 0.0 }
 0x4b5   : > { %5294 = vpow2.f32 %v2115_v37  ;;  %2168 = vadd.xlane.f32.xlu0 %v2167_v25 }
 0x4b7   : > { %v1989_v0 = vpop.xlane.xlu2 %1988  ;;  %v2004_v6 = vpop.xlane.xlu1 %2003 }
 0x4b8   : > { %v5291_v14 = vpop.eup %5290  ;;  %v2055_v57 = vsub.f32 %v6571_v30, %v1989_v0  ;;  %v2060_v59 = vsub.f32 %v6569_v26, %v2004_v6  ;;  %v1992_v47 = vpop.xlane.xlu0 %1991 }
 0x4b9   : > { %v2266_v7 = vmul.f32 %v5291_v14, %v6561_v15  ;;  %v2056_v35 = vsub.f32 %v6573_v4, %v1992_v47  ;;  %v2333_v15 = vunpack.c.l.b16 %v2297_v45 }
 0x4ba   : > { %v6701_v22 = vpop.eup %5292  ;;  %v2101_v19 = vmul.f32 1.442695, %v2055_v57  ;;  %v2111_v31 = vmul.f32 1.442695, %v2060_v59 }
 0x4bb   : > { %v6704_v50 = vpop.eup %5294  ;;  %v2298_v12 = vpack.c.bf16 %v2266_v7, %v2266_v7  ;;  %v2176_v32 = vsel %vm1580_vm10, %v6701_v22, 0.0  ;;  %v2103_v30 = vmul.f32 1.442695, %v2056_v35 }
 0x4bc   : > { %5296 = vpow2.f32 %v2101_v19  ;;  %2177 = vadd.xlane.f32.xlu1 %v2176_v32  ;;  %v2200_v26 = vsel %vm1580_vm10, %v6704_v50, 0.0 }
 0x4bd   : > { %v2334_v63 = vunpack.c.l.b16 %v2298_v12  ;;  %5298 = vpow2.f32 %v2111_v31  ;;  %2201 = vadd.xlane.f32.xlu2 %v2200_v26 }
 0x4be   : > { %5300 = vpow2.f32 %v2103_v30 }
 0x4bf   : > { %v2337_v13 = vpack.c.b16 %v2334_v63, %v2333_v15  ;;  %v6710_v36 = vpop.xlane.xlu2 %2012  ;;  %v1980_v4 = vpop.xlane.xlu1 %1979 }
 0x4c0   : > { %v2052_v51 = vsub.f32 %v6583_v18, %v1980_v4  ;;  %v2019_v40 = vpop.xlane.xlu0 %2018 }
 0x4c1   : > { %4792 = vmatmul.msk.bf16.vlgmr.msra.gmra.mxu1 %vm1580_vm10, %v2337_v13  ;;  %v2065_v5 = vsub.f32 %v6585_v56, %v2019_v40 }
 0x4c2   : > { %v6714_v41 = vpop.eup %5296  ;;  %v2095_v43 = vmul.f32 1.442695, %v2052_v51 }
 0x4c3   : > { %v6717_v58 = vpop.eup %5298  ;;  %v2179_v39 = vsel %vm1580_vm10, %v6714_v41, 0.0  ;;  %v2121_v37 = vmul.f32 1.442695, %v2065_v5 }
 0x4c4   : > { %v6721_v3 = vpop.eup %5300  ;;  %v2194_v24 = vsel %vm1580_vm10, %v6717_v58, 0.0  ;;  %5302 = vpow2.f32 %v2095_v43 }
 0x4c5   : > { %2195 = vadd.xlane.f32.xlu1 %v2194_v24  ;;  %2180 = vadd.xlane.f32.xlu2 %v2179_v39  ;;  %v2182_v18 = vsel %vm1580_vm10, %v6721_v3, 0.0  ;;  %5304 = vpow2.f32 %v2121_v37 }
 0x4c6   : > { %2183 = vadd.xlane.f32.xlu0 %v2182_v18 }
 0x4c7   : > { %v2034_v56 = vpop.xlane.xlu2 %2033  ;;  %v2145_v42 = vpop.xlane.xlu1 %2144 }
 0x4c8   : > { %5306 = vrcp.f32 %v2145_v42  ;;  %v2148_v25 = vpop.xlane.xlu0 %2147  ;;  %v2070_v51 = vsub.f32 %v6596_v29, %v2034_v56 }
 0x4c9   : > { %5308 = vrcp.f32 %v2148_v25 }
 0x4ca   : > { %v6727_v0 = vpop.eup %5302  ;;  %v2131_v40 = vmul.f32 1.442695, %v2070_v51 }
 0x4cb   : > { %v6729_v6 = vpop.eup %5304  ;;  %v2170_v14 = vsel %vm1580_vm10, %v6727_v0, 0.0 }
 0x4cc   : > { %v2209_v57 = vsel %vm1580_vm10, %v6729_v6, 0.0 }
 0x4cd   : > { %2171 = vadd.xlane.f32.xlu2 %v2170_v14  ;;  %2210 = vadd.xlane.f32.xlu1 %v2209_v57 }
 0x4ce   : > { %v5307_v59 = vpop.eup %5306 }
 0x4cf   : > { %v6735_v45 = vpop.xlane.xlu1 %2015  ;;  %v6737_v7 = vpop.xlane.xlu2 %2024  ;;  %v2267_v47 = vmul.f32 %v5307_v59, %v6598_v55 }
 0x4d0   : > { %v5309_v19 = vpop.eup %5308  ;;  %v2151_v26 = vpop.xlane.xlu0 %2150 }
 0x4d1   : > { %v2268_v31 = vmul.f32 %v5309_v19, %v6600_v52  ;;  %v2299_v35 = vpack.c.bf16 %v2267_v47, %v2267_v47  ;;  %5310 = vrcp.f32 %v2151_v26 }
 0x4d3   : > { %v2300_v12 = vpack.c.bf16 %v2268_v31, %v2268_v31  ;;  %v2335_v32 = vunpack.c.l.b16 %v2299_v35 }
 0x4d5   : > { %v2336_v30 = vunpack.c.l.b16 %v2300_v12 }
 0x4d7   : > { %v2031_v15 = vpop.xlane.xlu1 %2030  ;;  %v6741_v63 = vpop.xlane.xlu2 %2036  ;;  %v2338_v13 = vpack.c.b16 %v2336_v30, %v2335_v32 }
 0x4d8   : > { %v2069_v4 = vsub.f32 %v6621_v34, %v2031_v15  ;;  %v5311_v5 = vpop.eup %5310  ;;  %v2028_v51 = vpop.xlane.xlu0 %2027 }
 0x4d9   : > { %4793 = vmatmul.msk.bf16.gmra.mxu1 %vm1580_vm10, %v2338_v13  ;;  %v2269_v34 = vmul.f32 %v5311_v5, %v6612_v61 }
 0x4da   : > { %v2129_v55 = vmul.f32 1.442695, %v2069_v4 }
 0x4db   : > { %v2301_v56 = vpack.c.bf16 %v2269_v34, %v2269_v34 }
 0x4dc   : > { %5312 = vpow2.f32 %v2129_v55 }
 0x4dd   : > { %v2376_v61 = vunpack.c.l.b16 %v2301_v56 }
 0x4df   : > { %v2022_v52 = vpop.xlane.xlu1 %2021  ;;  %v2154_v43 = vpop.xlane.xlu2 %2153 }
 0x4e0   : > { %v2066_v39 = vsub.f32 %v6634_v21, %v2022_v52  ;;  %5314 = vrcp.f32 %v2154_v43 }
 0x4e1   : > { %5316 = vpow2.f32 %v2131_v40  ;;  %v2068_v40 = vsub.f32 %v6625_v17, %v2028_v51 }
 0x4e2   : > { %v6747_v37 = vpop.eup %5312  ;;  %v2123_v24 = vmul.f32 1.442695, %v2066_v39 }
 0x4e3   : > { %v2221_v18 = vsel %vm1580_vm10, %v6747_v37, 0.0  ;;  %v2127_v52 = vmul.f32 1.442695, %v2068_v40 }
 0x4e4   : > { %5318 = vpow2.f32 %v2123_v24  ;;  %2222 = vadd.xlane.f32.xlu2 %v2221_v18 }
 0x4e6   : > { %v5315_v29 = vpop.eup %5314  ;;  %1566 = vrot.lane.b32.xlu1 %v6358_v38, %s5685_s11 }
 0x4e7   : > { %v2270_v42 = vmul.f32 %v5315_v29, %v6636_v2  ;;  %v6755_v21 = vpop.xlane.xlu1 %2039  ;;  %v2160_v25 = vpop.xlane.xlu2 %2159 }
 0x4e8   : > { %v6757_v14 = vpop.eup %5316  ;;  %5320 = vrcp.f32 %v2160_v25 }
 0x4e9   : > { %v2302_v57 = vpack.c.bf16 %v2270_v42, %v2270_v42  ;;  %v2224_v19 = vsel %vm1580_vm10, %v6757_v14, 0.0  ;;  %v2071_v42 = vsub.f32 %v6623_v62, %v6741_v63 }
 0x4ea   : > { %v6759_v59 = vpop.eup %5318 }
 0x4eb   : > { %v2377_v47 = vunpack.c.l.b16 %v2302_v57  ;;  %v2212_v2 = vsel %vm1580_vm10, %v6759_v59, 0.0 }
 0x4ec   : > { %2225 = vadd.xlane.f32.xlu2 %v2224_v19  ;;  %2213 = vadd.xlane.f32.xlu0 %v2212_v2 }
 0x4ed   : > { %v2380_v38 = vpack.c.b16 %v2377_v47, %v2376_v61 }
 0x4ee   : > { %v5321_v35 = vpop.eup %5320 }
 0x4ef   : > { %v2157_v31 = vpop.xlane.xlu1 %2156  ;;  %4794 = vmatmul.msk.bf16.vlgmr.msrb.gmra.mxu2 %vm1580_vm10, %v2380_v38  ;;  %v2272_v12 = vmul.f32 %v5321_v35, %v6645_v53  ;;  %v2133_v38 = vmul.f32 1.442695, %v2071_v42 }
 0x4f0   : > { %5322 = vrcp.f32 %v2157_v31 }
 0x4f1   : > { %v2304_v26 = vpack.c.bf16 %v2272_v12, %v2272_v12  ;;  %5324 = vpow2.f32 %v2127_v52 }
 0x4f3   : > { %v2379_v4 = vunpack.c.l.b16 %v2304_v26 }
 0x4f6   : > { %v5323_v32 = vpop.eup %5322 }
 0x4f7   : > { %v2271_v30 = vmul.f32 %v5323_v32, %v6651_v28  ;;  %v6774_v28 = vpop.eup %5324 }
 0x4f8   : > { %v2218_v43 = vsel %vm1580_vm10, %v6774_v28, 0.0 }
 0x4f9   : > { %v2303_v15 = vpack.c.bf16 %v2271_v30, %v2271_v30 }
 0x4fb   : > { %v2378_v13 = vunpack.c.l.b16 %v2303_v15 }
 0x4fd   : > { %v2381_v55 = vpack.c.b16 %v2379_v4, %v2378_v13 }
 0x4ff   : > { %4795 = vmatmul.msk.bf16.gmra.mxu2 %vm1580_vm10, %v2381_v55 }
 0x500   : > { %1564 = vrot.lane.b32.xlu0 %v6356_v44, %s5685_s11  ;;  %v2067_v44 = vsub.f32 %v6608_v10, %v6737_v7 }
 0x502   : > { %v2125_v57 = vmul.f32 1.442695, %v2067_v44 }
 0x504   : > { %1546 = vrot.lane.b32.xlu2 %v6379_v20, %s5684_s25 }
 0x507   : > { %v2187_v53 = vpop.xlane.xlu1 %2186 }
 0x508   : > { %v2175_v12 = vpop.xlane.xlu0 %2174 }
 0x50e   : > { %v2166_v17 = vpop.xlane.xlu2 %2165 }
 0x50f   : > { %v2163_v5 = vpop.xlane.xlu1 %2162 }
 0x510   : > { %2219 = vadd.xlane.f32.xlu1 %v2218_v43  ;;  %5326 = vrcp.f32 %v2163_v5 }
 0x511   : > { %5328 = vrcp.f32 %v2166_v17 }
 0x512   : > { %5330 = vrcp.f32 %v2187_v53 }
 0x516   : > { %v5327_v39 = vpop.eup %5326 }
 0x517   : > { %v5329_v24 = vpop.eup %5328  ;;  %v2273_v34 = vmul.f32 %v5327_v39, %v6668_v49  ;;  %v2190_v18 = vpop.xlane.xlu1 %2189 }
 0x518   : > { %v5331_v29 = vpop.eup %5330  ;;  %v2274_v56 = vmul.f32 %v5329_v24, %v6671_v8  ;;  %5332 = vrcp.f32 %v2190_v18  ;;  %v2193_v30 = vpop.xlane.xlu2 %2192 }
 0x519   : > { %v2305_v25 = vpack.c.bf16 %v2273_v34, %v2273_v34  ;;  %v2281_v47 = vmul.f32 %v5331_v29, %v6659_v27  ;;  %5334 = vpow2.f32 %v2125_v57 }
 0x51a   : > { %v2306_v61 = vpack.c.bf16 %v2274_v56, %v2274_v56  ;;  %5336 = vpow2.f32 %v2133_v38 }
 0x51b   : > { %v2419_v19 = vunpack.c.l.b16 %v2305_v25  ;;  %v2313_v49 = vpack.c.bf16 %v2281_v47, %v2281_v47  ;;  %5338 = vrcp.f32 %v2175_v12 }
 0x51c   : > { %v2420_v2 = vunpack.c.l.b16 %v2306_v61 }
 0x51d   : > { %v2505_v35 = vunpack.c.l.b16 %v2313_v49 }
 0x51e   : > { %v5333_v10 = vpop.eup %5332  ;;  %v2423_v7 = vpack.c.b16 %v2420_v2, %v2419_v19 }
 0x51f   : > { %v2282_v31 = vmul.f32 %v5333_v10, %v6677_v9  ;;  %v6787_v63 = vpop.eup %5334 }
 0x520   : > { %4796 = vmatmul.msk.bf16.vlgmr.msra.gmra.mxu3 %vm1580_vm10, %v2423_v7  ;;  %v6791_v26 = vpop.eup %5336  ;;  %v2215_v9 = vsel %vm1580_vm10, %v6787_v63, 0.0 }
 0x521   : > { %v2314_v8 = vpack.c.bf16 %v2282_v31, %v2282_v31  ;;  %v2227_v15 = vsel %vm1580_vm10, %v6791_v26, 0.0  ;;  %v5339_v4 = vpop.eup %5338 }
 0x522   : > { %v2277_v40 = vmul.f32 %v5339_v4, %v6662_v16 }
 0x523   : > { %v2506_v62 = vunpack.c.l.b16 %v2314_v8 }
 0x524   : > { %v2309_v53 = vpack.c.bf16 %v2277_v40, %v2277_v40 }
 0x525   : > { %v2509_v32 = vpack.c.b16 %v2506_v62, %v2505_v35 }
 0x526   : > { %v2462_v24 = vunpack.c.l.b16 %v2309_v53 }
 0x527   : > { %v6789_v27 = vpop.xlane.xlu1 %2198  ;;  %4800 = vmatmul.msk.bf16.vlgmr.msrb.gmra.mxu1 %vm1580_vm10, %v2509_v32 }
 0x528   : > { %v2169_v55 = vpop.xlane.xlu0 %2168 }
 0x529   : > { %1562 = vrot.lane.b32.xlu1 %v6379_v20, %s5685_s11 }
 0x52a   : > { %2216 = vadd.xlane.f32.xlu0 %v2215_v9 }
 0x52d   : > { %2228 = vadd.xlane.f32.xlu2 %v2227_v15 }
 0x52f   : > { %v2178_v13 = vpop.xlane.xlu1 %2177 }
 0x530   : > { %5340 = vrcp.f32 %v2178_v13  ;;  %v6800_v51 = vpop.xlane.xlu2 %2201 }
 0x531   : > { %5342 = vrcp.f32 %v2193_v30 }
 0x532   : > { %5344 = vrcp.f32 %v2169_v55 }
 0x536   : > { %v5341_v52 = vpop.eup %5340 }
 0x537   : > { %v2278_v43 = vmul.f32 %v5341_v52, %v6701_v22  ;;  %v5343_v17 = vpop.eup %5342 }
 0x538   : > { %v2196_v5 = vpop.xlane.xlu1 %2195  ;;  %v2181_v20 = vpop.xlane.xlu2 %2180  ;;  %v2283_v18 = vmul.f32 %v5343_v17, %v6679_v54  ;;  %v2064_v54 = vsub.f32 %v6610_v48, %v6735_v45 }
 0x539   : > { %v2310_v39 = vpack.c.bf16 %v2278_v43, %v2278_v43  ;;  %5346 = vrcp.f32 %v2196_v5  ;;  %v2184_v44 = vpop.xlane.xlu0 %2183  ;;  %v5345_v16 = vpop.eup %5344  ;;  %v2072_v43 = vsub.f32 %v6643_v11, %v6755_v21 }
 0x53a   : > { %5348 = vrcp.f32 %v2181_v20  ;;  %v2315_v61 = vpack.c.bf16 %v2283_v18, %v2283_v18  ;;  %v2275_v7 = vmul.f32 %v5345_v16, %v6693_v46  ;;  %v2119_v31 = vmul.f32 1.442695, %v2064_v54 }
 0x53b   : > { %v2463_v34 = vunpack.c.l.b16 %v2310_v39  ;;  %5350 = vrcp.f32 %v2184_v44 }
 0x53c   : > { %v2507_v38 = vunpack.c.l.b16 %v2315_v61  ;;  %v2307_v45 = vpack.c.bf16 %v2275_v7, %v2275_v7 }
 0x53d   : > { %v2466_v29 = vpack.c.b16 %v2463_v34, %v2462_v24 }
 0x53e   : > { %v2362_v56 = vpop.f32.mrf.mxu1  ;;  %1560 = vrot.lane.b32.xlu0 %v6342_v1, %s5685_s11  ;;  %v2421_v32 = vunpack.c.l.b16 %v2307_v45 }
 0x53f   : > { %v5347_v22 = vpop.eup %5346  ;;  %2673 = vst.msk [vmem:[#allocation3] sm:$0xff] %vm1580_vm10, %v2362_v56  ;;  %4798 = vmatmul.msk.bf16.vlgmr.msrb.gmra.mxu0 %vm1580_vm10, %v2466_v29 }
 0x540   : > { %v5349_v42 = vpop.eup %5348  ;;  %v2172_v25 = vpop.xlane.xlu2 %2171  ;;  %v2284_v57 = vmul.f32 %v5347_v22, %v6717_v58 }
 0x541   : > { %v5351_v47 = vpop.eup %5350  ;;  %5352 = vrcp.f32 %v2172_v25  ;;  %v2279_v1 = vmul.f32 %v5349_v42, %v6714_v41  ;;  %v2211_v40 = vpop.xlane.xlu1 %2210 }
 0x542   : > { %v2316_v19 = vpack.c.bf16 %v2284_v57, %v2284_v57  ;;  %v2280_v2 = vmul.f32 %v5351_v47, %v6721_v3  ;;  %5354 = vpow2.f32 %v2119_v31 }
 0x543   : > { %v2311_v62 = vpack.c.bf16 %v2279_v1, %v2279_v1  ;;  %5356 = vrcp.f32 %v6800_v51 }
 0x544   : > { %v2508_v10 = vunpack.c.l.b16 %v2316_v19  ;;  %v2312_v49 = vpack.c.bf16 %v2280_v2, %v2280_v2  ;;  %5358 = vrcp.f32 %v6789_v27  ;;  %v2135_v27 = vmul.f32 1.442695, %v2072_v43 }
 0x545   : > { %v2464_v12 = vunpack.c.l.b16 %v2311_v62 }
 0x546   : > { %v2364_v8 = vpop.f32.mrf.mxu1  ;;  %v2510_v35 = vpack.c.b16 %v2508_v10, %v2507_v38  ;;  %v2465_v3 = vunpack.c.l.b16 %v2312_v49 }
 0x547   : > { %v5353_v58 = vpop.eup %5352  ;;  %2674 = vst.msk [vmem:[#allocation3 + $0x8] sm:$0xff] %vm1580_vm10, %v2364_v8 }
 0x548   : > { %4801 = vmatmul.msk.bf16.gmra.mxu1 %vm1580_vm10, %v2510_v35  ;;  %v2276_v48 = vmul.f32 %v5353_v58, %v6727_v0  ;;  %v2467_v46 = vpack.c.b16 %v2465_v3, %v2464_v12  ;;  %v6819_v15 = vpop.eup %5354  ;;  %v2063_v0 = vsub.f32 %v6587_v23, %v6710_v36 }
 0x549   : > { %v2206_v13 = vsel %vm1580_vm10, %v6819_v15, 0.0  ;;  %v5357_v53 = vpop.eup %5356 }
 0x54a   : > { %v2308_v41 = vpack.c.bf16 %v2276_v48, %v2276_v48  ;;  %v2117_v52 = vmul.f32 1.442695, %v2063_v0  ;;  %v5359_v20 = vpop.eup %5358  ;;  %v2286_v39 = vmul.f32 %v5357_v53, %v6704_v50 }
 0x54b   : > { %v2285_v44 = vmul.f32 %v5359_v20, %v6689_v60  ;;  %v2554_v60 = vunpack.c.l.b16 %v6515_v33 }
 0x54c   : > { %v2422_v30 = vunpack.c.l.b16 %v2308_v41  ;;  %v2318_v21 = vpack.c.bf16 %v2286_v39, %v2286_v39 }
 0x54d   : > { %v2317_v16 = vpack.c.bf16 %v2285_v44, %v2285_v44 }
 0x54e   : > { %v2424_v9 = vpack.c.b16 %v2422_v30, %v2421_v32 }
 0x54f   : > { %4799 = vmatmul.msk.bf16.gmra.mxu0 %vm1580_vm10, %v2467_v46  ;;  %v2548_v19 = vunpack.c.l.b16 %v2317_v16 }
 0x550   : > { %4797 = vmatmul.msk.bf16.gmra.mxu3 %vm1580_vm10, %v2424_v9 }
 0x553   : > { %2207 = vadd.xlane.f32.xlu1 %v2206_v13 }
 0x556   : > { %v2367_v4 = vpop.f32.mrf.mxu1 }
 0x557   : > { %2675 = vst.msk [vmem:[#allocation3 + $0x10] sm:$0xff] %vm1580_vm10, %v2367_v4  ;;  %v2223_v55 = vpop.xlane.xlu2 %2222 }
 0x558   : > { %5360 = vrcp.f32 %v2223_v55  ;;  %v1567_v31 = vpop.permute.xlu1 %1566 }
 0x559   : > { %5362 = vrcp.f32 %v2211_v40  ;;  %v2643_v58 = vunpack.c.l.b16 %v1567_v31 }
 0x55a   : > { %5364 = vpow2.f32 %v2117_v52 }
 0x55e   : > { %v2369_v5 = vpop.f32.mrf.mxu1  ;;  %v5361_v17 = vpop.eup %5360 }
 0x55f   : > { %2676 = vst.msk [vmem:[#allocation3 + $0x18] sm:$0xff] %vm1580_vm10, %v2369_v5  ;;  %v2226_v23 = vpop.xlane.xlu2 %2225  ;;  %v2214_v36 = vpop.xlane.xlu0 %2213  ;;  %v2293_v24 = vmul.f32 %v5361_v17, %v6747_v37 }
 0x560   : > { %5366 = vrcp.f32 %v2226_v23  ;;  %v5363_v51 = vpop.eup %5362 }
 0x561   : > { %5368 = vrcp.f32 %v2214_v36  ;;  %v6835_v34 = vpop.eup %5364  ;;  %v2289_v11 = vmul.f32 %v5363_v51, %v6729_v6  ;;  %v2325_v56 = vpack.c.bf16 %v2293_v24, %v2293_v24  ;;  %v2549_v6 = vunpack.c.l.b16 %v2318_v21 }
 0x562   : > { %5370 = vpow2.f32 %v2135_v27  ;;  %v2203_v50 = vsel %vm1580_vm10, %v6835_v34, 0.0 }
 0x563   : > { %v2321_v25 = vpack.c.bf16 %v2289_v11, %v2289_v11  ;;  %v2634_v2 = vunpack.c.l.b16 %v2325_v56  ;;  %v2552_v7 = vpack.c.b16 %v2549_v6, %v2548_v19 }
 0x566   : > { %v5367_v18 = vpop.eup %5366 }
 0x567   : > { %v5369_v29 = vpop.eup %5368  ;;  %v2294_v22 = vmul.f32 %v5367_v18, %v6757_v14  ;;  %v1547_v42 = vpop.permute.xlu2 %1546  ;;  %v2591_v14 = vunpack.c.l.b16 %v2321_v25 }
 0x568   : > { %v2290_v37 = vmul.f32 %v5369_v29, %v6759_v59  ;;  %v2555_v57 = vunpack.c.l.b16 %v1547_v42  ;;  %2204 = vadd.xlane.f32.xlu0 %v2203_v50  ;;  %v6843_v38 = vpop.eup %5370 }
 0x569   : > { %v2326_v61 = vpack.c.bf16 %v2294_v22, %v2294_v22  ;;  %v2230_v59 = vsel %vm1580_vm10, %v6843_v38, 0.0 }
 0x56a   : > { %v2322_v47 = vpack.c.bf16 %v2290_v37, %v2290_v37  ;;  %v2558_v54 = vpack.c.b16 %v2555_v57, %v2554_v60 }
 0x56b   : > { %v2635_v1 = vunpack.c.l.b16 %v2326_v61 }
 0x56c   : > { %v2592_v10 = vunpack.c.l.b16 %v2322_v47  ;;  %2575 = vmatpush.bf16.msra.mxu2 %v2558_v54 }
 0x56d   : > { %v2638_v49 = vpack.c.b16 %v2635_v1, %v2634_v2 }
 0x56e   : > { %v2595_v33 = vpack.c.b16 %v2592_v10, %v2591_v14 }
 0x56f   : > { %4802 = vmatmul.msk.bf16.vlgmr.msra.gmra.mxu2 %vm1580_vm10, %v2552_v7 }
 0x570   : > { %4804 = vmatmul.msk.bf16.vlgmr.msrb.gmra.mxu3 %vm1580_vm10, %v2595_v33  ;;  %2231 = vadd.xlane.f32.xlu0 %v2230_v59 }
 0x572   : > { %v2405_v8 = vpop.f32.mrf.mxu2  ;;  %v1565_v35 = vpop.permute.xlu0 %1564 }
 0x573   : > { %2677 = vst.msk [vmem:[#allocation3 + $0x20] sm:$0xff] %vm1580_vm10, %v2405_v8  ;;  %v2642_v62 = vunpack.c.l.b16 %v1565_v35 }
 0x575   : > { %v2645_v48 = vpack.c.b16 %v2643_v58, %v2642_v62 }
 0x577   : > { %2660 = vmatpush.bf16.msra.mxu0 %v2645_v48  ;;  %v5027_v48 = vld [vmem:[%s5969_s16 + $0x38] sm:$0xff] }
 0x578   : > { %2884 = vmatpush.bf16.msra.mxu1 %v5027_v48 }
 0x57a   : > { %v2407_v45 = vpop.f32.mrf.mxu2 }
 0x57b   : > { %2678 = vst.msk [vmem:[#allocation3 + $0x28] sm:$0xff] %vm1580_vm10, %v2407_v45  ;;  %v5026_v45 = vld [vmem:[%s5969_s16 + $0x30] sm:$0xff] }
 0x57c   : > { %2885 = vmatpush.bf16.msra.mxu1 %v5026_v45  ;;  %v5454_v45 = vld [vmem:[#allocation2 + $0x8] sm:$0xff] }
 0x582   : > { %v2410_v3 = vpop.f32.mrf.mxu2 }
 0x583   : > { %2679 = vst.msk [vmem:[#allocation3 + $0x30] sm:$0xff] %vm1580_vm10, %v2410_v3  ;;  %v2220_v12 = vpop.xlane.xlu1 %2219 }
 0x584   : > { %5372 = vrcp.f32 %v2220_v12  ;;  %v5024_v12 = vld [vmem:[%s5969_s16 + $0x20] sm:$0xff] }
 0x58a   : > { %v2412_v41 = vpop.f32.mrf.mxu2  ;;  %v5373_v30 = vpop.eup %5372 }
 0x58b   : > { %2680 = vst.msk [vmem:[#allocation3 + $0x38] sm:$0xff] %vm1580_vm10, %v2412_v41  ;;  %v2292_v46 = vmul.f32 %v5373_v30, %v6774_v28  ;;  %v5025_v41 = vld [vmem:[%s5969_s16 + $0x28] sm:$0xff]  ;;  %v5023_v30 = vld [vmem:[%s5969_s16 + $0x18] sm:$0xff] }
 0x58c   : > { %2886 = vmatpush.bf16.msra.mxu1 %v5025_v41 }
 0x58d   : > { %v2324_v4 = vpack.c.bf16 %v2292_v46, %v2292_v46 }
 0x58f   : > { %v2594_v53 = vunpack.c.l.b16 %v2324_v4  ;;  %v5021_v4 = vld [vmem:[%s5969_s16 + $0x8] sm:$0xff] }
 0x590   : > { %2887 = vmatpush.bf16.msra.mxu1 %v5024_v12 }
 0x594   : > { %2888 = vmatpush.bf16.msra.mxu1 %v5023_v30 }
 0x59b   : > { %v1563_v20 = vpop.permute.xlu1 %1562 }
 0x59c   : > { %v2641_v23 = vunpack.c.l.b16 %v1563_v20 }
 0x59d   : > { %v2217_v32 = vpop.xlane.xlu0 %2216 }
 0x59e   : > { %5374 = vrcp.f32 %v2217_v32 }
 0x5a0   : > { %v2229_v44 = vpop.xlane.xlu2 %2228 }
 0x5a3   : > { %v2448_v13 = vpop.f32.mrf.mxu3 }
 0x5a4   : > { %v5375_v9 = vpop.eup %5374  ;;  %2689 = vrot.lane.b32.xlu1 %v2448_v13, %s5685_s11  ;;  %v2534_v55 = vpop.f32.mrf.mxu1 }
 0x5a5   : > { %v2291_v0 = vmul.f32 %v5375_v9, %v6787_v63  ;;  %2730 = vrot.lane.b32.xlu0 %v2534_v55, %s5684_s25  ;;  %v5022_v9 = vld [vmem:[%s5969_s16 + $0x10] sm:$0xff]  ;;  %v5020_v55 = vld [vmem:[%s5969_s16] sm:$0xff] }
 0x5a6   : > { %2889 = vmatpush.bf16.msra.mxu1 %v5022_v9 }
 0x5a7   : > { %v2323_v40 = vpack.c.bf16 %v2291_v0, %v2291_v0 }
 0x5a9   : > { %v2593_v52 = vunpack.c.l.b16 %v2323_v40 }
 0x5aa   : > { %2890 = vmatpush.bf16.msra.mxu1 %v5021_v4 }
 0x5ab   : > { %v2596_v43 = vpack.c.b16 %v2594_v53, %v2593_v52  ;;  %v2450_v5 = vpop.f32.mrf.mxu3 }
 0x5ac   : > { %2691 = vrot.lane.b32.xlu2 %v2450_v5, %s5685_s11  ;;  %v2536_v28 = vpop.f32.mrf.mxu1 }
 0x5ad   : > { %4805 = vmatmul.msk.bf16.gmra.mxu3 %vm1580_vm10, %v2596_v43  ;;  %2732 = vrot.lane.b32.xlu1 %v2536_v28, %s5684_s25 }
 0x5ae   : > { %2891 = vmatpush.bf16.msra.mxu1 %v5020_v55 }
 0x5b0   : > { %v1561_v63 = vpop.permute.xlu0 %1560 }
 0x5b1   : > { %v2640_v36 = vunpack.c.l.b16 %v1561_v63 }
 0x5b3   : > { %v2644_v17 = vpack.c.b16 %v2641_v23, %v2640_v36 }
 0x5b5   : > { %2661 = vmatpush.bf16.msra.mxu0 %v2644_v17 }
 0x5b8   : > { %4806 = vmatmul.msk.bf16.vlgmr.msra.gmra.mxu0 %vm1580_vm10, %v2638_v49 }
 0x5bc   : > { %v2491_v16 = vpop.f32.mrf.mxu0 }
 0x5c4   : > { %v2493_v7 = vpop.f32.mrf.mxu0 }
 0x5c5   : > { %v2539_v51 = vpop.f32.mrf.mxu1 }
 0x5c6   : > { %v2208_v39 = vpop.xlane.xlu1 %2207 }
 0x5c7   : > { %5376 = vrcp.f32 %v2208_v39 }
 0x5cd   : > { %v2541_v24 = vpop.f32.mrf.mxu1  ;;  %v5377_v21 = vpop.eup %5376 }
 0x5ce   : > { %v2288_v18 = vmul.f32 %v5377_v21, %v6819_v15 }
 0x5d0   : > { %v2320_v42 = vpack.c.bf16 %v2288_v18, %v2288_v18 }
 0x5d2   : > { %v2551_v37 = vunpack.c.l.b16 %v2320_v42 }
 0x5d3   : > { %v2453_v27 = vpop.f32.mrf.mxu3 }
 0x5d4   : > { %2693 = vrot.lane.b32.xlu1 %v2453_v27, %s5685_s11 }
 0x5db   : > { %v2205_v11 = vpop.xlane.xlu0 %2204  ;;  %v2455_v47 = vpop.f32.mrf.mxu3 }
 0x5dc   : > { %2736 = vrot.lane.b32.xlu1 %v2541_v24, %s5684_s25  ;;  %5378 = vrcp.f32 %v2205_v11 }
 0x5dd   : > { %5380 = vrcp.f32 %v2229_v44 }
 0x5e2   : > { %v5379_v29 = vpop.eup %5378 }
 0x5e3   : > { %v2232_v56 = vpop.xlane.xlu0 %2231  ;;  %v2287_v22 = vmul.f32 %v5379_v29, %v6835_v34  ;;  %v5381_v50 = vpop.eup %5380 }
 0x5e4   : > { %2697 = vrot.lane.b32.xlu1 %v2491_v16, %s5685_s11  ;;  %5382 = vrcp.f32 %v2232_v56  ;;  %v2295_v57 = vmul.f32 %v5381_v50, %v6791_v26 }
 0x5e5   : > { %v2319_v60 = vpack.c.bf16 %v2287_v22, %v2287_v22 }
 0x5e6   : > { %v2327_v54 = vpack.c.bf16 %v2295_v57, %v2295_v57 }
 0x5e7   : > { %v2550_v25 = vunpack.c.l.b16 %v2319_v60 }
 0x5e8   : > { %v2636_v34 = vunpack.c.l.b16 %v2327_v54 }
 0x5e9   : > { %v2553_v6 = vpack.c.b16 %v2551_v37, %v2550_v25 }
 0x5ea   : > { %v5383_v61 = vpop.eup %5382 }
 0x5eb   : > { %4803 = vmatmul.msk.bf16.gmra.mxu2 %vm1580_vm10, %v2553_v6  ;;  %v2296_v15 = vmul.f32 %v5383_v61, %v6843_v38  ;;  %v2496_v38 = vpop.f32.mrf.mxu0  ;;  %v5250_v61 = vld [vmem:[%s7946_s19] ss:$0 sm:$0xff] }
 0x5ed   : > { %v2328_v19 = vpack.c.bf16 %v2296_v15, %v2296_v15 }
 0x5ef   : > { %v2637_v2 = vunpack.c.l.b16 %v2328_v19 }
 0x5f1   : > { %v2639_v1 = vpack.c.b16 %v2637_v2, %v2636_v34  ;;  %v5450_v2 = vld [vmem:[#allocation2 + $0x30] sm:$0xff] }
 0x5f2   : > { %v2577_v14 = vpop.f32.mrf.mxu2 }
 0x5f3   : > { %v2620_v10 = vpop.f32.mrf.mxu3  ;;  %4807 = vmatmul.msk.bf16.gmra.mxu0 %vm1580_vm10, %v2639_v1  ;;  %v2498_v58 = vpop.f32.mrf.mxu0 }
 0x5f4   : > { %2771 = vrot.lane.b32.xlu2 %v2620_v10, %s5683_s17 }
 0x5fa   : > { %v2579_v26 = vpop.f32.mrf.mxu2 }
 0x5fb   : > { %v2622_v49 = vpop.f32.mrf.mxu3  ;;  %2740 = vrot.lane.b32.xlu1 %v2579_v26, %s5684_s25 }
 0x5fc   : > { %2695 = vrot.lane.b32.xlu2 %v2455_v47, %s5685_s11  ;;  %2773 = vrot.lane.b32.xlu0 %v2622_v49, %s5683_s17 }
 0x603   : > { %2701 = vrot.lane.b32.xlu1 %v2496_v38, %s5685_s11 }
 0x604   : > { %2734 = vrot.lane.b32.xlu0 %v2539_v51, %s5684_s25 }
 0x606   : > { %v2692_v33 = vpop.permute.xlu2 %2691 }
 0x607   : > { %2715 = vst.msk [vmem:[#allocation3 + $0x8] sm:$0xff] %vm2713_vm11, %v2692_v33  ;;  %v5452_v33 = vld [vmem:[#allocation2 + $0x18] sm:$0xff] }
 0x616   : > { %v2690_v59 = vpop.permute.xlu1 %2689 }
 0x617   : > { %2714 = vst.msk [vmem:[#allocation3] sm:$0xff] %vm2713_vm11, %v2690_v59  ;;  %v2731_v31 = vpop.permute.xlu0 %2730 }
 0x618   : > { %2755 = vst.msk [vmem:[#allocation3] sm:$0xff] %vm2754_vm12, %v2731_v31 }
 0x61f   : > { %v2733_v8 = vpop.permute.xlu1 %2732 }
 0x620   : > { %2756 = vst.msk [vmem:[#allocation3 + $0x8] sm:$0xff] %vm2754_vm12, %v2733_v8 }
 0x630   : > { %v2625_v35 = vpop.f32.mrf.mxu3 }
 0x631   : > { %2775 = vrot.lane.b32.xlu2 %v2625_v35, %s5683_s17  ;;  %v5453_v35 = vld [vmem:[#allocation2 + $0x10] sm:$0xff] }
 0x635   : > { %v2663_v3 = vpop.f32.mrf.mxu0 }
 0x638   : > { %v2627_v62 = vpop.f32.mrf.mxu3 }
 0x639   : > { %2699 = vrot.lane.b32.xlu2 %v2493_v7, %s5685_s11  ;;  %2777 = vrot.lane.b32.xlu0 %v2627_v62, %s5683_s17  ;;  %v5451_v7 = vld [vmem:[#allocation2] sm:$0xff] }
 0x63d   : > { %v2665_v46 = vpop.f32.mrf.mxu0 }
 0x641   : > { %2738 = vrot.lane.b32.xlu0 %v2577_v14, %s5684_s25  ;;  %2779 = vrot.lane.b32.xlu2 %v2663_v3, %s5683_s17 }
 0x646   : > { %v2694_v32 = vpop.permute.xlu1 %2693 }
 0x647   : > { %2716 = vst.msk [vmem:[#allocation3 + $0x10] sm:$0xff] %vm2713_vm11, %v2694_v32  ;;  %v5455_v32 = vld [vmem:[#allocation2 + $0x20] sm:$0xff] }
 0x649   : > { %2703 = vrot.lane.b32.xlu2 %v2498_v58, %s5685_s11  ;;  %2781 = vrot.lane.b32.xlu0 %v2665_v46, %s5683_s17  ;;  %v5686_v46 = vmov 128.0  }
 0x64a   : > { %5384 = vrcp.f32 %v5686_v46  ;;  %v5035_v46 = vld [vmem:[%s5936_s23 + $0x34] sm:$0xf0] }
 0x64e   : > { %v2737_v13 = vpop.permute.xlu1 %2736  ;;  %v2772_v0 = vpop.permute.xlu2 %2771 }
 0x64f   : > { %2796 = vst.msk [vmem:[#allocation3] sm:$0xff] %vm2795_vm13, %v2772_v0 }
 0x650   : > { %v5385_v9 = vpop.eup %5384 }
 0x651   : > { %vm2944_vm14 = vweird.f32 %v5385_v9 }
 0x656   : > { %v2698_v40 = vpop.permute.xlu1 %2697  ;;  %v2696_v52 = vpop.permute.xlu2 %2695  ;;  %v2804_v36 = vld [vmem:[#allocation3] sm:$0xff] }
 0x657   : > { %2718 = vst.msk [vmem:[#allocation3 + $0x20] sm:$0xff] %vm2713_vm11, %v2698_v40 }
 0x658   : > { %2717 = vst.msk [vmem:[#allocation3 + $0x18] sm:$0xff] %vm2713_vm11, %v2696_v52 }
 0x659   : > { %2758 = vst.msk [vmem:[#allocation3 + $0x18] sm:$0xff] %vm2754_vm12, %v2737_v13  ;;  %v2940_v13 = vmul.f32 128.0, %v5385_v9 }
 0x65b   : > { %v2941_v0 = vsub.f32 1.0, %v2940_v13 }
 0x65d   : > { %v2942_v4 = vmul.f32 %v5385_v9, %v2941_v0  ;;  %v4868_v0 = vld [vmem:[%s5936_s23 + $0x38] sm:$0xf0] }
 0x65f   : > { %v2943_v55 = vadd.f32 %v5385_v9, %v2942_v4 }
 0x661   : > { %v6924_v40 = vsel %vm2944_vm14, %v5385_v9, %v2943_v55  ;;  %v5034_v9 = vld [vmem:[%s5936_s23 + $0x34] sm:$0xf]  ;;  %v4858_v55 = vld [vmem:[%s5936_s23 + $0x20] sm:$0xf] }
 0x662   : > { %v4871_v4 = vor.u32 %v5034_v9, %v4868_v0 }
 0x66d   : > { %v2741_v53 = vpop.permute.xlu1 %2740 }
 0x66e   : > { %v2774_v43 = vpop.permute.xlu0 %2773  ;;  %v2582_v5 = vpop.f32.mrf.mxu2 }
 0x66f   : > { %2797 = vst.msk [vmem:[#allocation3 + $0x8] sm:$0xff] %vm2795_vm13, %v2774_v43  ;;  %2742 = vrot.lane.b32.xlu0 %v2582_v5, %s5684_s25 }
 0x670   : > { %v2668_v20 = vpop.f32.mrf.mxu0 }
 0x671   : > { %2783 = vrot.lane.b32.xlu2 %v2668_v20, %s5683_s17 }
 0x675   : > { %v2702_v28 = vpop.permute.xlu1 %2701 }
 0x676   : > { %2720 = vst.msk [vmem:[#allocation3 + $0x30] sm:$0xff] %vm2713_vm11, %v2702_v28  ;;  %v2735_v63 = vpop.permute.xlu0 %2734  ;;  %v2584_v23 = vpop.f32.mrf.mxu2  ;;  %v2805_v17 = vld [vmem:[#allocation3 + $0x8] sm:$0xff] }
 0x677   : > { %2757 = vst.msk [vmem:[#allocation3 + $0x10] sm:$0xff] %vm2754_vm12, %v2735_v63  ;;  %2744 = vrot.lane.b32.xlu1 %v2584_v23, %s5684_s25  ;;  %v2812_v51 = vpack.c.bf16 %v2805_v17, %v2804_v36  ;;  %v5456_v63 = vld [vmem:[#allocation2 + $0x28] sm:$0xff] }
 0x678   : > { %v2670_v39 = vpop.f32.mrf.mxu0 }
 0x679   : > { %2892 = vmatmul.bf16.vlgmr.msra.gmra.mxu1 %v2812_v51  ;;  %2785 = vrot.lane.b32.xlu0 %v2670_v39, %s5683_s17 }
 0x68b   : > { %v2776_v27 = vpop.permute.xlu2 %2775 }
 0x68c   : > { %2798 = vst.msk [vmem:[#allocation3 + $0x10] sm:$0xff] %vm2795_vm13, %v2776_v27 }
 0x693   : > { %v2700_v44 = vpop.permute.xlu2 %2699  ;;  %v2806_v29 = vld [vmem:[#allocation3 + $0x10] sm:$0xff] }
 0x694   : > { %2719 = vst.msk [vmem:[#allocation3 + $0x28] sm:$0xff] %vm2713_vm11, %v2700_v44 }
 0x695   : > { %2760 = vst.msk [vmem:[#allocation3 + $0x28] sm:$0xff] %vm2754_vm12, %v2741_v53 }
 0x69b   : > { %v2780_v24 = vpop.permute.xlu2 %2779 }
 0x6a3   : > { %v2704_v11 = vpop.permute.xlu2 %2703 }
 0x6a4   : > { %2721 = vst.msk [vmem:[#allocation3 + $0x38] sm:$0xff] %vm2713_vm11, %v2704_v11 }
 0x6ab   : > { %v2778_v21 = vpop.permute.xlu0 %2777 }
 0x6ac   : > { %2799 = vst.msk [vmem:[#allocation3 + $0x18] sm:$0xff] %vm2795_vm13, %v2778_v21 }
 0x6b3   : > { %v2739_v18 = vpop.permute.xlu0 %2738  ;;  %v2807_v16 = vld [vmem:[#allocation3 + $0x18] sm:$0xff] }
 0x6b4   : > { %2759 = vst.msk [vmem:[#allocation3 + $0x20] sm:$0xff] %vm2754_vm12, %v2739_v18  ;;  %v2813_v56 = vpack.c.bf16 %v2807_v16, %v2806_v29 }
 0x6b5   : > { %2800 = vst.msk [vmem:[#allocation3 + $0x20] sm:$0xff] %vm2795_vm13, %v2780_v24  ;;  %v5457_v24 = vld [vmem:[#allocation2 + $0x38] sm:$0xff] }
 0x6b6   : > { %2897 = vmatmul.bf16.gmra.mxu1 %v2813_v56 }
 0x6bb   : > { %v2782_v22 = vpop.permute.xlu0 %2781 }
 0x6bc   : > { %2801 = vst.msk [vmem:[#allocation3 + $0x28] sm:$0xff] %vm2795_vm13, %v2782_v22  ;;  %v2808_v42 = vld [vmem:[#allocation3 + $0x20] sm:$0xff] }
 0x6c3   : > { %v2809_v50 = vld [vmem:[#allocation3 + $0x28] sm:$0xff] }
 0x6c4   : > { %v2814_v60 = vpack.c.bf16 %v2809_v50, %v2808_v42 }
 0x6c6   : > { %2902 = vmatmul.bf16.gmra.mxu1 %v2814_v60 }
 0x6cb   : > { %v2784_v37 = vpop.permute.xlu2 %2783 }
 0x6e1   : > { %v2743_v25 = vpop.permute.xlu0 %2742 }
 0x6e2   : > { %2761 = vst.msk [vmem:[#allocation3 + $0x30] sm:$0xff] %vm2754_vm12, %v2743_v25 }
 0x6e3   : > { %2802 = vst.msk [vmem:[#allocation3 + $0x30] sm:$0xff] %vm2795_vm13, %v2784_v37 }
 0x6e9   : > { %v2745_v57 = vpop.permute.xlu1 %2744 }
 0x6ea   : > { %2762 = vst.msk [vmem:[#allocation3 + $0x38] sm:$0xff] %vm2754_vm12, %v2745_v57  ;;  %v2810_v47 = vld [vmem:[#allocation3 + $0x30] sm:$0xff] }
 0x6eb   : > { %v2786_v6 = vpop.permute.xlu0 %2785 }
 0x6ec   : > { %2803 = vst.msk [vmem:[#allocation3 + $0x38] sm:$0xff] %vm2795_vm13, %v2786_v6 }
 0x6f3   : > { %v2811_v15 = vld [vmem:[#allocation3 + $0x38] sm:$0xff] }
 0x6f4   : > { %v2815_v54 = vpack.c.bf16 %v2811_v15, %v2810_v47 }
 0x6f6   : > { %v2893_v19 = vpop.f32.mrf.mxu1  ;;  %2907 = vmatmul.bf16.gmra.mxu1 %v2815_v54  ;;  %v4898_v54 = vld [vmem:[%s5936_s23 + $0x70] sm:$0xf] }
 0x6f7   : > { %v2894_v34 = vadd.f32 %v5250_v61, %v2893_v19  ;;  %v5043_v19 = vld [vmem:[%s5936_s23 + $0x74] sm:$0xf0] }
 0x6f9   : > { %v2913_v1 = vadd.f32 %v5450_v2, %v2894_v34  ;;  %v5042_v34 = vld [vmem:[%s5936_s23 + $0x74] sm:$0xf]  ;;  %v4899_v2 = vor.u32 %v5043_v19, %v4898_v54 }
 0x6fb   : > { %2923 = vadd.xlane.f32.xlu1 %v2913_v1  ;;  %3218 = vmatpush.bf16.msrb.mxu2 %v4899_v2 }
 0x6fe   : > { %v2895_v14 = vpop.f32.mrf.mxu1 }
 0x6ff   : > { %v2896_v10 = vadd.f32 %v5250_v61, %v2895_v14 }
 0x701   : > { %v2914_v26 = vadd.f32 %v5451_v7, %v2896_v10  ;;  %v4890_v10 = vld [vmem:[%s5936_s23 + $0x60] sm:$0xf]  ;;  %v5041_v7 = vld [vmem:[%s5936_s23 + $0x64] sm:$0xf0] }
 0x703   : > { %2925 = vadd.xlane.f32.xlu2 %v2914_v26 }
 0x733   : > { %v2898_v49 = vpop.f32.mrf.mxu1 }
 0x734   : > { %v2899_v38 = vadd.f32 %v5250_v61, %v2898_v49  ;;  %v4891_v49 = vor.u32 %v5041_v7, %v4890_v10 }
 0x736   : > { %v2915_v59 = vadd.f32 %v5452_v33, %v2899_v38  ;;  %v4892_v38 = vld [vmem:[%s5936_s23 + $0x68] sm:$0xf0]  ;;  %3219 = vmatpush.bf16.msrb.mxu2 %v4891_v49 }
 0x738   : > { %2927 = vadd.xlane.f32.xlu0 %v2915_v59 }
 0x73b   : > { %v2900_v31 = vpop.f32.mrf.mxu1 }
 0x73c   : > { %v2901_v8 = vadd.f32 %v5250_v61, %v2900_v31  ;;  %v5039_v31 = vld [vmem:[%s5936_s23 + $0x54] sm:$0xf0] }
 0x73e   : > { %v2916_v58 = vadd.f32 %v5453_v35, %v2901_v8  ;;  %v5038_v8 = vld [vmem:[%s5936_s23 + $0x54] sm:$0xf] }
 0x740   : > { %2929 = vadd.xlane.f32.xlu2 %v2916_v58 }
 0x743   : > { %v2903_v62 = vpop.f32.mrf.mxu1 }
 0x744   : > { %v2904_v48 = vadd.f32 %v5250_v61, %v2903_v62 }
 0x746   : > { %v2917_v3 = vadd.f32 %v5454_v45, %v2904_v48  ;;  %v4874_v48 = vld [vmem:[%s5936_s23 + $0x40] sm:$0xf]  ;;  %v5037_v45 = vld [vmem:[%s5936_s23 + $0x44] sm:$0xf0] }
 0x748   : > { %2931 = vadd.xlane.f32.xlu1 %v2917_v3 }
 0x74b   : > { %v2905_v41 = vpop.f32.mrf.mxu1 }
 0x74c   : > { %v2906_v12 = vadd.f32 %v5250_v61, %v2905_v41  ;;  %v4875_v41 = vor.u32 %v5037_v45, %v4874_v48 }
 0x74e   : > { %v2918_v30 = vadd.f32 %v5455_v32, %v2906_v12  ;;  %v4876_v12 = vld [vmem:[%s5936_s23 + $0x48] sm:$0xf0] }
 0x750   : > { %2933 = vadd.xlane.f32.xlu0 %v2918_v30 }
 0x76e   : > { %v2924_v52 = vpop.xlane.xlu1 %2923 }
 0x76f   : > { %v2946_v53 = vmul.f32 %v6924_v40, %v2924_v52  ;;  %v5033_v52 = vld [vmem:[%s5936_s23 + $0x24] sm:$0xf0] }
 0x771   : > { %v6927_v43 = vsub.f32 %v2913_v1, %v2946_v53  ;;  %v4900_v1 = vld [vmem:[%s5936_s23 + $0x78] sm:$0xf0]  ;;  %v5032_v53 = vld [vmem:[%s5936_s23 + $0x24] sm:$0xf] }
 0x772   : > { %v4903_v14 = vor.u32 %v5042_v34, %v4900_v1 }
 0x773   : > { %v2908_v5 = vpop.f32.mrf.mxu1  ;;  %v2962_v20 = vmul.f32 %v6927_v43, %v6927_v43 }
 0x774   : > { %v2909_v28 = vadd.f32 %v5250_v61, %v2908_v5  ;;  %3247 = vmatpush.bf16.msra.mxu3 %v4903_v14  ;;  %v4859_v5 = vor.u32 %v5033_v52, %v4858_v55 }
 0x775   : > { %2970 = vadd.xlane.f32.xlu2 %v2962_v20  ;;  %v4860_v20 = vld [vmem:[%s5936_s23 + $0x28] sm:$0xf0] }
 0x776   : > { %v6931_v23 = vadd.f32 %v5456_v63, %v2909_v28  ;;  %v2926_v36 = vpop.xlane.xlu2 %2925  ;;  %v4863_v28 = vor.u32 %v5032_v53, %v4860_v20  ;;  %v4850_v63 = vld [vmem:[%s5936_s23 + $0x10] sm:$0xf] }
 0x777   : > { %v2947_v17 = vmul.f32 %v6924_v40, %v2926_v36  ;;  %v5031_v36 = vld [vmem:[%s5936_s23 + $0x14] sm:$0xf0] }
 0x778   : > { %2935 = vadd.xlane.f32.xlu0 %v6931_v23 }
 0x779   : > { %v6935_v51 = vsub.f32 %v2914_v26, %v2947_v17  ;;  %v5040_v26 = vld [vmem:[%s5936_s23 + $0x64] sm:$0xf]  ;;  %v5030_v17 = vld [vmem:[%s5936_s23 + $0x14] sm:$0xf] }
 0x77a   : > { %v4895_v33 = vor.u32 %v5040_v26, %v4892_v38 }
 0x77b   : > { %v2910_v39 = vpop.f32.mrf.mxu1  ;;  %v2963_v27 = vmul.f32 %v6935_v51, %v6935_v51 }
 0x77c   : > { %v2911_v44 = vadd.f32 %v5250_v61, %v2910_v39  ;;  %3248 = vmatpush.bf16.msra.mxu3 %v4895_v33  ;;  %v4851_v39 = vor.u32 %v5031_v36, %v4850_v63 }
 0x77d   : > { %2972 = vadd.xlane.f32.xlu1 %v2963_v27  ;;  %v4852_v27 = vld [vmem:[%s5936_s23 + $0x18] sm:$0xf0] }
 0x77e   : > { %v6939_v11 = vadd.f32 %v5457_v24, %v2911_v44  ;;  %v4855_v24 = vor.u32 %v5030_v17, %v4852_v27 }
 0x780   : > { %2937 = vadd.xlane.f32.xlu2 %v6939_v11 }
 0x7ab   : > { %v2928_v21 = vpop.xlane.xlu0 %2927 }
 0x7ac   : > { %v2948_v18 = vmul.f32 %v6924_v40, %v2928_v21 }
 0x7ae   : > { %v6943_v29 = vsub.f32 %v2915_v59, %v2948_v18  ;;  %v4882_v59 = vld [vmem:[%s5936_s23 + $0x50] sm:$0xf]  ;;  %v4842_v18 = vld [vmem:[%s5936_s23] sm:$0xf] }
 0x7af   : > { %v4883_v35 = vor.u32 %v5039_v31, %v4882_v59 }
 0x7b0   : > { %v2964_v16 = vmul.f32 %v6943_v29, %v6943_v29 }
 0x7b1   : > { %3220 = vmatpush.bf16.msrb.mxu2 %v4883_v35 }
 0x7b2   : > { %2974 = vadd.xlane.f32.xlu1 %v2964_v16  ;;  %v5029_v16 = vld [vmem:[%s5936_s23 + $0x4] sm:$0xf0] }
 0x7b3   : > { %v2930_v56 = vpop.xlane.xlu2 %2929 }
 0x7b4   : > { %v2949_v22 = vmul.f32 %v6924_v40, %v2930_v56  ;;  %v5028_v56 = vld [vmem:[%s5936_s23 + $0x4] sm:$0xf] }
 0x7b5   : > { %3221 = vmatpush.bf16.msrb.mxu2 %v4875_v41  ;;  %v7021_v41 = vld [vmem:[%s808_s28] ss:$0 sm:$0xff] }
 0x7b6   : > { %v6948_v42 = vsub.f32 %v2916_v58, %v2949_v22  ;;  %v4884_v58 = vld [vmem:[%s5936_s23 + $0x58] sm:$0xf0] }
 0x7b7   : > { %v4887_v62 = vor.u32 %v5038_v8, %v4884_v58 }
 0x7b8   : > { %v2965_v50 = vmul.f32 %v6948_v42, %v6948_v42 }
 0x7b9   : > { %3249 = vmatpush.bf16.msra.mxu3 %v4887_v62 }
 0x7ba   : > { %2976 = vadd.xlane.f32.xlu0 %v2965_v50 }
 0x7bb   : > { %v2932_v60 = vpop.xlane.xlu1 %2931 }
 0x7bc   : > { %v2950_v25 = vmul.f32 %v6924_v40, %v2932_v60  ;;  %v4843_v60 = vor.u32 %v5029_v16, %v4842_v18 }
 0x7be   : > { %v6953_v37 = vsub.f32 %v2917_v3, %v2950_v25  ;;  %v5036_v3 = vld [vmem:[%s5936_s23 + $0x44] sm:$0xf]  ;;  %v4844_v25 = vld [vmem:[%s5936_s23 + $0x8] sm:$0xf0] }
 0x7bf   : > { %v4879_v32 = vor.u32 %v5036_v3, %v4876_v12 }
 0x7c0   : > { %v2966_v57 = vmul.f32 %v6953_v37, %v6953_v37 }
 0x7c1   : > { %3250 = vmatpush.bf16.msra.mxu3 %v4879_v32 }
 0x7c2   : > { %2978 = vadd.xlane.f32.xlu2 %v2966_v57 }
 0x7c3   : > { %v2934_v6 = vpop.xlane.xlu0 %2933 }
 0x7c4   : > { %v2951_v61 = vmul.f32 %v6924_v40, %v2934_v6  ;;  %v4847_v6 = vor.u32 %v5028_v56, %v4844_v25 }
 0x7c5   : > { %3251 = vmatpush.bf16.msra.mxu3 %v4871_v4 }
 0x7c6   : > { %v6958_v47 = vsub.f32 %v2918_v30, %v2951_v61  ;;  %v4866_v30 = vld [vmem:[%s5936_s23 + $0x30] sm:$0xf] }
 0x7c7   : > { %v4867_v13 = vor.u32 %v5035_v46, %v4866_v30 }
 0x7c8   : > { %v2967_v15 = vmul.f32 %v6958_v47, %v6958_v47 }
 0x7c9   : > { %3222 = vmatpush.bf16.msrb.mxu2 %v4867_v13  ;;  %3252 = vmatpush.bf16.msra.mxu3 %v4863_v28 }
 0x7ca   : > { %2980 = vadd.xlane.f32.xlu1 %v2967_v15 }
 0x7cd   : > { %3223 = vmatpush.bf16.msrb.mxu2 %v4859_v5  ;;  %3253 = vmatpush.bf16.msra.mxu3 %v4855_v24 }
 0x7d1   : > { %3224 = vmatpush.bf16.msrb.mxu2 %v4851_v39  ;;  %3254 = vmatpush.bf16.msra.mxu3 %v4847_v6 }
 0x7d5   : > { %3225 = vmatpush.bf16.msrb.mxu2 %v4843_v60 }
 0x7e8   : > { %v2971_v44 = vpop.xlane.xlu2 %2970 }
 0x7e9   : > { %v2986_v21 = vmul.f32 %v2971_v44, %v6924_v40 }
 0x7eb   : > { %v2994_v22 = vadd.f32 1e-12, %v2986_v21  ;;  %v2936_v50 = vpop.xlane.xlu0 %2935 }
 0x7ec   : > { %v2952_v57 = vmul.f32 %v6924_v40, %v2936_v50 }
 0x7ed   : > { %5386 = vrsqrt.f32 %v2994_v22  ;;  %vm3008_vm0 = vweird.f32 %v2994_v22 }
 0x7ee   : > { %v6997_v61 = vsub.f32 %v6931_v23, %v2952_v57 }
 0x7f0   : > { %v2973_v15 = vpop.xlane.xlu1 %2972  ;;  %v2968_v54 = vmul.f32 %v6997_v61, %v6997_v61 }
 0x7f1   : > { %v2987_v19 = vmul.f32 %v2973_v15, %v6924_v40 }
 0x7f2   : > { %2982 = vadd.xlane.f32.xlu0 %v2968_v54 }
 0x7f3   : > { %v5387_v34 = vpop.eup %5386  ;;  %v2995_v2 = vadd.f32 1e-12, %v2987_v19  ;;  %v2938_v1 = vpop.xlane.xlu2 %2937 }
 0x7f4   : > { %v3003_v14 = vmul.f32 %v5387_v34, %v2994_v22  ;;  %v2953_v10 = vmul.f32 %v6924_v40, %v2938_v1  ;;  %vm3009_vm15 = vweird.f32 %v5387_v34 }
 0x7f5   : > { %5388 = vrsqrt.f32 %v2995_v2  ;;  %vm3010_vm1 = vmor %vm3008_vm0, %vm3009_vm15  ;;  %vm3018_vm3 = vweird.f32 %v2995_v2 }
 0x7f6   : > { %v3004_v7 = vmul.f32 %v5387_v34, %v3003_v14  ;;  %v7004_v26 = vsub.f32 %v6939_v11, %v2953_v10  ;;  %v7013_v11 = vld [vmem:[%s7948_s29] ss:$0 sm:$0xff] }
 0x7f8   : > { %v3005_v23 = vmul.f32 0.5, %v3004_v7  ;;  %v2969_v49 = vmul.f32 %v7004_v26, %v7004_v26 }
 0x7fa   : > { %v3006_v38 = vsub.f32 1.5, %v3005_v23  ;;  %2984 = vadd.xlane.f32.xlu2 %v2969_v49 }
 0x7fb   : > { %v5389_v33 = vpop.eup %5388 }
 0x7fc   : > { %v3007_v59 = vmul.f32 %v5387_v34, %v3006_v38  ;;  %v3013_v31 = vmul.f32 %v5389_v33, %v2995_v2  ;;  %vm3019_vm2 = vweird.f32 %v5389_v33 }
 0x7fd   : > { %vm3020_vm4 = vmor %vm3018_vm3, %vm3019_vm2 }
 0x7fe   : > { %v3014_v8 = vmul.f32 %v5389_v33, %v3013_v31  ;;  %v3011_v35 = vsel %vm3010_vm1, %v5387_v34, %v3007_v59 }
 0x7ff   : > { %v3082_v48 = vmul.f32 %v3011_v35, %v6927_v43 }
 0x800   : > { %v3015_v58 = vmul.f32 0.5, %v3014_v8 }
 0x801   : > { %v3093_v12 = vmul.f32 %v7013_v11, %v3082_v48 }
 0x802   : > { %v3016_v62 = vsub.f32 1.5, %v3015_v58 }
 0x803   : > { %v7027_v46 = vadd.f32 %v7021_v41, %v3093_v12 }
 0x804   : > { %v3017_v45 = vmul.f32 %v5389_v33, %v3016_v62 }
 0x806   : > { %v3021_v3 = vsel %vm3020_vm4, %v5389_v33, %v3017_v45 }
 0x807   : > { %v3083_v32 = vmul.f32 %v3021_v3, %v6935_v51 }
 0x809   : > { %v3094_v30 = vmul.f32 %v7013_v11, %v3083_v32 }
 0x80b   : > { %v7030_v43 = vadd.f32 %v7021_v41, %v3094_v30 }
 0x80d   : > { %v3112_v9 = vpack.c.bf16 %v7030_v43, %v7027_v46 }
 0x80f   : > { %3226 = vmatmul.bf16.vlgmr.msrb.gmra.mxu2 %v3112_v9  ;;  %3255 = vmatmul.bf16.vlgmr.msra.gmra.mxu3 %v3112_v9 }
 0x825   : > { %v2975_v13 = vpop.xlane.xlu1 %2974 }
 0x826   : > { %v2988_v0 = vmul.f32 %v2975_v13, %v6924_v40 }
 0x828   : > { %v2996_v4 = vadd.f32 1e-12, %v2988_v0 }
 0x82a   : > { %5390 = vrsqrt.f32 %v2996_v4  ;;  %vm3028_vm6 = vweird.f32 %v2996_v4 }
 0x82d   : > { %v2977_v55 = vpop.xlane.xlu0 %2976 }
 0x82e   : > { %v2989_v51 = vmul.f32 %v2977_v55, %v6924_v40 }
 0x830   : > { %v5391_v52 = vpop.eup %5390  ;;  %v2997_v53 = vadd.f32 1e-12, %v2989_v51 }
 0x831   : > { %v3023_v5 = vmul.f32 %v5391_v52, %v2996_v4  ;;  %vm3029_vm5 = vweird.f32 %v5391_v52 }
 0x832   : > { %5392 = vrsqrt.f32 %v2997_v53  ;;  %vm3030_vm7 = vmor %vm3028_vm6, %vm3029_vm5  ;;  %vm3038_vm9 = vweird.f32 %v2997_v53 }
 0x833   : > { %v3024_v20 = vmul.f32 %v5391_v52, %v3023_v5 }
 0x835   : > { %v3025_v28 = vmul.f32 0.5, %v3024_v20  ;;  %v2979_v63 = vpop.xlane.xlu2 %2978 }
 0x836   : > { %v2990_v36 = vmul.f32 %v2979_v63, %v6924_v40 }
 0x837   : > { %v3026_v17 = vsub.f32 1.5, %v3025_v28 }
 0x838   : > { %v5393_v39 = vpop.eup %5392  ;;  %v2998_v27 = vadd.f32 1e-12, %v2990_v36 }
 0x839   : > { %v3027_v44 = vmul.f32 %v5391_v52, %v3026_v17  ;;  %v3033_v24 = vmul.f32 %v5393_v39, %v2997_v53  ;;  %vm3039_vm8 = vweird.f32 %v5393_v39 }
 0x83a   : > { %5394 = vrsqrt.f32 %v2998_v27  ;;  %vm3040_vm10 = vmor %vm3038_vm9, %vm3039_vm8  ;;  %vm3048_vm12 = vweird.f32 %v2998_v27 }
 0x83b   : > { %v3034_v21 = vmul.f32 %v5393_v39, %v3033_v24  ;;  %v3031_v18 = vsel %vm3030_vm7, %v5391_v52, %v3027_v44 }
 0x83c   : > { %v3084_v25 = vmul.f32 %v3031_v18, %v6943_v29 }
 0x83d   : > { %v3035_v16 = vmul.f32 0.5, %v3034_v21  ;;  %v2981_v56 = vpop.xlane.xlu1 %2980 }
 0x83e   : > { %v2991_v22 = vmul.f32 %v2981_v56, %v6924_v40  ;;  %v3095_v2 = vmul.f32 %v7013_v11, %v3084_v25 }
 0x83f   : > { %v3036_v50 = vsub.f32 1.5, %v3035_v16 }
 0x840   : > { %v5395_v60 = vpop.eup %5394  ;;  %v2999_v57 = vadd.f32 1e-12, %v2991_v22  ;;  %v7043_v23 = vadd.f32 %v7021_v41, %v3095_v2 }
 0x841   : > { %v3037_v6 = vmul.f32 %v5393_v39, %v3036_v50  ;;  %v3043_v15 = vmul.f32 %v5395_v60, %v2998_v27  ;;  %vm3049_vm11 = vweird.f32 %v5395_v60 }
 0x842   : > { %5396 = vrsqrt.f32 %v2999_v57  ;;  %vm3050_vm13 = vmor %vm3048_vm12, %vm3049_vm11  ;;  %vm3058_vm15 = vweird.f32 %v2999_v57 }
 0x843   : > { %v3041_v54 = vsel %vm3040_vm10, %v5393_v39, %v3037_v6  ;;  %v3044_v19 = vmul.f32 %v5395_v60, %v3043_v15 }
 0x844   : > { %v3085_v34 = vmul.f32 %v3041_v54, %v6948_v42 }
 0x845   : > { %v3045_v1 = vmul.f32 0.5, %v3044_v19 }
 0x846   : > { %v3096_v14 = vmul.f32 %v7013_v11, %v3085_v34 }
 0x847   : > { %v3046_v10 = vsub.f32 1.5, %v3045_v1 }
 0x848   : > { %v5397_v7 = vpop.eup %5396  ;;  %v7046_v29 = vadd.f32 %v7021_v41, %v3096_v14 }
 0x849   : > { %v3047_v49 = vmul.f32 %v5395_v60, %v3046_v10  ;;  %v3053_v38 = vmul.f32 %v5397_v7, %v2999_v57  ;;  %vm3059_vm14 = vweird.f32 %v5397_v7 }
 0x84a   : > { %v3113_v33 = vpack.c.bf16 %v7046_v29, %v7043_v23  ;;  %vm3060_vm0 = vmor %vm3058_vm15, %vm3059_vm14 }
 0x84b   : > { %v3054_v42 = vmul.f32 %v5397_v7, %v3053_v38  ;;  %v3051_v59 = vsel %vm3050_vm13, %v5395_v60, %v3047_v49 }
 0x84c   : > { %3231 = vmatmul.bf16.gmra.mxu2 %v3113_v33  ;;  %3260 = vmatmul.bf16.gmra.mxu3 %v3113_v33  ;;  %v3086_v35 = vmul.f32 %v3051_v59, %v6953_v37 }
 0x84d   : > { %v3055_v31 = vmul.f32 0.5, %v3054_v42 }
 0x84e   : > { %v3097_v45 = vmul.f32 %v7013_v11, %v3086_v35 }
 0x84f   : > { %v3056_v8 = vsub.f32 1.5, %v3055_v31 }
 0x850   : > { %v7055_v12 = vadd.f32 %v7021_v41, %v3097_v45  ;;  %v5051_v45 = vld [vmem:[%s5997_s14 + $0x38] sm:$0xff] }
 0x851   : > { %v3057_v58 = vmul.f32 %v5397_v7, %v3056_v8  ;;  %4120 = vmatpush.bf16.msrb.mxu0 %v5051_v45 }
 0x853   : > { %v3061_v62 = vsel %vm3060_vm0, %v5397_v7, %v3057_v58 }
 0x854   : > { %v3087_v48 = vmul.f32 %v3061_v62, %v6958_v47 }
 0x856   : > { %v3098_v3 = vmul.f32 %v7013_v11, %v3087_v48 }
 0x858   : > { %v7058_v32 = vadd.f32 %v7021_v41, %v3098_v3  ;;  %v5059_v3 = vld [vmem:[%s5997_s14 + $0x78] sm:$0xff] }
 0x859   : > { %4149 = vmatpush.bf16.msrb.mxu1 %v5059_v3 }
 0x85a   : > { %v3114_v30 = vpack.c.bf16 %v7058_v32, %v7055_v12 }
 0x85c   : > { %3236 = vmatmul.bf16.gmra.mxu2 %v3114_v30  ;;  %3265 = vmatmul.bf16.gmra.mxu3 %v3114_v30 }
 0x865   : > { %v2983_v37 = vpop.xlane.xlu0 %2982 }
 0x866   : > { %v2992_v9 = vmul.f32 %v2983_v37, %v6924_v40 }
 0x868   : > { %v3000_v13 = vadd.f32 1e-12, %v2992_v9 }
 0x86a   : > { %5398 = vrsqrt.f32 %v3000_v13  ;;  %vm3068_vm2 = vweird.f32 %v3000_v13 }
 0x86d   : > { %v2985_v47 = vpop.xlane.xlu2 %2984 }
 0x86e   : > { %v2993_v0 = vmul.f32 %v2985_v47, %v6924_v40 }
 0x870   : > { %v5399_v4 = vpop.eup %5398  ;;  %v3001_v55 = vadd.f32 1e-12, %v2993_v0 }
 0x871   : > { %v3063_v51 = vmul.f32 %v5399_v4, %v3000_v13  ;;  %vm3069_vm1 = vweird.f32 %v5399_v4 }
 0x872   : > { %5400 = vrsqrt.f32 %v3001_v55  ;;  %vm3070_vm3 = vmor %vm3068_vm2, %vm3069_vm1  ;;  %vm3078_vm5 = vweird.f32 %v3001_v55 }
 0x873   : > { %v3064_v52 = vmul.f32 %v5399_v4, %v3063_v51  ;;  %v5058_v51 = vld [vmem:[%s5997_s14 + $0x70] sm:$0xff] }
 0x874   : > { %4150 = vmatpush.bf16.msrb.mxu1 %v5058_v51 }
 0x875   : > { %v3065_v53 = vmul.f32 0.5, %v3064_v52 }
 0x877   : > { %v3066_v5 = vsub.f32 1.5, %v3065_v53 }
 0x878   : > { %v5401_v20 = vpop.eup %5400 }
 0x879   : > { %v3067_v28 = vmul.f32 %v5399_v4, %v3066_v5  ;;  %v3073_v63 = vmul.f32 %v5401_v20, %v3001_v55  ;;  %vm3079_vm4 = vweird.f32 %v5401_v20  ;;  %v5050_v55 = vld [vmem:[%s5997_s14 + $0x30] sm:$0xff] }
 0x87a   : > { %vm3080_vm6 = vmor %vm3078_vm5, %vm3079_vm4  ;;  %4121 = vmatpush.bf16.msrb.mxu0 %v5050_v55 }
 0x87b   : > { %v3074_v36 = vmul.f32 %v5401_v20, %v3073_v63  ;;  %v3071_v17 = vsel %vm3070_vm3, %v5399_v4, %v3067_v28 }
 0x87c   : > { %v3088_v44 = vmul.f32 %v3071_v17, %v6997_v61  ;;  %v3132_v61 = vld [vmem:[%s5987_s30] sm:$0x3] }
 0x87d   : > { %v3075_v39 = vmul.f32 0.5, %v3074_v36  ;;  %v7077_v25 = vperm.slane %v3132_v61, 0  ;;  %v7079_v57 = vperm.slane %v3132_v61, 1 }
 0x87e   : > { %v3099_v16 = vmul.f32 %v7013_v11, %v3088_v44 }
 0x87f   : > { %v3076_v27 = vsub.f32 1.5, %v3075_v39 }
 0x880   : > { %v7069_v22 = vadd.f32 %v7021_v41, %v3099_v16  ;;  %v5049_v16 = vld [vmem:[%s5997_s14 + $0x28] sm:$0xff] }
 0x881   : > { %v3077_v24 = vmul.f32 %v5401_v20, %v3076_v27  ;;  %4122 = vmatpush.bf16.msrb.mxu0 %v5049_v16  ;;  %v5045_v16 = vld [vmem:[%s5997_s14 + $0x8] sm:$0xff] }
 0x883   : > { %v3081_v21 = vsel %vm3080_vm6, %v5401_v20, %v3077_v24 }
 0x884   : > { %v3089_v18 = vmul.f32 %v3081_v21, %v7004_v26 }
 0x886   : > { %v3100_v56 = vmul.f32 %v7013_v11, %v3089_v18 }
 0x888   : > { %v7072_v50 = vadd.f32 %v7021_v41, %v3100_v56  ;;  %v5057_v56 = vld [vmem:[%s5997_s14 + $0x68] sm:$0xff] }
 0x889   : > { %4151 = vmatpush.bf16.msrb.mxu1 %v5057_v56  ;;  %v5053_v56 = vld [vmem:[%s5997_s14 + $0x48] sm:$0xff] }
 0x88a   : > { %v3115_v60 = vpack.c.bf16 %v7072_v50, %v7069_v22 }
 0x88c   : > { %3241 = vmatmul.bf16.gmra.mxu2 %v3115_v60  ;;  %3270 = vmatmul.bf16.gmra.mxu3 %v3115_v60 }
 0x892   : > { %v3227_v26 = vpop.f32.mrf.mxu2  ;;  %v3256_v6 = vpop.f32.mrf.mxu3 }
 0x893   : > { %v7082_v11 = vadd.f32 %v3227_v26, %v7077_v25  ;;  %v7085_v15 = vadd.f32 %v3256_v6, %v7079_v57 }
 0x895   : > { %v7088_v41 = vmul.f32 0.70710677, %v7082_v11  ;;  %v7091_v54 = vmul.f32 0.70710677, %v7085_v15 }
 0x897   : > { %v3308_v19 = vmul.f32 %v7088_v41, %v7088_v41  ;;  %v3348_v34 = vmul.f32 %v7091_v54, %v7091_v54 }
 0x899   : > { %v7097_v2 = vmin.f32 %v3308_v19, 16.0  ;;  %v7099_v1 = vmin.f32 %v3348_v34, 16.0 }
 0x89a   : > { %v3229_v14 = vpop.f32.mrf.mxu2  ;;  %v3258_v10 = vpop.f32.mrf.mxu3 }
 0x89b   : > { %v3310_v7 = vmul.f32 2.1237322e-06, %v7097_v2  ;;  %v3321_v49 = vmul.f32 3.8918573e-05, %v7097_v2  ;;  %v7104_v38 = vadd.f32 %v3229_v14, %v7077_v25  ;;  %v3361_v33 = vmul.f32 3.8918573e-05, %v7099_v1 }
 0x89c   : > { %v7108_v42 = vadd.f32 %v3258_v10, %v7079_v57  ;;  %v3350_v62 = vmul.f32 2.1237322e-06, %v7099_v1 }
 0x89d   : > { %v3311_v59 = vadd.f32 0.00028619796, %v3310_v7  ;;  %v3322_v31 = vadd.f32 0.001143296, %v3321_v49  ;;  %v3362_v8 = vadd.f32 0.001143296, %v3361_v33 }
 0x89e   : > { %v7111_v35 = vmul.f32 0.70710677, %v7104_v38  ;;  %v7116_v48 = vmul.f32 0.70710677, %v7108_v42  ;;  %v3351_v53 = vadd.f32 0.00028619796, %v3350_v62 }
 0x89f   : > { %v3323_v58 = vmul.f32 %v3322_v31, %v7097_v2  ;;  %v3363_v30 = vmul.f32 %v3362_v8, %v7099_v1  ;;  %v3312_v9 = vmul.f32 %v3311_v59, %v7097_v2  ;;  %v5048_v59 = vld [vmem:[%s5997_s14 + $0x20] sm:$0xff] }
 0x8a0   : > { %v3388_v37 = vmul.f32 %v7111_v35, %v7111_v35  ;;  %v3428_v47 = vmul.f32 %v7116_v48, %v7116_v48  ;;  %v3352_v21 = vmul.f32 %v3351_v53, %v7099_v1  ;;  %v5056_v31 = vld [vmem:[%s5997_s14 + $0x60] sm:$0xff]  ;;  %4123 = vmatpush.bf16.msrb.mxu0 %v5048_v59 }
 0x8a1   : > { %v3324_v13 = vadd.f32 0.014752088, %v3323_v58  ;;  %v3364_v0 = vadd.f32 0.014752088, %v3363_v30  ;;  %v3313_v36 = vadd.f32 0.0036580483, %v3312_v9  ;;  %4152 = vmatpush.bf16.msrb.mxu1 %v5056_v31 }
 0x8a2   : > { %v7126_v4 = vmin.f32 %v3388_v37, 16.0  ;;  %v7131_v5 = vmin.f32 %v3428_v47, 16.0  ;;  %v3353_v49 = vadd.f32 0.0036580483, %v3352_v21  ;;  %v5047_v37 = vld [vmem:[%s5997_s14 + $0x18] sm:$0xff]  ;;  %v5044_v31 = vld [vmem:[%s5997_s14] sm:$0xff] }
 0x8a3   : > { %v3325_v52 = vmul.f32 %v3324_v13, %v7097_v2  ;;  %v3365_v20 = vmul.f32 %v3364_v0, %v7099_v1  ;;  %v3314_v19 = vmul.f32 %v3313_v36, %v7097_v2  ;;  %v5055_v0 = vld [vmem:[%s5997_s14 + $0x58] sm:$0xff] }
 0x8a4   : > { %v3390_v28 = vmul.f32 2.1237322e-06, %v7126_v4  ;;  %v3401_v63 = vmul.f32 3.8918573e-05, %v7126_v4  ;;  %v3430_v18 = vmul.f32 2.1237322e-06, %v7131_v5  ;;  %v3354_v51 = vmul.f32 %v3353_v49, %v7099_v1  ;;  %4124 = vmatpush.bf16.msrb.mxu0 %v5047_v37 }
 0x8a5   : > { %v3326_v17 = vadd.f32 0.112945676, %v3325_v52  ;;  %v3366_v39 = vadd.f32 0.112945676, %v3365_v20  ;;  %v3441_v6 = vmul.f32 3.8918573e-05, %v7131_v5  ;;  %4153 = vmatpush.bf16.msrb.mxu1 %v5055_v0 }
 0x8a6   : > { %v3391_v27 = vadd.f32 0.00028619796, %v3390_v28  ;;  %v3402_v44 = vadd.f32 0.001143296, %v3401_v63  ;;  %v3431_v33 = vadd.f32 0.00028619796, %v3430_v18 }
 0x8a7   : > { %v3327_v24 = vmul.f32 %v3326_v17, %v7097_v2  ;;  %v3367_v60 = vmul.f32 %v3366_v39, %v7099_v1  ;;  %v3442_v45 = vadd.f32 0.001143296, %v3441_v6  ;;  %v3315_v3 = vadd.f32 0.05243302, %v3314_v19  ;;  %v5046_v20 = vld [vmem:[%s5997_s14 + $0x10] sm:$0xff] }
 0x8a8   : > { %v3392_v61 = vmul.f32 %v3391_v27, %v7126_v4  ;;  %v3403_v26 = vmul.f32 %v3402_v44, %v7126_v4  ;;  %v3432_v55 = vmul.f32 %v3431_v33, %v7131_v5  ;;  %v5054_v28 = vld [vmem:[%s5997_s14 + $0x50] sm:$0xff]  ;;  %v3355_v39 = vadd.f32 0.05243302, %v3354_v51  ;;  %4125 = vmatpush.bf16.msrb.mxu0 %v5046_v20 }
 0x8a9   : > { %v3328_v34 = vadd.f32 0.4994258, %v3327_v24  ;;  %v3368_v14 = vadd.f32 0.4994258, %v3367_v60  ;;  %v3443_v47 = vmul.f32 %v3442_v45, %v7131_v5  ;;  %v3316_v53 = vmul.f32 %v3315_v3, %v7097_v2  ;;  %4154 = vmatpush.bf16.msrb.mxu1 %v5054_v28 }
 0x8aa   : > { %v3404_v10 = vadd.f32 0.014752088, %v3403_v26  ;;  %v3393_v58 = vadd.f32 0.0036580483, %v3392_v61  ;;  %v3433_v17 = vadd.f32 0.0036580483, %v3432_v55 }
 0x8ab   : > { %v3329_v7 = vmul.f32 %v3328_v34, %v7097_v2  ;;  %v3369_v8 = vmul.f32 %v3368_v14, %v7099_v1  ;;  %v3444_v36 = vadd.f32 0.014752088, %v3443_v47  ;;  %v3317_v18 = vadd.f32 0.18741608, %v3316_v53 }
 0x8ac   : > { %v3405_v62 = vmul.f32 %v3404_v10, %v7126_v4  ;;  %v3394_v52 = vmul.f32 %v3393_v58, %v7126_v4  ;;  %v3434_v19 = vmul.f32 %v3433_v17, %v7131_v5  ;;  %v3356_v10 = vmul.f32 %v3355_v39, %v7099_v1  ;;  %4126 = vmatpush.bf16.msrb.mxu0 %v5045_v16 }
 0x8ad   : > { %v7151_v30 = vadd.f32 1.0, %v3329_v7  ;;  %v7154_v9 = vadd.f32 1.0, %v3369_v8  ;;  %v3445_v24 = vmul.f32 %v3444_v36, %v7131_v5  ;;  %v3318_v33 = vmul.f32 %v3317_v18, %v7097_v2  ;;  %4155 = vmatpush.bf16.msrb.mxu1 %v5053_v56  ;;  %v5052_v8 = vld [vmem:[%s5997_s14 + $0x40] sm:$0xff] }
 0x8ae   : > { %v3406_v13 = vadd.f32 0.112945676, %v3405_v62  ;;  %v3395_v27 = vadd.f32 0.05243302, %v3394_v52  ;;  %v3435_v45 = vadd.f32 0.05243302, %v3434_v19 }
 0x8af   : > { %5402 = vrcp.f32 %v7151_v30  ;;  %v3446_v34 = vadd.f32 0.112945676, %v3445_v24  ;;  %v3357_v47 = vadd.f32 0.18741608, %v3356_v10  ;;  %v3319_v55 = vadd.f32 1.1283791, %v3318_v33 }
 0x8b0   : > { %5404 = vrcp.f32 %v7154_v9  ;;  %v3407_v63 = vmul.f32 %v3406_v13, %v7126_v4  ;;  %v3396_v7 = vmul.f32 %v3395_v27, %v7126_v4  ;;  %v3342_v13 = vand.u32 2147483648, %v7151_v30  ;;  %4127 = vmatpush.bf16.msrb.mxu0 %v5044_v31 }
 0x8b1   : > { %v3447_v59 = vmul.f32 %v3446_v34, %v7131_v5  ;;  %vm3336_vm8 = vweird.f32 %v7151_v30  ;;  %v3340_v2 = vand.u32 2147483647, %v7151_v30  ;;  %4156 = vmatpush.bf16.msrb.mxu1 %v5052_v8  ;;  %v3436_v20 = vmul.f32 %v3435_v45, %v7131_v5 }
 0x8b2   : > { %v3408_v44 = vadd.f32 0.4994258, %v3407_v63  ;;  %v3397_v0 = vadd.f32 0.18741608, %v3396_v7  ;;  %v3343_v36 = vor.u32 1.1754944e-38, %v3342_v13  ;;  %v3320_v39 = vmul.f32 %v3319_v55, %v7088_v41 }
 0x8b3   : > { %v3448_v3 = vadd.f32 0.4994258, %v3447_v59  ;;  %vm3341_vm10 = vcmp.eq.f32.partialorder %v3340_v2, 8.507059e+37  ;;  %v3382_v18 = vand.u32 2147483648, %v7154_v9  ;;  %v3437_v56 = vadd.f32 0.18741608, %v3436_v20 }
 0x8b4   : > { %v3409_v26 = vmul.f32 %v3408_v44, %v7126_v4  ;;  %v3398_v17 = vmul.f32 %v3397_v0, %v7126_v4  ;;  %vm3376_vm12 = vweird.f32 %v7154_v9  ;;  %v3276_v2 = vmul.f32 0.5, %v7082_v11 }
 0x8b5   : > { %v5403_v21 = vpop.eup %5402  ;;  %v3449_v51 = vmul.f32 %v3448_v3, %v7131_v5 }
 0x8b6   : > { %v7170_v60 = vpop.eup %5404  ;;  %v3332_v61 = vmul.f32 %v5403_v21, %v7151_v30  ;;  %v3410_v49 = vadd.f32 1.0, %v3409_v26  ;;  %vm3337_vm7 = vweird.f32 %v5403_v21  ;;  %v3358_v30 = vmul.f32 %v3357_v47, %v7099_v1 }
 0x8b7   : > { %v3372_v6 = vmul.f32 %v7170_v60, %v7154_v9  ;;  %vm3338_vm9 = vmor %vm3336_vm8, %vm3337_vm7  ;;  %v7189_v28 = vadd.f32 1.0, %v3449_v51  ;;  %vm3377_vm11 = vweird.f32 %v7170_v60  ;;  %v3399_v41 = vadd.f32 1.1283791, %v3398_v17 }
 0x8b8   : > { %v3333_v14 = vsub.f32 1.0, %v3332_v61  ;;  %5406 = vrcp.f32 %v3410_v49  ;;  %v3420_v4 = vand.u32 2147483647, %v3410_v49  ;;  %v3422_v61 = vand.u32 2147483648, %v3410_v49  ;;  %vm7200_vm13 = vmor %vm3376_vm12, %vm3377_vm11 }
 0x8b9   : > { %v3373_v62 = vsub.f32 1.0, %v3372_v6  ;;  %5408 = vrcp.f32 %v7189_v28  ;;  %v3359_v19 = vadd.f32 1.1283791, %v3358_v30  ;;  %vm3416_vm15 = vweird.f32 %v3410_v49 }
 0x8ba   : > { %v3334_v58 = vmul.f32 %v5403_v21, %v3333_v14  ;;  %v3383_v14 = vor.u32 1.1754944e-38, %v3382_v18  ;;  %v3400_v33 = vmul.f32 %v3399_v41, %v7111_v35  ;;  %vm3421_vm2 = vcmp.eq.f32.partialorder %v3420_v4, 8.507059e+37 }
 0x8bb   : > { %v3374_v52 = vmul.f32 %v7170_v60, %v3373_v62  ;;  %v3423_v59 = vor.u32 1.1754944e-38, %v3422_v61  ;;  %v3360_v45 = vmul.f32 %v3359_v19, %v7091_v54  ;;  %v3462_v47 = vand.u32 2147483648, %v7189_v28 }
 0x8bc   : > { %v3335_v37 = vadd.f32 %v5403_v21, %v3334_v58  ;;  %v3278_v51 = vmul.f32 0.5, %v7104_v38  ;;  %vm3456_vm4 = vweird.f32 %v7189_v28  ;;  %v3277_v61 = vmul.f32 0.5, %v7085_v15 }
 0x8bd   : > { %v3375_v24 = vadd.f32 %v7170_v60, %v3374_v52  ;;  %v3463_v17 = vor.u32 1.1754944e-38, %v3462_v47 }
 0x8be   : > { %v3339_v53 = vsel %vm3338_vm9, %v5403_v21, %v3335_v37  ;;  %v5407_v63 = vpop.eup %5406  ;;  %v3380_v21 = vand.u32 2147483647, %v7154_v9  ;;  %v3438_v9 = vmul.f32 %v3437_v56, %v7131_v5  ;;  %v3460_v5 = vand.u32 2147483647, %v7189_v28 }
 0x8bf   : > { %v3412_v27 = vmul.f32 %v5407_v63, %v3410_v49  ;;  %v3344_v44 = vsel %vm3341_vm10, %v3343_v36, %v3339_v53  ;;  %vm3417_vm14 = vweird.f32 %v5407_v63  ;;  %v3379_v34 = vsel %vm7200_vm13, %v7170_v60, %v3375_v24  ;;  %v5409_v7 = vpop.eup %5408 }
 0x8c0   : > { %v3345_v1 = vmul.f32 %v3344_v44, %v3320_v39  ;;  %vm3381_vm0 = vcmp.eq.f32.partialorder %v3380_v21, 8.507059e+37  ;;  %vm3418_vm1 = vmor %vm3416_vm15, %vm3417_vm14  ;;  %v3452_v62 = vmul.f32 %v5409_v7, %v7189_v28  ;;  %v3439_v37 = vadd.f32 1.1283791, %v3438_v9 }
 0x8c1   : > { %v3413_v16 = vsub.f32 1.0, %v3412_v27  ;;  %v3384_v8 = vsel %vm3381_vm0, %v3383_v14, %v3379_v34  ;;  %vm3457_vm3 = vweird.f32 %v5409_v7  ;;  %vm3461_vm6 = vcmp.eq.f32.partialorder %v3460_v5, 8.507059e+37 }
 0x8c2   : > { %v4904_v31 = vclamps-f32 %v3345_v1, 1.0  ;;  %v3453_v49 = vsub.f32 1.0, %v3452_v62  ;;  %v3385_v13 = vmul.f32 %v3384_v8, %v3360_v45  ;;  %v3440_v54 = vmul.f32 %v3439_v37, %v7116_v48  ;;  %vm3458_vm5 = vmor %vm3456_vm4, %vm3457_vm3 }
 0x8c3   : > { %v3414_v6 = vmul.f32 %v5407_v63, %v3413_v16  ;;  %v3279_v1 = vmul.f32 0.5, %v7108_v42 }
 0x8c4   : > { %v3948_v35 = vadd.f32 1.0, %v4904_v31  ;;  %v3454_v55 = vmul.f32 %v5409_v7, %v3453_v49  ;;  %v4905_v36 = vclamps-f32 %v3385_v13, 1.0 }
 0x8c5   : > { %v3415_v10 = vadd.f32 %v5407_v63, %v3414_v6 }
 0x8c6   : > { %v3455_v53 = vadd.f32 %v5409_v7, %v3454_v55  ;;  %v3964_v11 = vmul.f32 %v3948_v35, %v3276_v2  ;;  %v3949_v16 = vadd.f32 1.0, %v4905_v36 }
 0x8c7   : > { %v3419_v58 = vsel %vm3418_vm1, %v5407_v63, %v3415_v10 }
 0x8c8   : > { %v3424_v60 = vsel %vm3421_vm2, %v3423_v59, %v3419_v58  ;;  %v3459_v38 = vsel %vm3458_vm5, %v5409_v7, %v3455_v53 }
 0x8c9   : > { %v3425_v3 = vmul.f32 %v3424_v60, %v3400_v33  ;;  %v3464_v44 = vsel %vm3461_vm6, %v3463_v17, %v3459_v38  ;;  %v3965_v33 = vmul.f32 %v3949_v16, %v3277_v61 }
 0x8ca   : > { %v3465_v24 = vmul.f32 %v3464_v44, %v3440_v54 }
 0x8cb   : > { %v4906_v0 = vclamps-f32 %v3425_v3, 1.0 }
 0x8cc   : > { %v4907_v56 = vclamps-f32 %v3465_v24, 1.0 }
 0x8cd   : > { %v3950_v52 = vadd.f32 1.0, %v4906_v0 }
 0x8ce   : > { %v3951_v26 = vadd.f32 1.0, %v4907_v56 }
 0x8cf   : > { %v3232_v20 = vpop.f32.mrf.mxu2  ;;  %v3261_v63 = vpop.f32.mrf.mxu3  ;;  %v3966_v27 = vmul.f32 %v3950_v52, %v3278_v51 }
 0x8d0   : > { %v7218_v39 = vadd.f32 %v3232_v20, %v7077_v25  ;;  %v7221_v30 = vadd.f32 %v3261_v63, %v7079_v57  ;;  %v3967_v59 = vmul.f32 %v3951_v26, %v3279_v1 }
 0x8d1   : > { %v3980_v28 = vpack.c.bf16 %v3966_v27, %v3964_v11 }
 0x8d2   : > { %v7224_v48 = vmul.f32 0.70710677, %v7218_v39  ;;  %v7227_v21 = vmul.f32 0.70710677, %v7221_v30  ;;  %v3981_v58 = vpack.c.bf16 %v3967_v59, %v3965_v33 }
 0x8d3   : > { %4128 = vmatmul.bf16.vlgmr.msrb.gmra.mxu0 %v3980_v28 }
 0x8d4   : > { %v3468_v18 = vmul.f32 %v7224_v48, %v7224_v48  ;;  %v3508_v41 = vmul.f32 %v7227_v21, %v7227_v21  ;;  %4157 = vmatmul.bf16.vlgmr.msrb.gmra.mxu1 %v3981_v58 }
 0x8d6   : > { %v7233_v4 = vmin.f32 %v3468_v18, 16.0  ;;  %v7237_v6 = vmin.f32 %v3508_v41, 16.0 }
 0x8d7   : > { %v3234_v19 = vpop.f32.mrf.mxu2  ;;  %v3263_v34 = vpop.f32.mrf.mxu3 }
 0x8d8   : > { %v3470_v14 = vmul.f32 2.1237322e-06, %v7233_v4  ;;  %v3481_v10 = vmul.f32 3.8918573e-05, %v7233_v4  ;;  %v7242_v9 = vadd.f32 %v3234_v19, %v7077_v25  ;;  %v7245_v7 = vadd.f32 %v3263_v34, %v7079_v57 }
 0x8d9   : > { %v3510_v15 = vmul.f32 2.1237322e-06, %v7237_v6  ;;  %v3521_v42 = vmul.f32 3.8918573e-05, %v7237_v6 }
 0x8da   : > { %v3471_v31 = vadd.f32 0.00028619796, %v3470_v14  ;;  %v3482_v8 = vadd.f32 0.001143296, %v3481_v10  ;;  %v7250_v60 = vmul.f32 0.70710677, %v7242_v9 }
 0x8db   : > { %v3511_v62 = vadd.f32 0.00028619796, %v3510_v15  ;;  %v3522_v45 = vadd.f32 0.001143296, %v3521_v42  ;;  %v7255_v49 = vmul.f32 0.70710677, %v7245_v7 }
 0x8dc   : > { %v3472_v3 = vmul.f32 %v3471_v31, %v7233_v4  ;;  %v3483_v37 = vmul.f32 %v3482_v8, %v7233_v4  ;;  %v3548_v47 = vmul.f32 %v7250_v60, %v7250_v60 }
 0x8dd   : > { %v3512_v13 = vmul.f32 %v3511_v62, %v7237_v6  ;;  %v3523_v5 = vmul.f32 %v3522_v45, %v7237_v6  ;;  %v3588_v55 = vmul.f32 %v7255_v49, %v7255_v49 }
 0x8de   : > { %v3473_v35 = vadd.f32 0.0036580483, %v3472_v3  ;;  %v3484_v0 = vadd.f32 0.014752088, %v3483_v37  ;;  %v7263_v52 = vmin.f32 %v3548_v47, 16.0 }
 0x8df   : > { %v3513_v2 = vadd.f32 0.0036580483, %v3512_v13  ;;  %v3524_v51 = vadd.f32 0.014752088, %v3523_v5  ;;  %v7267_v20 = vmin.f32 %v3588_v55, 16.0  ;;  %v3237_v5 = vpop.f32.mrf.mxu2 }
 0x8e0   : > { %v3474_v54 = vmul.f32 %v3473_v35, %v7233_v4  ;;  %v3485_v53 = vmul.f32 %v3484_v0, %v7233_v4  ;;  %v3550_v17 = vmul.f32 2.1237322e-06, %v7263_v52  ;;  %v3561_v11 = vmul.f32 3.8918573e-05, %v7263_v52 }
 0x8e1   : > { %v3514_v63 = vmul.f32 %v3513_v2, %v7237_v6  ;;  %v3525_v36 = vmul.f32 %v3524_v51, %v7237_v6  ;;  %v3590_v44 = vmul.f32 2.1237322e-06, %v7267_v20  ;;  %v3601_v19 = vmul.f32 3.8918573e-05, %v7267_v20 }
 0x8e2   : > { %v3475_v27 = vadd.f32 0.05243302, %v3474_v54  ;;  %v3486_v38 = vadd.f32 0.112945676, %v3485_v53  ;;  %v3551_v18 = vadd.f32 0.00028619796, %v3550_v17  ;;  %v7296_v54 = vadd.f32 %v3237_v5, %v7077_v25  ;;  %v3266_v17 = vpop.f32.mrf.mxu3 }
 0x8e3   : > { %v3515_v28 = vadd.f32 0.05243302, %v3514_v63  ;;  %v3526_v24 = vadd.f32 0.112945676, %v3525_v36  ;;  %v3562_v41 = vadd.f32 0.001143296, %v3561_v11 }
 0x8e4   : > { %v3476_v16 = vmul.f32 %v3475_v27, %v7233_v4  ;;  %v3487_v56 = vmul.f32 %v3486_v38, %v7233_v4  ;;  %v3591_v61 = vadd.f32 0.00028619796, %v3590_v44  ;;  %v3552_v26 = vmul.f32 %v3551_v18, %v7263_v52 }
 0x8e5   : > { %v3527_v1 = vmul.f32 %v3526_v24, %v7237_v6  ;;  %v3516_v14 = vmul.f32 %v3515_v28, %v7237_v6  ;;  %v3563_v10 = vmul.f32 %v3562_v41, %v7263_v52  ;;  %v3602_v3 = vadd.f32 0.001143296, %v3601_v19 }
 0x8e6   : > { %v3488_v34 = vadd.f32 0.4994258, %v3487_v56  ;;  %v3592_v33 = vmul.f32 %v3591_v61, %v7267_v20  ;;  %v3477_v59 = vadd.f32 0.18741608, %v3476_v16  ;;  %v3553_v42 = vadd.f32 0.0036580483, %v3552_v26 }
 0x8e7   : > { %v3528_v15 = vadd.f32 0.4994258, %v3527_v1  ;;  %v3564_v8 = vadd.f32 0.014752088, %v3563_v10  ;;  %v3517_v13 = vadd.f32 0.18741608, %v3516_v14  ;;  %v3603_v51 = vmul.f32 %v3602_v3, %v7267_v20 }
 0x8e8   : > { %v3489_v31 = vmul.f32 %v3488_v34, %v7233_v4  ;;  %v3593_v58 = vadd.f32 0.0036580483, %v3592_v33  ;;  %v3554_v45 = vmul.f32 %v3553_v42, %v7263_v52  ;;  %v3478_v47 = vmul.f32 %v3477_v59, %v7233_v4 }
 0x8e9   : > { %v3529_v62 = vmul.f32 %v3528_v15, %v7237_v6  ;;  %v3565_v0 = vmul.f32 %v3564_v8, %v7263_v52  ;;  %v3518_v63 = vmul.f32 %v3517_v13, %v7237_v6  ;;  %v3604_v27 = vadd.f32 0.014752088, %v3603_v51 }
 0x8ea   : > { %v7285_v37 = vadd.f32 1.0, %v3489_v31  ;;  %v3594_v55 = vmul.f32 %v3593_v58, %v7267_v20  ;;  %v3555_v2 = vadd.f32 0.05243302, %v3554_v45  ;;  %v3479_v53 = vadd.f32 1.1283791, %v3478_v47 }
 0x8eb   : > { %v7288_v35 = vadd.f32 1.0, %v3529_v62  ;;  %v3566_v4 = vadd.f32 0.112945676, %v3565_v0  ;;  %v7303_v28 = vmul.f32 0.70710677, %v7296_v54  ;;  %v3605_v18 = vmul.f32 %v3604_v27, %v7267_v20 }
 0x8ec   : > { %5410 = vrcp.f32 %v7285_v37  ;;  %v3595_v36 = vadd.f32 0.05243302, %v3594_v55  ;;  %v3556_v11 = vmul.f32 %v3555_v2, %v7263_v52  ;;  %v7309_v16 = vadd.f32 %v3266_v17, %v7079_v57 }
 0x8ed   : > { %5412 = vrcp.f32 %v7288_v35  ;;  %v3567_v38 = vmul.f32 %v3566_v4, %v7263_v52  ;;  %v7314_v56 = vmul.f32 %v3479_v53, %v7224_v48  ;;  %v3519_v61 = vadd.f32 1.1283791, %v3518_v63 }
 0x8ee   : > { %v3596_v44 = vmul.f32 %v3595_v36, %v7267_v20  ;;  %v3500_v26 = vand.u32 2147483647, %v7285_v37  ;;  %v3557_v34 = vadd.f32 0.18741608, %v3556_v11  ;;  %v3606_v14 = vadd.f32 0.112945676, %v3605_v18  ;;  %v3239_v36 = vpop.f32.mrf.mxu2 }
 0x8ef   : > { %v3568_v1 = vadd.f32 0.4994258, %v3567_v38  ;;  %v3628_v48 = vmul.f32 %v7303_v28, %v7303_v28  ;;  %vm3496_vm7 = vweird.f32 %v7285_v37  ;;  %v7327_v31 = vmul.f32 0.70710677, %v7309_v16 }
 0x8f0   : > { %v3597_v59 = vadd.f32 0.18741608, %v3596_v44  ;;  %v3607_v42 = vmul.f32 %v3606_v14, %v7267_v20  ;;  %v3502_v58 = vand.u32 2147483648, %v7285_v37  ;;  %v3520_v3 = vmul.f32 %v3519_v61, %v7227_v21 }
 0x8f1   : > { %v3569_v33 = vmul.f32 %v3568_v1, %v7263_v52  ;;  %v7333_v45 = vmin.f32 %v3628_v48, 16.0  ;;  %v3558_v5 = vmul.f32 %v3557_v34, %v7263_v52  ;;  %vm7338_vm8 = vcmp.eq.f32.partialorder %v3500_v26, 8.507059e+37 }
 0x8f2   : > { %v7305_v24 = vpop.eup %5410  ;;  %v3608_v47 = vadd.f32 0.4994258, %v3607_v42  ;;  %v3540_v55 = vand.u32 2147483647, %v7288_v35  ;;  %v3598_v2 = vmul.f32 %v3597_v59, %v7267_v20  ;;  %v3668_v52 = vmul.f32 %v7327_v31, %v7327_v31 }
 0x8f3   : > { %v7311_v6 = vpop.eup %5412  ;;  %v3492_v41 = vmul.f32 %v7305_v24, %v7285_v37  ;;  %v7331_v62 = vadd.f32 1.0, %v3569_v33  ;;  %vm3497_vm9 = vweird.f32 %v7305_v24  ;;  %v3630_v63 = vmul.f32 2.1237322e-06, %v7333_v45 }
 0x8f4   : > { %v3532_v19 = vmul.f32 %v7311_v6, %v7288_v35  ;;  %vm3537_vm10 = vweird.f32 %v7311_v6  ;;  %v3609_v21 = vmul.f32 %v3608_v47, %v7267_v20  ;;  %v3641_v4 = vmul.f32 3.8918573e-05, %v7333_v45  ;;  %vm7359_vm11 = vmor %vm3496_vm7, %vm3497_vm9 }
 0x8f5   : > { %v3493_v10 = vsub.f32 1.0, %v3492_v41  ;;  %5414 = vrcp.f32 %v7331_v62  ;;  %v3503_v17 = vor.u32 1.1754944e-38, %v3502_v58  ;;  %v3542_v11 = vand.u32 2147483648, %v7288_v35 }
 0x8f6   : > { %v3533_v15 = vsub.f32 1.0, %v3532_v19  ;;  %v3559_v27 = vadd.f32 1.1283791, %v3558_v5  ;;  %v7355_v38 = vadd.f32 1.0, %v3609_v21  ;;  %vm3536_vm12 = vweird.f32 %v7288_v35 }
 0x8f7   : > { %v3494_v8 = vmul.f32 %v7305_v24, %v3493_v10  ;;  %v3580_v44 = vand.u32 2147483647, %v7331_v62  ;;  %v3599_v18 = vadd.f32 1.1283791, %v3598_v2  ;;  %v3642_v41 = vadd.f32 0.001143296, %v3641_v4  ;;  %vm7367_vm13 = vmor %vm3536_vm12, %vm3537_vm10 }
 0x8f8   : > { %v3534_v13 = vmul.f32 %v7311_v6, %v3533_v15  ;;  %v3582_v1 = vand.u32 2147483648, %v7331_v62  ;;  %5416 = vrcp.f32 %v7355_v38  ;;  %v7373_v37 = vmin.f32 %v3668_v52, 16.0 }
 0x8f9   : > { %v3495_v51 = vadd.f32 %v7305_v24, %v3494_v8  ;;  %v7376_v26 = vadd.f32 %v3239_v36, %v7077_v25  ;;  %v3631_v14 = vadd.f32 0.00028619796, %v3630_v63  ;;  %v3643_v10 = vmul.f32 %v3642_v41, %v7333_v45 }
 0x8fa   : > { %v3535_v53 = vadd.f32 %v7311_v6, %v3534_v13  ;;  %vm3541_vm14 = vcmp.eq.f32.partialorder %v3540_v55, 8.507059e+37  ;;  %v3543_v33 = vor.u32 1.1754944e-38, %v3542_v11  ;;  %v3560_v59 = vmul.f32 %v3559_v27, %v7250_v60 }
 0x8fb   : > { %v5415_v35 = vpop.eup %5414  ;;  %v3499_v19 = vsel %vm7359_vm11, %v7305_v24, %v3495_v51  ;;  %vm3576_vm15 = vweird.f32 %v7331_v62  ;;  %vm7388_vm0 = vcmp.eq.f32.partialorder %v3580_v44, 8.507059e+37  ;;  %v3600_v24 = vmul.f32 %v3599_v18, %v7255_v49 }
 0x8fc   : > { %v3539_v34 = vsel %vm7367_vm13, %v7311_v6, %v3535_v53  ;;  %v3572_v48 = vmul.f32 %v5415_v35, %v7331_v62  ;;  %v3644_v42 = vadd.f32 0.014752088, %v3643_v10  ;;  %v3504_v6 = vsel %vm7338_vm8, %v3503_v17, %v3499_v19 }
 0x8fd   : > { %v3544_v8 = vsel %vm3541_vm14, %v3543_v33, %v3539_v34  ;;  %v3681_v13 = vmul.f32 3.8918573e-05, %v7373_v37  ;;  %v3583_v5 = vor.u32 1.1754944e-38, %v3582_v1  ;;  %v3632_v60 = vmul.f32 %v3631_v14, %v7333_v45 }
 0x8fe   : > { %v3573_v58 = vsub.f32 1.0, %v3572_v48  ;;  %v3645_v47 = vmul.f32 %v3644_v42, %v7333_v45  ;;  %v7399_v55 = vmul.f32 0.70710677, %v7376_v26  ;;  %v5417_v2 = vpop.eup %5416  ;;  %vm3577_vm1 = vweird.f32 %v5415_v35  ;;  %v3268_v42 = vpop.f32.mrf.mxu3 }
 0x8ff   : > { %v3670_v49 = vmul.f32 2.1237322e-06, %v7373_v37  ;;  %v3682_v52 = vadd.f32 0.001143296, %v3681_v13  ;;  %v3505_v0 = vmul.f32 %v3504_v6, %v7314_v56  ;;  %v3545_v51 = vmul.f32 %v3544_v8, %v3520_v3  ;;  %vm3578_vm2 = vmor %vm3576_vm15, %vm3577_vm1 }
 0x900   : > { %v3574_v21 = vmul.f32 %v5415_v35, %v3573_v58  ;;  %v3612_v53 = vmul.f32 %v5417_v2, %v7355_v38  ;;  %v3646_v63 = vadd.f32 0.112945676, %v3645_v47  ;;  %v3620_v36 = vand.u32 2147483647, %v7355_v38 }
 0x901   : > { %v3683_v17 = vmul.f32 %v3682_v52, %v7373_v37  ;;  %v3708_v11 = vmul.f32 %v7399_v55, %v7399_v55  ;;  %v3622_v20 = vand.u32 2147483648, %v7355_v38  ;;  %v3633_v44 = vadd.f32 0.0036580483, %v3632_v60 }
 0x902   : > { %v3575_v4 = vadd.f32 %v5415_v35, %v3574_v21  ;;  %v3613_v27 = vsub.f32 1.0, %v3612_v53  ;;  %v3647_v56 = vmul.f32 %v3646_v63, %v7333_v45  ;;  %v3671_v18 = vadd.f32 0.00028619796, %v3670_v49 }
 0x903   : > { %v3684_v41 = vadd.f32 0.014752088, %v3683_v17  ;;  %v7412_v61 = vmin.f32 %v3708_v11, 16.0  ;;  %vm3617_vm3 = vweird.f32 %v5417_v2  ;;  %vm3616_vm4 = vweird.f32 %v7355_v38 }
 0x904   : > { %v3579_v3 = vsel %vm3578_vm2, %v5415_v35, %v3575_v4  ;;  %v3614_v19 = vmul.f32 %v5417_v2, %v3613_v27  ;;  %v3648_v34 = vadd.f32 0.4994258, %v3647_v56  ;;  %vm3621_vm5 = vcmp.eq.f32.partialorder %v3620_v36, 8.507059e+37  ;;  %vm3618_vm6 = vmor %vm3616_vm4, %vm3617_vm3 }
 0x905   : > { %v3584_v1 = vsel %vm7388_vm0, %v3583_v5, %v3579_v3  ;;  %v3685_v62 = vmul.f32 %v3684_v41, %v7373_v37  ;;  %v3710_v10 = vmul.f32 2.1237322e-06, %v7412_v61  ;;  %v3634_v35 = vmul.f32 %v3633_v44, %v7333_v45 }
 0x906   : > { %v3585_v14 = vmul.f32 %v3584_v1, %v3560_v59  ;;  %v3615_v33 = vadd.f32 %v5417_v2, %v3614_v19  ;;  %v3649_v48 = vmul.f32 %v3648_v34, %v7333_v45  ;;  %v3623_v15 = vor.u32 1.1754944e-38, %v3622_v20 }
 0x907   : > { %v3672_v8 = vmul.f32 %v3671_v18, %v7373_v37  ;;  %v3686_v58 = vadd.f32 0.112945676, %v3685_v62  ;;  %v3711_v38 = vadd.f32 0.00028619796, %v3710_v10  ;;  %v3721_v5 = vmul.f32 3.8918573e-05, %v7412_v61 }
 0x908   : > { %v4910_v6 = vclamps-f32 %v3585_v14, 1.0  ;;  %v3619_v59 = vsel %vm3618_vm6, %v5417_v2, %v3615_v33  ;;  %v7422_v13 = vadd.f32 1.0, %v3649_v48  ;;  %v4908_v60 = vclamps-f32 %v3505_v0, 1.0 }
 0x909   : > { %v3624_v47 = vsel %vm3621_vm5, %v3623_v15, %v3619_v59  ;;  %v3687_v21 = vmul.f32 %v3686_v58, %v7373_v37  ;;  %v7427_v49 = vadd.f32 %v3268_v42, %v7079_v57  ;;  %v3635_v53 = vadd.f32 0.05243302, %v3634_v35 }
 0x90a   : > { %v3625_v52 = vmul.f32 %v3624_v47, %v3600_v24  ;;  %5418 = vrcp.f32 %v7422_v13  ;;  %v4909_v63 = vclamps-f32 %v3545_v51, 1.0  ;;  %v3954_v4 = vadd.f32 1.0, %v4910_v6 }
 0x90b   : > { %v3673_v36 = vadd.f32 0.0036580483, %v3672_v8  ;;  %v3688_v17 = vadd.f32 0.4994258, %v3687_v21  ;;  %v3712_v11 = vmul.f32 %v3711_v38, %v7412_v61  ;;  %v3722_v27 = vadd.f32 0.001143296, %v3721_v5 }
 0x90c   : > { %v4911_v2 = vclamps-f32 %v3625_v52, 1.0  ;;  %v3280_v0 = vmul.f32 0.5, %v7218_v39  ;;  %v3952_v20 = vadd.f32 1.0, %v4908_v60  ;;  %v3282_v44 = vmul.f32 0.5, %v7242_v9 }
 0x90d   : > { %v7434_v56 = vmul.f32 0.70710677, %v7427_v49  ;;  %v3636_v3 = vmul.f32 %v3635_v53, %v7333_v45  ;;  %v3689_v51 = vmul.f32 %v3688_v17, %v7373_v37  ;;  %v3723_v18 = vmul.f32 %v3722_v27, %v7412_v61 }
 0x90e   : > { %v3955_v24 = vadd.f32 1.0, %v4911_v2  ;;  %v3953_v41 = vadd.f32 1.0, %v4909_v63  ;;  %v3283_v1 = vmul.f32 0.5, %v7245_v7  ;;  %v3713_v19 = vadd.f32 0.0036580483, %v3712_v11 }
 0x90f   : > { %v3748_v39 = vmul.f32 %v7434_v56, %v7434_v56  ;;  %v3970_v9 = vmul.f32 %v3954_v4, %v3282_v44  ;;  %v3674_v14 = vmul.f32 %v3673_v36, %v7373_v37  ;;  %v7445_v62 = vadd.f32 1.0, %v3689_v51  ;;  %v3242_v53 = vpop.f32.mrf.mxu2  ;;  %v3271_v63 = vpop.f32.mrf.mxu3 }
 0x910   : > { %v7442_v34 = vpop.eup %5418  ;;  %v3724_v10 = vadd.f32 0.014752088, %v3723_v18  ;;  %v3281_v33 = vmul.f32 0.5, %v7221_v30  ;;  %v3968_v7 = vmul.f32 %v3952_v20, %v3280_v0  ;;  %v3971_v42 = vmul.f32 %v3955_v24, %v3283_v1 }
 0x911   : > { %v3652_v35 = vmul.f32 %v7442_v34, %v7422_v13  ;;  %v7450_v48 = vmin.f32 %v3748_v39, 16.0  ;;  %v3637_v6 = vadd.f32 0.18741608, %v3636_v3  ;;  %5420 = vrcp.f32 %v7445_v62 }
 0x912   : > { %v3714_v8 = vmul.f32 %v3713_v19, %v7412_v61  ;;  %v3725_v58 = vmul.f32 %v3724_v10, %v7412_v61  ;;  %v3969_v38 = vmul.f32 %v3953_v41, %v3281_v33  ;;  %v3675_v5 = vadd.f32 0.05243302, %v3674_v14 }
 0x913   : > { %v3653_v15 = vsub.f32 1.0, %v3652_v35  ;;  %v3750_v59 = vmul.f32 2.1237322e-06, %v7450_v48  ;;  %v3761_v30 = vmul.f32 3.8918573e-05, %v7450_v48  ;;  %v3982_v60 = vpack.c.bf16 %v3970_v9, %v3968_v7 }
 0x914   : > { %v3726_v21 = vadd.f32 0.112945676, %v3725_v58  ;;  %v7459_v36 = vadd.f32 %v3242_v53, %v7077_v25  ;;  %v3983_v2 = vpack.c.bf16 %v3971_v42, %v3969_v38  ;;  %v3638_v17 = vmul.f32 %v3637_v6, %v7333_v45 }
 0x915   : > { %v3654_v47 = vmul.f32 %v7442_v34, %v3653_v15  ;;  %v3751_v52 = vadd.f32 0.00028619796, %v3750_v59  ;;  %v3762_v4 = vadd.f32 0.001143296, %v3761_v30  ;;  %4133 = vmatmul.bf16.gmra.mxu0 %v3982_v60  ;;  %v3715_v11 = vadd.f32 0.05243302, %v3714_v8 }
 0x916   : > { %v3727_v27 = vmul.f32 %v3726_v21, %v7412_v61  ;;  %v3676_v44 = vmul.f32 %v3675_v5, %v7373_v37  ;;  %v7469_v3 = vmul.f32 0.70710677, %v7459_v36  ;;  %v7472_v51 = vadd.f32 %v3271_v63, %v7079_v57  ;;  %4162 = vmatmul.bf16.gmra.mxu1 %v3983_v2 }
 0x917   : > { %v3752_v0 = vmul.f32 %v3751_v52, %v7450_v48  ;;  %v7464_v20 = vpop.eup %5420  ;;  %v3763_v24 = vmul.f32 %v3762_v4, %v7450_v48  ;;  %v3655_v45 = vadd.f32 %v7442_v34, %v3654_v47  ;;  %vm3657_vm7 = vweird.f32 %v7442_v34 }
 0x918   : > { %v3662_v18 = vand.u32 2147483648, %v7422_v13  ;;  %v3692_v41 = vmul.f32 %v7464_v20, %v7445_v62  ;;  %vm3656_vm8 = vweird.f32 %v7422_v13  ;;  %v3728_v1 = vadd.f32 0.4994258, %v3727_v27 }
 0x919   : > { %v3753_v19 = vadd.f32 0.0036580483, %v3752_v0  ;;  %v3764_v39 = vadd.f32 0.014752088, %v3763_v24  ;;  %v3660_v9 = vand.u32 2147483647, %v7422_v13  ;;  %v3716_v10 = vmul.f32 %v3715_v11, %v7412_v61  ;;  %vm7484_vm9 = vmor %vm3656_vm8, %vm3657_vm7 }
 0x91a   : > { %v3693_v14 = vsub.f32 1.0, %v3692_v41  ;;  %v3788_v33 = vmul.f32 %v7469_v3, %v7469_v3  ;;  %v3677_v7 = vadd.f32 0.18741608, %v3676_v44  ;;  %v3729_v42 = vmul.f32 %v3728_v1, %v7412_v61 }
 0x91b   : > { %v3765_v6 = vmul.f32 %v3764_v39, %v7450_v48  ;;  %v7491_v15 = vmul.f32 0.70710677, %v7472_v51  ;;  %v3639_v8 = vadd.f32 1.1283791, %v3638_v17  ;;  %v3659_v13 = vsel %vm7484_vm9, %v7442_v34, %v3655_v45 }
 0x91c   : > { %v3694_v58 = vmul.f32 %v7464_v20, %v3693_v14  ;;  %v7497_v59 = vmin.f32 %v3788_v33, 16.0  ;;  %v3663_v38 = vor.u32 1.1754944e-38, %v3662_v18  ;;  %v7499_v5 = vadd.f32 1.0, %v3729_v42 }
 0x91d   : > { %v3754_v30 = vmul.f32 %v3753_v19, %v7450_v48  ;;  %v3766_v60 = vadd.f32 0.112945676, %v3765_v6  ;;  %vm3661_vm10 = vcmp.eq.f32.partialorder %v3660_v9, 8.507059e+37  ;;  %v3717_v47 = vadd.f32 0.18741608, %v3716_v10 }
 0x91e   : > { %v3801_v21 = vmul.f32 3.8918573e-05, %v7497_v59  ;;  %v3664_v52 = vsel %vm3661_vm10, %v3663_v38, %v3659_v13  ;;  %v3678_v53 = vmul.f32 %v3677_v7, %v7373_v37  ;;  %5422 = vrcp.f32 %v7499_v5  ;;  %v3244_v7 = vpop.f32.mrf.mxu2 }
 0x91f   : > { %v3828_v34 = vmul.f32 %v7491_v15, %v7491_v15  ;;  %v3640_v63 = vmul.f32 %v3639_v8, %v7303_v28  ;;  %v3695_v4 = vadd.f32 %v7464_v20, %v3694_v58  ;;  %vm3697_vm11 = vweird.f32 %v7464_v20 }
 0x920   : > { %v3767_v2 = vmul.f32 %v3766_v60, %v7450_v48  ;;  %vm3696_vm12 = vweird.f32 %v7445_v62  ;;  %v3700_v17 = vand.u32 2147483647, %v7445_v62  ;;  %v3702_v11 = vand.u32 2147483648, %v7445_v62  ;;  %v3273_v60 = vpop.f32.mrf.mxu3 }
 0x921   : > { %v3755_v37 = vadd.f32 0.05243302, %v3754_v30  ;;  %v3665_v27 = vmul.f32 %v3664_v52, %v3640_v63  ;;  %v3718_v0 = vmul.f32 %v3717_v47, %v7412_v61  ;;  %v3802_v24 = vadd.f32 0.001143296, %v3801_v21  ;;  %vm7516_vm13 = vmor %vm3696_vm12, %vm3697_vm11 }
 0x922   : > { %v3768_v44 = vadd.f32 0.4994258, %v3767_v2  ;;  %v3284_v28 = vmul.f32 0.5, %v7296_v54  ;;  %v3679_v45 = vadd.f32 1.1283791, %v3678_v53  ;;  %v7520_v41 = vmin.f32 %v3828_v34, 16.0 }
 0x923   : > { %v3699_v1 = vsel %vm7516_vm13, %v7464_v20, %v3695_v4  ;;  %v3790_v19 = vmul.f32 2.1237322e-06, %v7497_v59  ;;  %v3803_v61 = vmul.f32 %v3802_v24, %v7497_v59  ;;  %v3703_v9 = vor.u32 1.1754944e-38, %v3702_v11 }
 0x924   : > { %v3769_v62 = vmul.f32 %v3768_v44, %v7450_v48  ;;  %v5423_v39 = vpop.eup %5422  ;;  %v7529_v54 = vmul.f32 0.5, %v7376_v26  ;;  %v3756_v14 = vmul.f32 %v3755_v37, %v7450_v48  ;;  %v3841_v10 = vmul.f32 3.8918573e-05, %v7520_v41 }
 0x925   : > { %v4912_v33 = vclamps-f32 %v3665_v27, 1.0  ;;  %vm3701_vm14 = vcmp.eq.f32.partialorder %v3700_v17, 8.507059e+37  ;;  %v3719_v35 = vadd.f32 1.1283791, %v3718_v0  ;;  %v3732_v20 = vmul.f32 %v5423_v39, %v7499_v5 }
 0x926   : > { %v3704_v42 = vsel %vm3701_vm14, %v3703_v9, %v3699_v1  ;;  %v3740_v6 = vand.u32 2147483647, %v7499_v5  ;;  %v7535_v8 = vadd.f32 1.0, %v3769_v62  ;;  %v3804_v13 = vadd.f32 0.014752088, %v3803_v61 }
 0x927   : > { %v3680_v58 = vmul.f32 %v3679_v45, %v7327_v31  ;;  %v3733_v26 = vsub.f32 1.0, %v3732_v20  ;;  %v3791_v38 = vadd.f32 0.00028619796, %v3790_v19  ;;  %v3842_v30 = vadd.f32 0.001143296, %v3841_v10 }
 0x928   : > { %v3742_v47 = vand.u32 2147483648, %v7499_v5  ;;  %v3757_v21 = vadd.f32 0.18741608, %v3756_v14  ;;  %5424 = vrcp.f32 %v7535_v8  ;;  %v7541_v52 = vadd.f32 %v3244_v7, %v7077_v25 }
 0x929   : > { %v7543_v53 = vmul.f32 %v3704_v42, %v3680_v58  ;;  %v3734_v34 = vmul.f32 %v5423_v39, %v3733_v26  ;;  %vm3737_vm15 = vweird.f32 %v5423_v39  ;;  %v3805_v63 = vmul.f32 %v3804_v13, %v7497_v59 }
 0x92a   : > { %v3956_v4 = vadd.f32 1.0, %v4912_v33  ;;  %v3720_v31 = vmul.f32 %v3719_v35, %v7399_v55  ;;  %v3843_v2 = vmul.f32 %v3842_v30, %v7520_v41  ;;  %v7549_v17 = vadd.f32 %v3273_v60, %v7079_v57 }
 0x92b   : > { %v3735_v11 = vadd.f32 %v5423_v39, %v3734_v34  ;;  %vm3736_vm0 = vweird.f32 %v7499_v5  ;;  %v3792_v25 = vmul.f32 %v3791_v38, %v7497_v59  ;;  %v3806_v37 = vadd.f32 0.112945676, %v3805_v63 }
 0x92c   : > { %vm3738_vm1 = vmor %vm3736_vm0, %vm3737_vm15  ;;  %v3743_v27 = vor.u32 1.1754944e-38, %v3742_v47  ;;  %v3758_v0 = vmul.f32 %v3757_v21, %v7450_v48  ;;  %v3844_v44 = vadd.f32 0.014752088, %v3843_v2  ;;  %v7555_v24 = vmul.f32 0.70710677, %v7541_v52 }
 0x92d   : > { %v4913_v55 = vclamps-f32 %v7543_v53, 1.0  ;;  %v3739_v45 = vsel %vm3738_vm1, %v5423_v39, %v3735_v11  ;;  %vm3741_vm2 = vcmp.eq.f32.partialorder %v3740_v6, 8.507059e+37  ;;  %v3807_v57 = vmul.f32 %v3806_v37, %v7497_v59 }
 0x92e   : > { %v5425_v18 = vpop.eup %5424  ;;  %v3744_v1 = vsel %vm3741_vm2, %v3743_v27, %v3739_v45  ;;  %v3845_v5 = vmul.f32 %v3844_v44, %v7520_v41  ;;  %v3868_v62 = vmul.f32 %v7555_v24, %v7555_v24  ;;  %v7563_v19 = vmul.f32 0.70710677, %v7549_v17 }
 0x92f   : > { %v3745_v48 = vmul.f32 %v3744_v1, %v3720_v31  ;;  %v3772_v61 = vmul.f32 %v5425_v18, %v7535_v8  ;;  %v3793_v9 = vadd.f32 0.0036580483, %v3792_v25  ;;  %v3830_v14 = vmul.f32 2.1237322e-06, %v7520_v41 }
 0x930   : > { %v3972_v39 = vmul.f32 %v3956_v4, %v3284_v28  ;;  %v3759_v10 = vadd.f32 1.1283791, %v3758_v0  ;;  %v3808_v33 = vadd.f32 0.4994258, %v3807_v57  ;;  %v3846_v35 = vadd.f32 0.112945676, %v3845_v5 }
 0x931   : > { %v4914_v20 = vclamps-f32 %v3745_v48, 1.0  ;;  %v3773_v7 = vsub.f32 1.0, %v3772_v61  ;;  %v3780_v42 = vand.u32 2147483647, %v7535_v8  ;;  %v7568_v6 = vmin.f32 %v3868_v62, 16.0 }
 0x932   : > { %v3782_v13 = vand.u32 2147483648, %v7535_v8  ;;  %v3809_v58 = vmul.f32 %v3808_v33, %v7497_v59  ;;  %v3847_v26 = vmul.f32 %v3846_v35, %v7520_v41  ;;  %v3908_v38 = vmul.f32 %v7563_v19, %v7563_v19 }
 0x933   : > { %v3958_v30 = vadd.f32 1.0, %v4914_v20  ;;  %v3774_v28 = vmul.f32 %v5425_v18, %v3773_v7  ;;  %vm3777_vm3 = vweird.f32 %v5425_v18  ;;  %v3870_v60 = vmul.f32 2.1237322e-06, %v7568_v6 }
 0x934   : > { %v3760_v47 = vmul.f32 %v3759_v10, %v7434_v56  ;;  %v7577_v21 = vadd.f32 1.0, %v3809_v58  ;;  %v3831_v53 = vadd.f32 0.00028619796, %v3830_v14  ;;  %v3848_v34 = vadd.f32 0.4994258, %v3847_v26 }
 0x935   : > { %v3775_v63 = vadd.f32 %v5425_v18, %v3774_v28  ;;  %vm3776_vm4 = vweird.f32 %v7535_v8  ;;  %v3871_v4 = vadd.f32 0.00028619796, %v3870_v60  ;;  %v3881_v31 = vmul.f32 3.8918573e-05, %v7568_v6 }
 0x936   : > { %v3974_v2 = vmul.f32 %v3958_v30, %v7529_v54  ;;  %vm3778_vm5 = vmor %vm3776_vm4, %vm3777_vm3  ;;  %v3783_v11 = vor.u32 1.1754944e-38, %v3782_v13  ;;  %5426 = vrcp.f32 %v7577_v21  ;;  %v7583_v25 = vmin.f32 %v3908_v38, 16.0 }
 0x937   : > { %v3779_v37 = vsel %vm3778_vm5, %v5425_v18, %v3775_v63  ;;  %vm3781_vm6 = vcmp.eq.f32.partialorder %v3780_v42, 8.507059e+37  ;;  %v3849_v56 = vmul.f32 %v3848_v34, %v7520_v41  ;;  %v3872_v27 = vmul.f32 %v3871_v4, %v7568_v6 }
 0x938   : > { %v3784_v0 = vsel %vm3781_vm6, %v3783_v11, %v3779_v37  ;;  %v3794_v8 = vmul.f32 %v3793_v9, %v7497_v59  ;;  %v3832_v44 = vmul.f32 %v3831_v53, %v7520_v41  ;;  %v3882_v45 = vadd.f32 0.001143296, %v3881_v31 }
 0x939   : > { %v3285_v54 = vmul.f32 0.5, %v7309_v16  ;;  %v3785_v57 = vmul.f32 %v3784_v0, %v3760_v47  ;;  %v7590_v1 = vadd.f32 1.0, %v3849_v56  ;;  %v3287_v5 = vmul.f32 0.5, %v7427_v49 }
 0x93a   : > { %v3883_v18 = vmul.f32 %v3882_v45, %v7568_v6  ;;  %v3910_v62 = vmul.f32 2.1237322e-06, %v7583_v25  ;;  %v3984_v48 = vpack.c.bf16 %v3974_v2, %v3972_v39  ;;  %v3957_v61 = vadd.f32 1.0, %v4913_v55 }
 0x93b   : > { %v4915_v14 = vclamps-f32 %v3785_v57, 1.0  ;;  %v3873_v10 = vadd.f32 0.0036580483, %v3872_v27  ;;  %v3921_v9 = vmul.f32 3.8918573e-05, %v7583_v25  ;;  %5428 = vrcp.f32 %v7590_v1 }
 0x93c   : > { %v7596_v33 = vpop.eup %5426  ;;  %v3795_v35 = vadd.f32 0.05243302, %v3794_v8  ;;  %v3833_v20 = vadd.f32 0.0036580483, %v3832_v44  ;;  %v3884_v16 = vadd.f32 0.014752088, %v3883_v18  ;;  %4138 = vmatmul.bf16.gmra.mxu0 %v3984_v48  ;;  %v3973_v55 = vmul.f32 %v3957_v61, %v3285_v54 }
 0x93d   : > { %v3959_v7 = vadd.f32 1.0, %v4915_v14  ;;  %v3812_v49 = vmul.f32 %v7596_v33, %v7577_v21  ;;  %v3911_v42 = vadd.f32 0.00028619796, %v3910_v62  ;;  %v3874_v58 = vmul.f32 %v3873_v10, %v7568_v6 }
 0x93e   : > { %v3885_v39 = vmul.f32 %v3884_v16, %v7568_v6  ;;  %v3922_v26 = vadd.f32 0.001143296, %v3921_v9  ;;  %v3796_v38 = vmul.f32 %v3795_v35, %v7497_v59  ;;  %v3834_v47 = vmul.f32 %v3833_v20, %v7520_v41 }
 0x93f   : > { %v3975_v13 = vmul.f32 %v3959_v7, %v3287_v5  ;;  %v3912_v28 = vmul.f32 %v3911_v42, %v7583_v25  ;;  %v3813_v60 = vsub.f32 1.0, %v3812_v49  ;;  %v3875_v31 = vadd.f32 0.05243302, %v3874_v58  ;;  %v7633_v49 = vld [vmem:[%s815_s2] ss:$0 sm:$0xff] }
 0x940   : > { %v3886_v30 = vadd.f32 0.112945676, %v3885_v39  ;;  %v3923_v53 = vmul.f32 %v3922_v26, %v7583_v25  ;;  %v3797_v11 = vadd.f32 0.18741608, %v3796_v38  ;;  %v3835_v0 = vadd.f32 0.05243302, %v3834_v47 }
 0x941   : > { %v3985_v34 = vpack.c.bf16 %v3975_v13, %v3973_v55  ;;  %v7608_v4 = vpop.eup %5428  ;;  %v3913_v56 = vadd.f32 0.0036580483, %v3912_v28  ;;  %v3814_v27 = vmul.f32 %v7596_v33, %v3813_v60  ;;  %v3876_v54 = vmul.f32 %v3875_v31, %v7568_v6 }
 0x942   : > { %v3887_v63 = vmul.f32 %v3886_v30, %v7568_v6  ;;  %v3924_v2 = vadd.f32 0.014752088, %v3923_v53  ;;  %v3852_v44 = vmul.f32 %v7608_v4, %v7590_v1  ;;  %v3798_v5 = vmul.f32 %v3797_v11, %v7497_v59 }
 0x943   : > { %4167 = vmatmul.bf16.gmra.mxu1 %v3985_v34  ;;  %v3914_v62 = vmul.f32 %v3913_v56, %v7583_v25  ;;  %v3815_v48 = vadd.f32 %v7596_v33, %v3814_v27  ;;  %vm3817_vm7 = vweird.f32 %v7596_v33  ;;  %v3836_v61 = vmul.f32 %v3835_v0, %v7520_v41 }
 0x944   : > { %v3888_v37 = vadd.f32 0.4994258, %v3887_v63  ;;  %v3925_v8 = vmul.f32 %v3924_v2, %v7583_v25  ;;  %v3822_v10 = vand.u32 2147483648, %v7577_v21  ;;  %v3853_v9 = vsub.f32 1.0, %v3852_v44 }
 0x945   : > { %vm3816_vm8 = vweird.f32 %v7577_v21  ;;  %v3820_v59 = vand.u32 2147483647, %v7577_v21  ;;  %v3877_v35 = vadd.f32 0.18741608, %v3876_v54  ;;  %v3915_v16 = vadd.f32 0.05243302, %v3914_v62 }
 0x946   : > { %v3889_v45 = vmul.f32 %v3888_v37, %v7568_v6  ;;  %v3926_v57 = vadd.f32 0.112945676, %v3925_v8  ;;  %vm3818_vm9 = vmor %vm3816_vm8, %vm3817_vm7  ;;  %v3799_v42 = vadd.f32 1.1283791, %v3798_v5  ;;  %v3837_v55 = vadd.f32 0.18741608, %v3836_v61 }
 0x947   : > { %v3819_v39 = vsel %vm3818_vm9, %v7596_v33, %v3815_v48  ;;  %v3823_v13 = vor.u32 1.1754944e-38, %v3822_v10  ;;  %v3854_v58 = vmul.f32 %v7608_v4, %v3853_v9  ;;  %vm3821_vm10 = vcmp.eq.f32.partialorder %v3820_v59, 8.507059e+37 }
 0x948   : > { %v7617_v18 = vadd.f32 1.0, %v3889_v45  ;;  %v3927_v14 = vmul.f32 %v3926_v57, %v7583_v25  ;;  %v3878_v26 = vmul.f32 %v3877_v35, %v7568_v6  ;;  %v3916_v28 = vmul.f32 %v3915_v16, %v7583_v25 }
 0x949   : > { %v3824_v30 = vsel %vm3821_vm10, %v3823_v13, %v3819_v39  ;;  %v3800_v53 = vmul.f32 %v3799_v42, %v7469_v3  ;;  %v3838_v33 = vmul.f32 %v3837_v55, %v7520_v41  ;;  %v3855_v63 = vadd.f32 %v7608_v4, %v3854_v58 }
 0x94a   : > { %5430 = vrcp.f32 %v7617_v18  ;;  %v3928_v7 = vadd.f32 0.4994258, %v3927_v14  ;;  %vm3857_vm11 = vweird.f32 %v7608_v4  ;;  %v3860_v6 = vand.u32 2147483647, %v7590_v1 }
 0x94b   : > { %v3825_v31 = vmul.f32 %v3824_v30, %v3800_v53  ;;  %vm3856_vm12 = vweird.f32 %v7590_v1  ;;  %v3862_v2 = vand.u32 2147483648, %v7590_v1  ;;  %v3879_v3 = vadd.f32 1.1283791, %v3878_v26 }
 0x94c   : > { %v3929_v21 = vmul.f32 %v3928_v7, %v7583_v25  ;;  %v3902_v41 = vand.u32 2147483648, %v7617_v18  ;;  %v3917_v56 = vadd.f32 0.18741608, %v3916_v28  ;;  %vm7653_vm13 = vmor %vm3856_vm12, %vm3857_vm11  ;;  %v3900_v44 = vand.u32 2147483647, %v7617_v18 }
 0x94d   : > { %v3839_v54 = vadd.f32 1.1283791, %v3838_v33  ;;  %v3859_v1 = vsel %vm7653_vm13, %v7608_v4, %v3855_v63  ;;  %vm3861_vm15 = vcmp.eq.f32.partialorder %v3860_v6, 8.507059e+37  ;;  %v4916_v5 = vclamps-f32 %v3825_v31, 1.0 }
 0x94e   : > { %v7640_v60 = vadd.f32 1.0, %v3929_v21  ;;  %v3863_v62 = vor.u32 1.1754944e-38, %v3862_v2  ;;  %vm3896_vm0 = vweird.f32 %v7617_v18  ;;  %v3880_v14 = vmul.f32 %v3879_v3, %v7555_v24 }
 0x94f   : > { %v3903_v10 = vor.u32 1.1754944e-38, %v3902_v41  ;;  %v3918_v9 = vmul.f32 %v3917_v56, %v7583_v25  ;;  %vm3901_vm2 = vcmp.eq.f32.partialorder %v3900_v44, 8.507059e+37 }
 0x950   : > { %v4129_v20 = vpop.f32.mrf.mxu0  ;;  %v5431_v38 = vpop.eup %5430  ;;  %5432 = vrcp.f32 %v7640_v60  ;;  %v3864_v59 = vsel %vm3861_vm15, %v3863_v62, %v3859_v1  ;;  %v3942_v25 = vand.u32 2147483648, %v7640_v60  ;;  %v3940_v26 = vand.u32 2147483647, %v7640_v60 }
 0x951   : > { %v4130_v47 = vadd.f32 %v7633_v49, %v4129_v20  ;;  %v3892_v34 = vmul.f32 %v5431_v38, %v7617_v18  ;;  %v4158_v37 = vpop.f32.mrf.mxu1  ;;  %vm3897_vm14 = vweird.f32 %v5431_v38  ;;  %v3840_v20 = vmul.f32 %v3839_v54, %v7491_v15 }
 0x952   : > { %vm3898_vm1 = vmor %vm3896_vm0, %vm3897_vm14  ;;  %v3960_v18 = vadd.f32 1.0, %v4916_v5  ;;  %v3919_v55 = vadd.f32 1.1283791, %v3918_v9  ;;  %v3290_v15 = vmul.f32 0.5, %v7541_v52  ;;  %vm3936_vm4 = vweird.f32 %v7640_v60 }
 0x953   : > { %v3893_v11 = vsub.f32 1.0, %v3892_v34  ;;  %v4159_v27 = vadd.f32 %v4158_v37, %v4130_v47  ;;  %v3865_v39 = vmul.f32 %v3864_v59, %v3840_v20  ;;  %v3943_v34 = vor.u32 1.1754944e-38, %v3942_v25 }
 0x954   : > { %v3920_v6 = vmul.f32 %v3919_v55, %v7563_v19  ;;  %vm3941_vm6 = vcmp.eq.f32.partialorder %v3940_v26, 8.507059e+37  ;;  %v3289_v37 = vmul.f32 0.5, %v7472_v51 }
 0x955   : > { %v3894_v8 = vmul.f32 %v5431_v38, %v3893_v11  ;;  %v7662_v57 = vadd.f32 %v4159_v27, %v7027_v46  ;;  %v4917_v33 = vclamps-f32 %v3865_v39, 1.0 }
 0x956   : > { %v5433_v61 = vpop.eup %5432 }
 0x957   : > { %v3895_v48 = vadd.f32 %v5431_v38, %v3894_v8  ;;  %4188 = vadd.xlane.f32.xlu1 %v7662_v57  ;;  %v3932_v46 = vmul.f32 %v5433_v61, %v7640_v60  ;;  %vm3937_vm3 = vweird.f32 %v5433_v61  ;;  %v3961_v11 = vadd.f32 1.0, %v4917_v33 }
 0x958   : > { %v4131_v45 = vpop.f32.mrf.mxu0  ;;  %vm3938_vm5 = vmor %vm3936_vm4, %vm3937_vm3  ;;  %v3291_v60 = vmul.f32 0.5, %v7549_v17 }
 0x959   : > { %v4132_v4 = vadd.f32 %v7633_v49, %v4131_v45  ;;  %v3899_v35 = vsel %vm3898_vm1, %v5431_v38, %v3895_v48  ;;  %v3933_v42 = vsub.f32 1.0, %v3932_v46  ;;  %v4160_v24 = vpop.f32.mrf.mxu1  ;;  %v3288_v38 = vmul.f32 0.5, %v7459_v36 }
 0x95a   : > { %v3904_v16 = vsel %vm3901_vm2, %v3903_v10, %v3899_v35  ;;  %v3977_v41 = vmul.f32 %v3961_v11, %v3289_v37 }
 0x95b   : > { %v3905_v7 = vmul.f32 %v3904_v16, %v3880_v14  ;;  %v4161_v13 = vadd.f32 %v4160_v24, %v4132_v4  ;;  %v3934_v21 = vmul.f32 %v5433_v61, %v3933_v42  ;;  %v3976_v53 = vmul.f32 %v3960_v18, %v3288_v38 }
 0x95d   : > { %v4918_v58 = vclamps-f32 %v3905_v7, 1.0  ;;  %v7675_v30 = vadd.f32 %v4161_v13, %v7030_v43  ;;  %v3935_v47 = vadd.f32 %v5433_v61, %v3934_v21 }
 0x95f   : > { %v3962_v28 = vadd.f32 1.0, %v4918_v58  ;;  %4190 = vadd.xlane.f32.xlu0 %v7675_v30  ;;  %v3939_v31 = vsel %vm3938_vm5, %v5433_v61, %v3935_v47 }
 0x960   : > { %v3944_v36 = vsel %vm3941_vm6, %v3943_v34, %v3939_v31 }
 0x961   : > { %v3978_v63 = vmul.f32 %v3962_v28, %v3290_v15  ;;  %v3945_v43 = vmul.f32 %v3944_v36, %v3920_v6 }
 0x963   : > { %v3986_v2 = vpack.c.bf16 %v3978_v63, %v3976_v53  ;;  %v4919_v52 = vclamps-f32 %v3945_v43, 1.0 }
 0x965   : > { %4143 = vmatmul.bf16.gmra.mxu0 %v3986_v2  ;;  %v3963_v3 = vadd.f32 1.0, %v4919_v52 }
 0x967   : > { %v3979_v56 = vmul.f32 %v3963_v3, %v3291_v60 }
 0x969   : > { %v3987_v27 = vpack.c.bf16 %v3979_v56, %v3977_v41 }
 0x96b   : > { %4172 = vmatmul.bf16.gmra.mxu1 %v3987_v27 }
 0x992   : > { %v4134_v0 = vpop.f32.mrf.mxu0 }
 0x993   : > { %v4135_v19 = vadd.f32 %v7633_v49, %v4134_v0  ;;  %v4163_v8 = vpop.f32.mrf.mxu1  ;;  %v7729_v0 = vld [vmem:[%s818_s7] ss:$0 sm:$0xff] }
 0x995   : > { %v4164_v44 = vadd.f32 %v4163_v8, %v4135_v19  ;;  %v7736_v8 = vld [vmem:[%s821_s9] ss:$0 sm:$0xff] }
 0x997   : > { %v4180_v45 = vadd.f32 %v4164_v44, %v7043_v23 }
 0x999   : > { %4192 = vadd.xlane.f32.xlu2 %v4180_v45 }
 0x99a   : > { %v4136_v54 = vpop.f32.mrf.mxu0 }
 0x99b   : > { %v4137_v1 = vadd.f32 %v7633_v49, %v4136_v54  ;;  %v4165_v5 = vpop.f32.mrf.mxu1 }
 0x99d   : > { %v4166_v51 = vadd.f32 %v4165_v5, %v4137_v1 }
 0x99f   : > { %v4181_v17 = vadd.f32 %v4166_v51, %v7046_v29 }
 0x9a1   : > { %4194 = vadd.xlane.f32.xlu1 %v4181_v17 }
 0x9b9   : > { %v4139_v62 = vpop.f32.mrf.mxu0 }
 0x9ba   : > { %v4140_v48 = vadd.f32 %v7633_v49, %v4139_v62 }
 0x9c0   : > { %v4168_v61 = vpop.f32.mrf.mxu1 }
 0x9c1   : > { %v4169_v14 = vadd.f32 %v4168_v61, %v4140_v48  ;;  %v4141_v10 = vpop.f32.mrf.mxu0 }
 0x9c2   : > { %v4142_v23 = vadd.f32 %v7633_v49, %v4141_v10 }
 0x9c3   : > { %v4182_v9 = vadd.f32 %v4169_v14, %v7055_v12 }
 0x9c5   : > { %4196 = vadd.xlane.f32.xlu0 %v4182_v9 }
 0x9c8   : > { %v4170_v4 = vpop.f32.mrf.mxu1 }
 0x9c9   : > { %v4171_v59 = vadd.f32 %v4170_v4, %v4142_v23 }
 0x9ca   : > { %v4189_v46 = vpop.xlane.xlu1 %4188 }
 0x9cb   : > { %v4183_v35 = vadd.f32 %v4171_v59, %v7058_v32  ;;  %v4204_v20 = vmul.f32 %v4189_v46, %v6924_v40 }
 0x9cd   : > { %4198 = vadd.xlane.f32.xlu2 %v4183_v35  ;;  %v4212_v29 = vsub.f32 %v7662_v57, %v4204_v20 }
 0x9cf   : > { %v4220_v16 = vmul.f32 %v4212_v29, %v4212_v29 }
 0x9d2   : > { %v4191_v12 = vpop.xlane.xlu0 %4190 }
 0x9d3   : > { %v4205_v25 = vmul.f32 %v4191_v12, %v6924_v40 }
 0x9d5   : > { %4228 = vadd.xlane.f32.xlu2 %v4220_v16  ;;  %v7698_v13 = vsub.f32 %v7675_v30, %v4205_v25 }
 0x9d7   : > { %v4221_v26 = vmul.f32 %v7698_v13, %v7698_v13 }
 0x9e2   : > { %v4144_v18 = vpop.f32.mrf.mxu0 }
 0x9e3   : > { %v4145_v7 = vadd.f32 %v7633_v49, %v4144_v18 }
 0x9e8   : > { %v4173_v42 = vpop.f32.mrf.mxu1 }
 0x9e9   : > { %v4174_v24 = vadd.f32 %v4173_v42, %v4145_v7 }
 0x9ea   : > { %v4146_v39 = vpop.f32.mrf.mxu0 }
 0x9eb   : > { %v4184_v55 = vadd.f32 %v4174_v24, %v7069_v22  ;;  %v4147_v32 = vadd.f32 %v7633_v49, %v4146_v39 }
 0x9ed   : > { %4200 = vadd.xlane.f32.xlu1 %v4184_v55 }
 0x9f0   : > { %v4175_v57 = vpop.f32.mrf.mxu1 }
 0x9f1   : > { %v4176_v58 = vadd.f32 %v4175_v57, %v4147_v32 }
 0x9f3   : > { %v4185_v21 = vadd.f32 %v4176_v58, %v7072_v50 }
 0x9f5   : > { %4202 = vadd.xlane.f32.xlu0 %v4185_v21  ;;  %4230 = vadd.xlane.f32.xlu1 %v4221_v26 }
 0xa0c   : > { %v4193_v38 = vpop.xlane.xlu2 %4192 }
 0xa0d   : > { %v4206_v22 = vmul.f32 %v4193_v38, %v6924_v40 }
 0xa0f   : > { %v7704_v15 = vsub.f32 %v4180_v45, %v4206_v22 }
 0xa11   : > { %v4222_v49 = vmul.f32 %v7704_v15, %v7704_v15 }
 0xa13   : > { %4232 = vadd.xlane.f32.xlu0 %v4222_v49 }
 0xa14   : > { %v4195_v30 = vpop.xlane.xlu1 %4194 }
 0xa15   : > { %v4207_v28 = vmul.f32 %v4195_v30, %v6924_v40 }
 0xa17   : > { %v7709_v47 = vsub.f32 %v4181_v17, %v4207_v28 }
 0xa19   : > { %v4223_v50 = vmul.f32 %v7709_v47, %v7709_v47 }
 0xa1b   : > { %4234 = vadd.xlane.f32.xlu2 %v4223_v50 }
 0xa38   : > { %v4197_v53 = vpop.xlane.xlu0 %4196 }
 0xa39   : > { %v4208_v33 = vmul.f32 %v4197_v53, %v6924_v40 }
 0xa3b   : > { %v7714_v34 = vsub.f32 %v4182_v9, %v4208_v33 }
 0xa3d   : > { %v4224_v63 = vmul.f32 %v7714_v34, %v7714_v34 }
 0xa3f   : > { %4236 = vadd.xlane.f32.xlu1 %v4224_v63 }
 0xa40   : > { %v4199_v6 = vpop.xlane.xlu2 %4198 }
 0xa41   : > { %v4209_v31 = vmul.f32 %v4199_v6, %v6924_v40 }
 0xa43   : > { %v7719_v36 = vsub.f32 %v4183_v35, %v4209_v31 }
 0xa45   : > { %v4225_v43 = vmul.f32 %v7719_v36, %v7719_v36 }
 0xa47   : > { %4238 = vadd.xlane.f32.xlu0 %v4225_v43 }
 0xa48   : > { %v4229_v2 = vpop.xlane.xlu2 %4228 }
 0xa49   : > { %v4244_v11 = vmul.f32 %v4229_v2, %v6924_v40 }
 0xa4b   : > { %v4252_v52 = vadd.f32 1e-12, %v4244_v11 }
 0xa4d   : > { %5434 = vrsqrt.f32 %v4252_v52  ;;  %vm4266_vm8 = vweird.f32 %v4252_v52 }
 0xa53   : > { %v5435_v37 = vpop.eup %5434 }
 0xa54   : > { %v4261_v60 = vmul.f32 %v5435_v37, %v4252_v52  ;;  %vm4267_vm7 = vweird.f32 %v5435_v37 }
 0xa55   : > { %vm4268_vm9 = vmor %vm4266_vm8, %vm4267_vm7 }
 0xa56   : > { %v4262_v3 = vmul.f32 %v5435_v37, %v4261_v60 }
 0xa58   : > { %v4263_v41 = vmul.f32 0.5, %v4262_v3 }
 0xa5a   : > { %v4264_v56 = vsub.f32 1.5, %v4263_v41 }
 0xa5c   : > { %v4265_v27 = vmul.f32 %v5435_v37, %v4264_v56 }
 0xa5e   : > { %v4269_v19 = vsel %vm4268_vm9, %v5435_v37, %v4265_v27 }
 0xa5f   : > { %v4340_v44 = vmul.f32 %v4269_v19, %v4212_v29 }
 0xa60   : > { %v4201_v54 = vpop.xlane.xlu1 %4200 }
 0xa61   : > { %v4351_v45 = vmul.f32 %v7729_v0, %v4340_v44  ;;  %v4210_v5 = vmul.f32 %v4201_v54, %v6924_v40 }
 0xa63   : > { %v7740_v1 = vadd.f32 %v7736_v8, %v4351_v45  ;;  %v7744_v51 = vsub.f32 %v4184_v55, %v4210_v5 }
 0xa65   : > { %4370 = vst [vmem:[#allocation2 + $0x30] sm:$0xff] %v7740_v1  ;;  %v4226_v17 = vmul.f32 %v7744_v51, %v7744_v51 }
 0xa67   : > { %4240 = vadd.xlane.f32.xlu2 %v4226_v17 }
 0xa68   : > { %v4231_v62 = vpop.xlane.xlu1 %4230  ;;  %v4203_v48 = vpop.xlane.xlu0 %4202 }
 0xa69   : > { %v4245_v61 = vmul.f32 %v4231_v62, %v6924_v40  ;;  %v4211_v14 = vmul.f32 %v4203_v48, %v6924_v40 }
 0xa6b   : > { %v4253_v10 = vadd.f32 1e-12, %v4245_v61  ;;  %v7750_v9 = vsub.f32 %v4185_v21, %v4211_v14 }
 0xa6d   : > { %5436 = vrsqrt.f32 %v4253_v10  ;;  %v4227_v23 = vmul.f32 %v7750_v9, %v7750_v9  ;;  %vm4276_vm11 = vweird.f32 %v4253_v10 }
 0xa6f   : > { %4242 = vadd.xlane.f32.xlu1 %v4227_v23 }
 0xa73   : > { %v5437_v4 = vpop.eup %5436 }
 0xa74   : > { %v4271_v59 = vmul.f32 %v5437_v4, %v4253_v10  ;;  %vm4277_vm10 = vweird.f32 %v5437_v4 }
 0xa75   : > { %vm4278_vm12 = vmor %vm4276_vm11, %vm4277_vm10 }
 0xa76   : > { %v4272_v35 = vmul.f32 %v5437_v4, %v4271_v59 }
 0xa78   : > { %v4273_v46 = vmul.f32 0.5, %v4272_v35 }
 0xa7a   : > { %v4274_v20 = vsub.f32 1.5, %v4273_v46 }
 0xa7c   : > { %v4275_v29 = vmul.f32 %v5437_v4, %v4274_v20 }
 0xa7e   : > { %v4279_v16 = vsel %vm4278_vm12, %v5437_v4, %v4275_v29 }
 0xa7f   : > { %v4341_v18 = vmul.f32 %v4279_v16, %v7698_v13 }
 0xa81   : > { %v4352_v7 = vmul.f32 %v7729_v0, %v4341_v18 }
 0xa83   : > { %v7757_v42 = vadd.f32 %v7736_v8, %v4352_v7 }
 0xa85   : > { %4371 = vst [vmem:[#allocation2] sm:$0xff] %v7757_v42 }
 0xa86   : > { %v4233_v12 = vpop.xlane.xlu0 %4232 }
 0xa87   : > { %v4246_v24 = vmul.f32 %v4233_v12, %v6924_v40 }
 0xa89   : > { %v4254_v39 = vadd.f32 1e-12, %v4246_v24 }
 0xa8b   : > { %5438 = vrsqrt.f32 %v4254_v39  ;;  %vm4286_vm14 = vweird.f32 %v4254_v39 }
 0xa8e   : > { %v4235_v55 = vpop.xlane.xlu2 %4234 }
 0xa8f   : > { %v4247_v25 = vmul.f32 %v4235_v55, %v6924_v40 }
 0xa91   : > { %v5439_v32 = vpop.eup %5438  ;;  %v4255_v57 = vadd.f32 1e-12, %v4247_v25 }
 0xa92   : > { %v4281_v58 = vmul.f32 %v5439_v32, %v4254_v39  ;;  %vm4287_vm13 = vweird.f32 %v5439_v32 }
 0xa93   : > { %5440 = vrsqrt.f32 %v4255_v57  ;;  %vm4288_vm15 = vmor %vm4286_vm14, %vm4287_vm13  ;;  %vm4296_vm1 = vweird.f32 %v4255_v57 }
 0xa94   : > { %v4282_v13 = vmul.f32 %v5439_v32, %v4281_v58 }
 0xa96   : > { %v4283_v21 = vmul.f32 0.5, %v4282_v13 }
 0xa98   : > { %v4284_v26 = vsub.f32 1.5, %v4283_v21 }
 0xa99   : > { %v5441_v38 = vpop.eup %5440 }
 0xa9a   : > { %v4285_v22 = vmul.f32 %v5439_v32, %v4284_v26  ;;  %v4291_v49 = vmul.f32 %v5441_v38, %v4255_v57  ;;  %vm4297_vm0 = vweird.f32 %v5441_v38 }
 0xa9b   : > { %vm4298_vm2 = vmor %vm4296_vm1, %vm4297_vm0 }
 0xa9c   : > { %v4289_v30 = vsel %vm4288_vm15, %v5439_v32, %v4285_v22  ;;  %v4292_v28 = vmul.f32 %v5441_v38, %v4291_v49 }
 0xa9d   : > { %v4342_v50 = vmul.f32 %v4289_v30, %v7704_v15 }
 0xa9e   : > { %v4293_v53 = vmul.f32 0.5, %v4292_v28 }
 0xa9f   : > { %v4353_v33 = vmul.f32 %v7729_v0, %v4342_v50 }
 0xaa0   : > { %v4294_v63 = vsub.f32 1.5, %v4293_v53 }
 0xaa1   : > { %v7765_v6 = vadd.f32 %v7736_v8, %v4353_v33 }
 0xaa2   : > { %v4295_v31 = vmul.f32 %v5441_v38, %v4294_v63 }
 0xaa3   : > { %4372 = vst [vmem:[#allocation2 + $0x18] sm:$0xff] %v7765_v6 }
 0xaa4   : > { %v4299_v43 = vsel %vm4298_vm2, %v5441_v38, %v4295_v31 }
 0xaa5   : > { %v4343_v2 = vmul.f32 %v4299_v43, %v7709_v47 }
 0xaa7   : > { %v4354_v11 = vmul.f32 %v7729_v0, %v4343_v2 }
 0xaa9   : > { %v7771_v15 = vadd.f32 %v7736_v8, %v4354_v11 }
 0xaab   : > { %4373 = vst [vmem:[#allocation2 + $0x10] sm:$0xff] %v7771_v15 }
 0xab2   : > { %v4237_v52 = vpop.xlane.xlu1 %4236 }
 0xab3   : > { %v4248_v37 = vmul.f32 %v4237_v52, %v6924_v40 }
 0xab5   : > { %v4256_v60 = vadd.f32 1e-12, %v4248_v37 }
 0xab7   : > { %5442 = vrsqrt.f32 %v4256_v60  ;;  %vm4306_vm4 = vweird.f32 %v4256_v60 }
 0xaba   : > { %v4239_v3 = vpop.xlane.xlu0 %4238 }
 0xabb   : > { %v4249_v41 = vmul.f32 %v4239_v3, %v6924_v40 }
 0xabd   : > { %v5443_v56 = vpop.eup %5442  ;;  %v4257_v27 = vadd.f32 1e-12, %v4249_v41 }
 0xabe   : > { %v4301_v19 = vmul.f32 %v5443_v56, %v4256_v60  ;;  %vm4307_vm3 = vweird.f32 %v5443_v56 }
 0xabf   : > { %5444 = vrsqrt.f32 %v4257_v27  ;;  %vm4308_vm5 = vmor %vm4306_vm4, %vm4307_vm3  ;;  %vm4316_vm7 = vweird.f32 %v4257_v27 }
 0xac0   : > { %v4302_v47 = vmul.f32 %v5443_v56, %v4301_v19 }
 0xac2   : > { %v4303_v44 = vmul.f32 0.5, %v4302_v47 }
 0xac4   : > { %v4304_v45 = vsub.f32 1.5, %v4303_v44 }
 0xac5   : > { %v5445_v54 = vpop.eup %5444 }
 0xac6   : > { %v4305_v5 = vmul.f32 %v5443_v56, %v4304_v45  ;;  %v4311_v17 = vmul.f32 %v5445_v54, %v4257_v27  ;;  %vm4317_vm6 = vweird.f32 %v5445_v54 }
 0xac7   : > { %vm4318_vm8 = vmor %vm4316_vm7, %vm4317_vm6 }
 0xac8   : > { %v4309_v62 = vsel %vm4308_vm5, %v5443_v56, %v4305_v5  ;;  %v4312_v48 = vmul.f32 %v5445_v54, %v4311_v17 }
 0xac9   : > { %v4344_v61 = vmul.f32 %v4309_v62, %v7714_v34 }
 0xaca   : > { %v4313_v14 = vmul.f32 0.5, %v4312_v48 }
 0xacb   : > { %v4355_v10 = vmul.f32 %v7729_v0, %v4344_v61 }
 0xacc   : > { %v4314_v23 = vsub.f32 1.5, %v4313_v14 }
 0xacd   : > { %v4366_v4 = vadd.f32 %v7736_v8, %v4355_v10 }
 0xace   : > { %v4315_v59 = vmul.f32 %v5445_v54, %v4314_v23 }
 0xacf   : > { %4374 = vst [vmem:[#allocation2 + $0x8] sm:$0xff] %v4366_v4 }
 0xad0   : > { %v4319_v35 = vsel %vm4318_vm8, %v5445_v54, %v4315_v59 }
 0xad1   : > { %v4345_v46 = vmul.f32 %v4319_v35, %v7719_v36 }
 0xad3   : > { %v4356_v20 = vmul.f32 %v7729_v0, %v4345_v46 }
 0xad5   : > { %v4367_v29 = vadd.f32 %v7736_v8, %v4356_v20 }
 0xad7   : > { %4375 = vst [vmem:[#allocation2 + $0x20] sm:$0xff] %v4367_v29 }
 0xada   : > { %v4241_v34 = vpop.xlane.xlu2 %4240 }
 0xadb   : > { %v4250_v16 = vmul.f32 %v4241_v34, %v6924_v40 }
 0xadd   : > { %v4258_v18 = vadd.f32 1e-12, %v4250_v16 }
 0xadf   : > { %5446 = vrsqrt.f32 %v4258_v18  ;;  %vm4326_vm10 = vweird.f32 %v4258_v18 }
 0xae2   : > { %v4243_v7 = vpop.xlane.xlu1 %4242 }
 0xae3   : > { %v4251_v12 = vmul.f32 %v4243_v7, %v6924_v40 }
 0xae5   : > { %v5447_v24 = vpop.eup %5446  ;;  %v4259_v39 = vadd.f32 1e-12, %v4251_v12 }
 0xae6   : > { %v4321_v55 = vmul.f32 %v5447_v24, %v4258_v18  ;;  %vm4327_vm9 = vweird.f32 %v5447_v24 }
 0xae7   : > { %5448 = vrsqrt.f32 %v4259_v39  ;;  %vm4328_vm11 = vmor %vm4326_vm10, %vm4327_vm9  ;;  %vm4336_vm13 = vweird.f32 %v4259_v39 }
 0xae8   : > { %v4322_v25 = vmul.f32 %v5447_v24, %v4321_v55 }
 0xaea   : > { %v4323_v32 = vmul.f32 0.5, %v4322_v25 }
 0xaec   : > { %v4324_v36 = vsub.f32 1.5, %v4323_v32 }
 0xaed   : > { %v5449_v57 = vpop.eup %5448 }
 0xaee   : > { %v4325_v58 = vmul.f32 %v5447_v24, %v4324_v36  ;;  %v4331_v13 = vmul.f32 %v5449_v57, %v4259_v39  ;;  %vm4337_vm12 = vweird.f32 %v5449_v57 }
 0xaef   : > { %vm4338_vm14 = vmor %vm4336_vm13, %vm4337_vm12 }
 0xaf0   : > { %v4329_v21 = vsel %vm4328_vm11, %v5447_v24, %v4325_v58  ;;  %v4332_v26 = vmul.f32 %v5449_v57, %v4331_v13 }
 0xaf1   : > { %v4346_v38 = vmul.f32 %v4329_v21, %v7744_v51 }
 0xaf2   : > { %v4333_v22 = vmul.f32 0.5, %v4332_v26 }
 0xaf3   : > { %v4357_v40 = vmul.f32 %v7729_v0, %v4346_v38 }
 0xaf4   : > { %v4334_v49 = vsub.f32 1.5, %v4333_v22 }
 0xaf5   : > { %v4368_v30 = vadd.f32 %v7736_v8, %v4357_v40 }
 0xaf6   : > { %v4335_v28 = vmul.f32 %v5449_v57, %v4334_v49 }
 0xaf7   : > { %4376 = vst [vmem:[#allocation2 + $0x28] sm:$0xff] %v4368_v30 }
 0xaf8   : > { %v4339_v50 = vsel %vm4338_vm14, %v5449_v57, %v4335_v28 }
 0xaf9   : > { %v4347_v53 = vmul.f32 %v4339_v50, %v7750_v9 }
 0xafb   : > { %v4358_v33 = vmul.f32 %v7729_v0, %v4347_v53  ;;  %4381 = sbr.rel (%p4984_p10) target bundleno = 2822 (0xb06), region = 108 }
 0xafd   : > { %v4369_v63 = vadd.f32 %v7736_v8, %v4358_v33 }
 0xaff   : > { %4377 = vst [vmem:[#allocation2 + $0x38] sm:$0xff] %v4369_v63 }
 0xb00   : > { %v5064_v51 = vpack.c.bf16 %v7757_v42, %v7740_v1  ;;  %v5069_v31 = vpack.c.bf16 %v7771_v15, %v7765_v6  ;;  %v5074_v43 = vpack.c.bf16 %v4367_v29, %v4366_v4  ;;  %v5079_v9 = vpack.c.bf16 %v4369_v63, %v4368_v30 }
 0xb02   : > { %5065 = vst [vmem:[%s5999_s18] sm:$0xff] %v5064_v51  }
 0xb03   : > { %5081 = vst [vmem:[%s5999_s18 + $0x8] sm:$0xff] %v5069_v31  }
 0xb04   : > { %5082 = vst [vmem:[%s5999_s18 + $0x10] sm:$0xff] %v5074_v43  }
 0xb05   : > { %5083 = vst [vmem:[%s5999_s18 + $0x18] sm:$0xff] %v5079_v9  }
 0xb06 PF: > { %s7969_s7 = sld [smem:[#allocation19_spill]]  ;;  %s4411_s16 = sshll.u32 %s5999_s18, 4  ;;  %s4412_s16 = int_to_ptr.vmem [resolvable:$true] %s4411_s16 }
 0xb07   : > { %s7970_s9 = sld [smem:[#allocation15_spill]] }
 0xb08   : > { %s7972_s17 = sld [smem:[#allocation45_spill]] }
 0xb0c   : > { %s5060_s20 = sshll.u32 %s7969_s7, 5 }
 0xb0d   : > { %s7973_s19 = sand.u32 1, %s7970_s9  }
 0xb0e   : > { %s4410_s11 = scalar_lea.hbm %s7972_s17, %s5060_s20  ;;  %s4399_s23 = scalar_lea.sflag [#allocation6], %s7973_s19 }
 0xb0f   : > { %s4413_s12 = sshll.u32 %s4410_s11, 4  ;;  %s5568_s26 = scalar_lea.hbm %s7972_s17, 64  ;;  %s4414_s12 = int_to_ptr.hbm [resolvable:$true] %s4413_s12 }
 0xb10   : > { %s5562_s6 = sshra.s32 %s4414_s12, 4  ;;  %s5563_s6 = int_to_ptr.hbm [resolvable:$true] %s5562_s6 }
 0xb11   : > { %s5564_s13 = scalar_lea.hbm %s5563_s6, 32  ;;  %p5569_p1 = scmp.lt.s32.totalorder %s5563_s6, %s7972_s17 }
 0xb12   : > { %p5565_p11 = scmp.ne.s32.totalorder %s5563_s6, %s5564_s13  ;;  %p5570_p4 = scmp.lt.s32.totalorder %s5568_s26, %s5564_s13 }
 0xb14   : > { %p5566_p13 = pnand %p5565_p11, %p5870_p12  ;;  %p5571_p3 = por %p5570_p4, %p5569_p1 }
 0xb16   : > { %p5567_p0 = pneg %p5566_p13 }
 0xb18   : > { %p5572_p5 = pnand %p5571_p3, %p5567_p0 }
 0xb1a   : > { %5575 = shalt.err (!%p5572_p5)
}
 0xb1b   : > { %s5687_s18 = smov 4  }
 0xb1c   : > { %5111 = dma.vmem_to_hbm [thread:$0]  (%p5870_p12), %s4412_s16, 512, %s4414_s12, %s4399_s23, %s5684_s25, %s5684_s25, %s5687_s18  }
 0xb1d PF: > { %s7974_s30 = sld [smem:[#allocation22_spill]] }
 0xb1e   : > { %s7975_s14 = sld [smem:[#allocation14_spill]] }
 0xb23   : > { %p5128_p6 = scmp.ge.s32.totalorder %s7974_s30, 2 }
 0xb24   : > { %s4428_s24 = sand.u32 1, %s7975_s14  }
 0xb25   : > { %p5124_p7 = pnand %p5128_p6, %p5880_p2  ;;  %s4429_s27 = scalar_lea.sflag [#allocation6], %s4428_s24 }
 0xb27   : > { %p5125_p9 = pneg %p5124_p7 }
 0xb29   : > { %5629 = dma.done.wait (%p5125_p9), %s4429_s27, 512  }
 0xb2a   : > { %5631 = vsyncadd (%p5125_p9), %s4429_s27, 4294966784  ;;  %s36_s1 = sadd.s32 1, %s7974_s30   ;;  %s7977_s24 = sld [smem:[#allocation15_spill]] }
 0xb2b   : > { %p33_p8 = scmp.ge.s32.totalorder %s36_s1, 6   ;;  %s7978_s25 = sld [smem:[#allocation16_spill]] }
 0xb2c   : > { %s7979_s26 = sld [smem:[#allocation26_spill]] }
 0xb2d   : > { %s7980_s27 = sld [smem:[#allocation17_spill]] }
 0xb2e   : > { %s7981_s28 = sld [smem:[#allocation18_spill]] }
 0xb2f   : > { %s7982_s29 = sld [smem:[#allocation25_spill]]  ;;  %35 = sbr.rel (!%p33_p8) target bundleno = 29 (0x1d), region = 195 }
 0xb30   : > { %s7983_s0 = sld [smem:[#allocation20_spill]] }
 0xb31   : > { %s7984_s30 = sld [smem:[#allocation21_spill]] }
 0xb32   : > { %s7985_s18 = sld [smem:[#allocation23_spill]] }
 0xb33   : > { %s7986_s19 = sld [smem:[#allocation24_spill]] }
 0xb34   :  { %4435 = vsyncpa [#allocation5], 1 }
 0xb35   :  { %4437 = vsyncpa [#allocation5 + $0x1], 1 }
 0xb36   :  { %4438 = vsyncpa [#allocation8], 1 }
 0xb37   :  { %4440 = vsyncpa [#allocation8 + $0x1], 1 }
 0xb38   :  { %4441 = vsyncpa [#allocation6], 1 }
 0xb39   :  { %4443 = vsyncpa [#allocation6 + $0x1], 1 }

</bundles_post_ra>
